<compile_context>
chip_gen: v6e
topology: v6e:2x2x1
jax: 0.10.0
libtpu: 0.0.40
codegen_flags: <defaults>
</compile_context>

<pallas_src>
import functools

import jax
import jax.numpy as jnp
from jax.experimental import pallas as pl
from jax.experimental.pallas import tpu as pltpu

# ---------------------------------------------------------------------------
# configuration (synthetic, scaled-down)
# ---------------------------------------------------------------------------
FEAT_DIMS = [16, 16, 16, 8]
MODALITY = (0, 1, 2, 3)
D_RAW = sum(FEAT_DIMS)          # 56
DD_MID = 128                    # dim_decrease hidden width
HIDDEN = 32                     # hidden_dim
H = HIDDEN // 2                 # LSTM hidden per direction
HEAD = 16                       # head conv width
NCLS = 10                       # num classes
REG_OFF = HEAD                  # lane offset of the 2 regression outputs in the fused head
CP = 128                        # padded (lane-dense) channel width for all feature tensors
EPS_BN = 1e-5
EPS_LN = 1e-5


def _round_up(x, m):
    return ((x + m - 1) // m) * m


# ---------------------------------------------------------------------------
# Kernel 1: row-gridded fused MLP (Linear[+folded BN][+ReLU] chain)
# ---------------------------------------------------------------------------
def _mlp_kernel(x_ref, *rest, relu_flags):
    o_ref = rest[-1]
    prefs = rest[:-1]
    y = x_ref[...]
    for li, do_relu in enumerate(relu_flags):
        w = prefs[2 * li][...]
        b = prefs[2 * li + 1][...]
        y = jnp.dot(y, w, preferred_element_type=jnp.float32) + b
        if do_relu:
            y = jnp.maximum(y, 0.0)
    o_ref[...] = y


def pallas_mlp(x, layers):
    """x: (R, K0); layers: [(W (K_{i-1}, K_i), b (1, K_i), relu: bool), ...] -> (R, K_last)."""
    R, K0 = x.shape
    TR = min(256, _round_up(R, 8))
    Rp = _round_up(R, TR)
    if Rp != R:
        x = jnp.pad(x, ((0, Rp - R), (0, 0)))
    relu_flags = tuple(bool(l[2]) for l in layers)
    k_out = layers[-1][0].shape[1]

    in_specs = [pl.BlockSpec((TR, K0), lambda i: (i, 0))]
    args = [x]
    for (w, b, _) in layers:
        args += [w, b]
        in_specs += [pl.BlockSpec(w.shape, lambda i: (0, 0)),
                     pl.BlockSpec(b.shape, lambda i: (0, 0))]

    out = pl.pallas_call(
        functools.partial(_mlp_kernel, relu_flags=relu_flags),
        out_shape=jax.ShapeDtypeStruct((Rp, k_out), jnp.float32),
        grid=(Rp // TR,),
        in_specs=in_specs,
        out_specs=pl.BlockSpec((TR, k_out), lambda i: (i, 0)),
        compiler_params=pltpu.CompilerParams(dimension_semantics=("parallel",)),
    )(*args)
    return out[:R]


# ---------------------------------------------------------------------------
# Kernel 2: fused conv stack (Conv1d k=3 pad=1 [+ segmented LN][+ per-lane ReLU]) x N layers,
#           gridded over the batch dimension.  The 3-tap conv is one (T, 3*CP) x (3*CP, CP)
#           matmul; shifted views are built via a VMEM scratch (aligned store + static loads).
# ---------------------------------------------------------------------------
def _conv_stack_kernel(x_ref, mask_ref, *rest, t_len, cp, use_ln, eps):
    buf_ref = rest[-1]                                    # VMEM scratch (T + 16, CP)
    o_ref = rest[-2]
    prefs = rest[:-2]

    mask = mask_ref[...]                                  # (T, 1) valid-row mask
    y = x_ref[...] * mask                                 # (T, CP)
    buf_ref[...] = jnp.zeros((t_len + 16, cp), jnp.float32)

    idx = 0
    for ln in use_ln:
        w = prefs[idx][...]                               # (3*CP, CP) fused 3-tap weight
        b = prefs[idx + 1][...]                           # (1, CP)
        rsel = prefs[idx + 2][...]                        # (1, CP) per-lane ReLU selector
        idx += 3
        if ln:
            m_seg = prefs[idx][...]                       # (CP, CP) segmented averaging matrix
            g = prefs[idx + 1][...]                       # (1, CP) LN gamma (zero on pad lanes)
            bt = prefs[idx + 2][...]                      # (1, CP) LN beta
            idx += 3

        # shifted views of y: rows 7 and 8+T of the scratch stay zero == conv zero padding
        buf_ref[8:8 + t_len, :] = y
        ym1 = buf_ref[7:7 + t_len, :]                     # y[t-1]
        yp1 = buf_ref[9:9 + t_len, :]                     # y[t+1]
        z = jnp.concatenate([ym1, y, yp1], axis=1)        # (T, 3*CP)

        h = jnp.dot(z, w, preferred_element_type=jnp.float32) + b
        if ln:
            # segmented LayerNorm over real channel groups; padded lanes stay exactly zero.
            mu = jnp.dot(h, m_seg, preferred_element_type=jnp.float32)
            r = h - mu
            var = jnp.dot(r * r, m_seg, preferred_element_type=jnp.float32)
            h = r * jax.lax.rsqrt(var + eps) * g + bt
        h = jnp.where(rsel > 0.0, jnp.maximum(h, 0.0), h)
        y = h * mask                                      # re-zero invalid rows between layers
    o_ref[...] = y


def pallas_conv_stack(x_btc, mask_bt1, layers, *, eps=EPS_LN):
    """x: (B, T, CP); mask: (B, T, 1); layers: prepacked conv-layer dicts -> (B, T, CP)."""
    B, T, cp = x_btc.shape
    use_ln = tuple(('m' in l) for l in layers)

    in_specs = [pl.BlockSpec((None, T, cp), lambda b: (b, 0, 0)),
                pl.BlockSpec((None, T, 1), lambda b: (b, 0, 0))]
    args = [x_btc, mask_bt1]
    for l in layers:
        args += [l['wf'], l['bf'], l['rsel']]
        in_specs += [pl.BlockSpec(l['wf'].shape, lambda b: (0, 0)),
                     pl.BlockSpec(l['bf'].shape, lambda b: (0, 0)),
                     pl.BlockSpec(l['rsel'].shape, lambda b: (0, 0))]
        if 'm' in l:
            args += [l['m'], l['g'], l['beta']]
            in_specs += [pl.BlockSpec(l['m'].shape, lambda b: (0, 0)),
                         pl.BlockSpec(l['g'].shape, lambda b: (0, 0)),
                         pl.BlockSpec(l['beta'].shape, lambda b: (0, 0))]

    return pl.pallas_call(
        functools.partial(_conv_stack_kernel, t_len=T, cp=cp, use_ln=use_ln, eps=eps),
        out_shape=jax.ShapeDtypeStruct((B, T, cp), jnp.float32),
        grid=(B,),
        in_specs=in_specs,
        out_specs=pl.BlockSpec((None, T, cp), lambda b: (b, 0, 0)),
        scratch_shapes=[pltpu.VMEM((T + 16, cp), jnp.float32)],
        compiler_params=pltpu.CompilerParams(dimension_semantics=("parallel",)),
    )(*args)


# ---------------------------------------------------------------------------
# BiLSTM: one scan per layer covering both directions and all batch elements.
# ---------------------------------------------------------------------------
def bilstm_forward(x_btc, lstm_layers, len_arr):
    """x: (B, T, CP), real channels [0, HIDDEN) -> (B, T, 2H).  pack_padded semantics via masks."""
    B, T, _ = x_btc.shape
    t_idx = jnp.arange(T)
    mask_f = (t_idx[:, None] < len_arr[None, :]).astype(jnp.float32)            # (T, B)
    mask_b = ((T - 1 - t_idx)[:, None] < len_arr[None, :]).astype(jnp.float32)  # (T, B)
    mask_scan = jnp.stack([mask_f, mask_b], axis=1)[..., None]                  # (T, 2, B, 1)

    inp = x_btc
    for layer in lstm_layers:
        rows = inp.reshape(B * T, inp.shape[-1])
        # both directions' input projections fused into one Pallas matmul (B*T, Din) @ (Din, 8H)
        xg = pallas_mlp(rows, [(layer['w_in'], layer['b_in'], False)]).reshape(B, T, 8 * H)
        xg_f = jnp.transpose(xg[..., :4 * H], (1, 0, 2))        # (T, B, 4H) forward in time
        xg_b = jnp.transpose(xg[..., 4 * H:], (1, 0, 2))[::-1]  # backward: time reversed
        xg_scan = jnp.stack([xg_f, xg_b], axis=1)               # (T, 2, B, 4H)
        w_hh = layer['w_hh']                                    # (2, H, 4H)

        def step(carry, inputs, w_hh=w_hh):
            h, c = carry                                        # (2, B, H) each
            gx, m = inputs                                      # (2, B, 4H), (2, B, 1)
            g = gx + jnp.einsum('dbh,dhk->dbk', h, w_hh)
            i = jax.nn.sigmoid(g[..., 0 * H:1 * H])
            f = jax.nn.sigmoid(g[..., 1 * H:2 * H])
            cc = jnp.tanh(g[..., 2 * H:3 * H])
            o = jax.nn.sigmoid(g[..., 3 * H:4 * H])
            c_new = f * c + i * cc
            h_new = o * jnp.tanh(c_new)
            c = jnp.where(m > 0, c_new, c)                      # freeze state past valid length
            h = jnp.where(m > 0, h_new, h)
            return (h, c), h_new * m

        init = (jnp.zeros((2, B, H), jnp.float32), jnp.zeros((2, B, H), jnp.float32))
        _, hs = jax.lax.scan(step, init, (xg_scan, mask_scan))  # (T, 2, B, H)
        fw = jnp.transpose(hs[:, 0], (1, 0, 2))                 # (B, T, H)
        bw = jnp.transpose(hs[::-1, 1], (1, 0, 2))              # (B, T, H), back to time order
        inp = jnp.concatenate([fw, bw], axis=-1)                # (B, T, 2H)
        # TODO(synk): inter-layer RNN dropout is eval-mode identity.
    return inp


# ---------------------------------------------------------------------------
# Parameter construction + prepacking (deterministic, synthetic weights)
# ---------------------------------------------------------------------------
def init_params(key):
    keys = iter(jax.random.split(key, 64))

    def nrm(shape, scale=0.05):
        return scale * jax.random.normal(next(keys), shape, jnp.float32)

    modality_index = []
    for mod in MODALITY:
        modality_index += [i + sum(FEAT_DIMS[:mod]) for i in range(FEAT_DIMS[mod])]

    # ---- Linear + BatchNorm1d folded into (W', b'), output lane-padded -----------------------
    def linear_bn(din, dout, out_pad):
        w, b = nrm((dout, din)), nrm((dout,))
        gamma, beta = jnp.ones((dout,), jnp.float32), jnp.zeros((dout,), jnp.float32)
        rmean, rvar = jnp.zeros((dout,), jnp.float32), jnp.ones((dout,), jnp.float32)
        s = gamma / jnp.sqrt(rvar + EPS_BN)
        wp = jnp.transpose(w) * s[None, :]
        bp = (b - rmean) * s + beta
        wp = jnp.pad(wp, ((0, 0), (0, out_pad - dout)))
        bp = jnp.pad(bp, (0, out_pad - dout)).reshape(1, out_pad)
        return wp, bp

    dd_w1, dd_b1 = linear_bn(len(modality_index), DD_MID, DD_MID)
    dd_w2, dd_b2 = linear_bn(DD_MID, HIDDEN, CP)

    # fusion consumes [backbone1 (HIDDEN real) | backbone2 (CP padded, real in [0, HIDDEN))]
    fu_wp, fu_bp = linear_bn(2 * HIDDEN, HIDDEN, CP)               # (2*HIDDEN, CP)
    fu_w = jnp.zeros((HIDDEN + CP, CP), jnp.float32)
    fu_w = fu_w.at[:HIDDEN, :].set(fu_wp[:HIDDEN])
    fu_w = fu_w.at[HIDDEN:2 * HIDDEN, :].set(fu_wp[HIDDEN:])
    fu_b = fu_bp

    # ---- BiLSTM: both directions' input projections packed into one (Din_pad, 8H) matrix -----
    def lstm_pack(din_real, din_pad):
        w_ih_f, w_hh_f = nrm((4 * H, din_real)), nrm((4 * H, H))
        b_ih_f, b_hh_f = nrm((4 * H,)), nrm((4 * H,))
        w_ih_b, w_hh_b = nrm((4 * H, din_real)), nrm((4 * H, H))
        b_ih_b, b_hh_b = nrm((4 * H,)), nrm((4 * H,))
        w_in = jnp.zeros((din_pad, 8 * H), jnp.float32)
        w_in = w_in.at[:din_real, :4 * H].set(jnp.transpose(w_ih_f))
        w_in = w_in.at[:din_real, 4 * H:].set(jnp.transpose(w_ih_b))
        b_in = jnp.concatenate([b_ih_f + b_hh_f, b_ih_b + b_hh_b]).reshape(1, 8 * H)
        w_hh = jnp.stack([jnp.transpose(w_hh_f), jnp.transpose(w_hh_b)], axis=0)
        return dict(w_in=w_in, b_in=b_in, w_hh=w_hh)

    lstm = [lstm_pack(HIDDEN, CP), lstm_pack(2 * H, 2 * H)]

    # ---- conv layers: fused 3-tap weights, segmented-LN matrices, per-lane ReLU selectors ----
    def conv_raw(cin, cout):
        return dict(w=nrm((cout, cin, 3)), b=nrm((cout,)),
                    ln_g=jnp.ones((cout,), jnp.float32), ln_b=jnp.zeros((cout,), jnp.float32))

    def pack_conv_layer(entries, use_ln):
        wf = jnp.zeros((3 * CP, CP), jnp.float32)
        bf = jnp.zeros((1, CP), jnp.float32)
        rsel = jnp.zeros((1, CP), jnp.float32)
        m = jnp.zeros((CP, CP), jnp.float32)
        g = jnp.zeros((1, CP), jnp.float32)
        bt = jnp.zeros((1, CP), jnp.float32)
        for e in entries:
            w, b = e['w'], e['b']
            cout, cin, _ = w.shape
            io, oo = e['in_off'], e['out_off']
            for k in range(3):   # taps: x[t-1], x[t], x[t+1] (PyTorch cross-correlation order)
                wf = wf.at[k * CP + io:k * CP + io + cin, oo:oo + cout].set(
                    jnp.transpose(w[:, :, k]))
            bf = bf.at[0, oo:oo + cout].set(b)
            if e.get('relu', True):
                rsel = rsel.at[0, oo:oo + cout].set(1.0)
            if use_ln:
                m = m.at[oo:oo + cout, oo:oo + cout].set(jnp.full((cout, cout), 1.0 / cout))
                g = g.at[0, oo:oo + cout].set(e['ln_g'])
                bt = bt.at[0, oo:oo + cout].set(e['ln_b'])
        layer = dict(wf=wf, bf=bf, rsel=rsel)
        if use_ln:
            layer.update(m=m, g=g, beta=bt)
        return layer

    cnn = [pack_conv_layer([dict(conv_raw(HIDDEN, HIDDEN), in_off=0, out_off=0)], True)
           for _ in range(2)]

    head = [
        # L1: cls Conv(32->16) -> lanes [0,16);   reg Conv(32->16) -> lanes [16,32)
        pack_conv_layer([dict(conv_raw(HIDDEN, HEAD), in_off=0, out_off=0),
                         dict(conv_raw(HIDDEN, HEAD), in_off=0, out_off=HEAD)], True),
        # L2 / L3: block-diagonal Conv(16->16) per branch
        pack_conv_layer([dict(conv_raw(HEAD, HEAD), in_off=0, out_off=0),
                         dict(conv_raw(HEAD, HEAD), in_off=HEAD, out_off=HEAD)], True),
        pack_conv_layer([dict(conv_raw(HEAD, HEAD), in_off=0, out_off=0),
                         dict(conv_raw(HEAD, HEAD), in_off=HEAD, out_off=HEAD)], True),
        # L4: classifier Conv(16->NCLS) no ReLU; reg_predictor Conv(16->2)+ReLU; no LN.
        pack_conv_layer([dict(conv_raw(HEAD, NCLS), in_off=0, out_off=0, relu=False),
                         dict(conv_raw(HEAD, 2), in_off=HEAD, out_off=REG_OFF, relu=True)],
                        False),
    ]

    return dict(modality_index=jnp.array(modality_index, jnp.int32),
                dd_w1=dd_w1, dd_b1=dd_b1, dd_w2=dd_w2, dd_b2=dd_b2,
                fu_w=fu_w, fu_b=fu_b, lstm=lstm, cnn=cnn, head=head)


# ---------------------------------------------------------------------------
# Detector forward
# ---------------------------------------------------------------------------
def detector_forward(params, vid, len_x):
    """vid: (B, T, D_RAW) float32; len_x: static tuple of python ints (valid lengths)."""
    B, T, D = vid.shape

    # modality gather + dim_decrease: two Linear+BN+ReLU fused in one row-gridded kernel,
    # output lane-padded to CP so every downstream kernel sees a lane-dense (rows, 128) slab.
    x = vid.reshape(B * T, D)[:, params['modality_index']]
    feat = pallas_mlp(x, [(params['dd_w1'], params['dd_b1'], True),
                          (params['dd_w2'], params['dd_b2'], True)])          # (B*T, CP)
    x_feat = feat.reshape(B, T, CP)

    len_arr = jnp.asarray(len_x, jnp.int32)
    valid = (jnp.arange(T)[None, :] < len_arr[:, None]).astype(jnp.float32)   # (B, T)
    mask_bt1 = valid[:, :, None]
    ones_bt1 = jnp.ones((B, T, 1), jnp.float32)

    # backbone branch 1: batched 2-layer BiLSTM (pack_padded semantics via in-scan masks)
    backbone1 = bilstm_forward(x_feat, params['lstm'], len_arr)               # (B, T, 2H)

    # backbone branch 2: Conv1d+LN+ReLU x2 over the full padded length, one kernel, grid=(B,)
    backbone2 = pallas_conv_stack(x_feat, ones_bt1, params['cnn'])            # (B, T, CP)

    # fusion Linear+BN+ReLU (BN folded);  dropout (self.dp) is eval-mode identity.
    fuse_in = jnp.concatenate([backbone1, backbone2], axis=-1).reshape(B * T, HIDDEN + CP)
    fused = pallas_mlp(fuse_in, [(params['fu_w'], params['fu_b'], True)])     # (B*T, CP)
    backbone = fused.reshape(B, T, CP)

    # cls_head+classifier and reg_head+reg_predictor fused into ONE 4-layer conv stack
    # (block-diagonal weights, segmented LN, per-lane ReLU select); the valid-length masking
    # inside the kernel reproduces the reference's per-sample slicing + zero conv padding.
    head_out = pallas_conv_stack(backbone, mask_bt1, params['head'])          # (B, T, CP)

    cls_all = head_out[..., :NCLS]
    reg_all = head_out[..., REG_OFF:REG_OFF + 2]
    cls_out = jnp.concatenate([cls_all[i, :int(len_x[i])] for i in range(B)], axis=0)
    reg_out = jnp.concatenate([reg_all[i, :int(len_x[i])] for i in range(B)], axis=0)
    return cls_out, reg_out


# ---------------------------------------------------------------------------

if __name__ == "__main__":
    key = jax.random.PRNGKey(0)
    pkey, dkey = jax.random.split(key)
    params = init_params(pkey)

    B, T = 2, 8
    vid = jax.random.normal(dkey, (B, T, D_RAW), jnp.float32)
    len_x = (8, 6)                          # valid lengths per batch element

    fwd = jax.jit(detector_forward, static_argnums=(2,))
    cls_out, reg_out = jax.block_until_ready(fwd(params, vid, len_x))

    total = sum(len_x)
    assert cls_out.shape == (total, NCLS), cls_out.shape
    assert reg_out.shape == (total, 2), reg_out.shape
    assert bool(jnp.all(jnp.isfinite(cls_out))) and bool(jnp.all(jnp.isfinite(reg_out)))
    print("KERNEL_OK")
</pallas_src>

<mosaic_0001>
module attributes {stable_mosaic.version = 11 : i64} {
  func.func @_mlp_kernel(%arg0: i32, %arg1: memref<16x56xf32, #tpu.memory_space<vmem>>, %arg2: memref<56x128xf32, #tpu.memory_space<vmem>>, %arg3: memref<1x128xf32, #tpu.memory_space<vmem>>, %arg4: memref<128x128xf32, #tpu.memory_space<vmem>>, %arg5: memref<1x128xf32, #tpu.memory_space<vmem>>, %arg6: memref<16x128xf32, #tpu.memory_space<vmem>>) attributes {dimension_semantics = [#tpu.dimension_semantics<parallel>], iteration_bounds = array<i64: 1>, scalar_prefetch = 0 : i64, scratch_operands = 0 : i64, tpu.core_type = #tpu.core_type<tc>, window_params = [{transform_indices = @transform_0, window_bounds = array<i64: 16, 56>}, {pipeline_mode = #tpu.pipeline_mode<synchronous>, transform_indices = @transform_1, window_bounds = array<i64: 56, 128>}, {pipeline_mode = #tpu.pipeline_mode<synchronous>, transform_indices = @transform_2, window_bounds = array<i64: 1, 128>}, {pipeline_mode = #tpu.pipeline_mode<synchronous>, transform_indices = @transform_3, window_bounds = array<i64: 128, 128>}, {pipeline_mode = #tpu.pipeline_mode<synchronous>, transform_indices = @transform_4, window_bounds = array<i64: 1, 128>}, {transform_indices = @transform_5, window_bounds = array<i64: 16, 128>}]} {
    %c0 = arith.constant 0 : index
    %c0_0 = arith.constant 0 : index
    %0 = vector.load %arg1[%c0, %c0_0] : memref<16x56xf32, #tpu.memory_space<vmem>>, vector<16x56xf32>
    %c0_1 = arith.constant 0 : index
    %c0_2 = arith.constant 0 : index
    %1 = vector.load %arg2[%c0_1, %c0_2] : memref<56x128xf32, #tpu.memory_space<vmem>>, vector<56x128xf32>
    %c0_3 = arith.constant 0 : index
    %c0_4 = arith.constant 0 : index
    %2 = vector.load %arg3[%c0_3, %c0_4] : memref<1x128xf32, #tpu.memory_space<vmem>>, vector<1x128xf32>
    %cst = arith.constant dense<0.000000e+00> : vector<16x128xf32>
    %3 = tpu.matmul %0, %1, %cst {dimension_numbers = #tpu.dot_dimension_numbers<[1], [0], [0], [1], [0, 0, 1, 1], [], []>} : vector<16x56xf32>, vector<56x128xf32>, vector<16x128xf32> -> vector<16x128xf32>
    %4 = vector.broadcast %2 : vector<1x128xf32> to vector<16x128xf32>
    %5 = arith.addf %3, %4 : vector<16x128xf32>
    %cst_5 = arith.constant 0.000000e+00 : f32
    %6 = vector.broadcast %cst_5 : f32 to vector<16x128xf32>
    %7 = arith.maximumf %5, %6 : vector<16x128xf32>
    %c0_6 = arith.constant 0 : index
    %c0_7 = arith.constant 0 : index
    %8 = vector.load %arg4[%c0_6, %c0_7] : memref<128x128xf32, #tpu.memory_space<vmem>>, vector<128x128xf32>
    %c0_8 = arith.constant 0 : index
    %c0_9 = arith.constant 0 : index
    %9 = vector.load %arg5[%c0_8, %c0_9] : memref<1x128xf32, #tpu.memory_space<vmem>>, vector<1x128xf32>
    %cst_10 = arith.constant dense<0.000000e+00> : vector<16x128xf32>
    %10 = tpu.matmul %7, %8, %cst_10 {dimension_numbers = #tpu.dot_dimension_numbers<[1], [0], [0], [1], [0, 0, 1, 1], [], []>} : vector<16x128xf32>, vector<128x128xf32>, vector<16x128xf32> -> vector<16x128xf32>
    %11 = vector.broadcast %9 : vector<1x128xf32> to vector<16x128xf32>
    %12 = arith.addf %10, %11 : vector<16x128xf32>
    %cst_11 = arith.constant 0.000000e+00 : f32
    %13 = vector.broadcast %cst_11 : f32 to vector<16x128xf32>
    %14 = arith.maximumf %12, %13 : vector<16x128xf32>
    %c0_12 = arith.constant 0 : index
    %c0_13 = arith.constant 0 : index
    %15 = vector.load %arg6[%c0_12, %c0_13] : memref<16x128xf32, #tpu.memory_space<vmem>>, vector<16x128xf32>
    tpu.vector_store %arg6[%c0_12, %c0_13], %14 {strides = array<i32>} : memref<16x128xf32, #tpu.memory_space<vmem>>, vector<16x128xf32>,
    return
  }
  func.func @transform_0(%arg0: i32) -> (i32, i32) {
    %c0_i32 = arith.constant 0 : i32
    %c0_i32_0 = arith.constant 0 : i32
    return %arg0, %c0_i32 : i32, i32
  }
  func.func @transform_1(%arg0: i32) -> (i32, i32) {
    %c0_i32 = arith.constant 0 : i32
    %c0_i32_0 = arith.constant 0 : i32
    %c0_i32_1 = arith.constant 0 : i32
    return %c0_i32, %c0_i32_0 : i32, i32
  }
  func.func @transform_2(%arg0: i32) -> (i32, i32) {
    %c0_i32 = arith.constant 0 : i32
    %c0_i32_0 = arith.constant 0 : i32
    %c0_i32_1 = arith.constant 0 : i32
    return %c0_i32, %c0_i32_0 : i32, i32
  }
  func.func @transform_3(%arg0: i32) -> (i32, i32) {
    %c0_i32 = arith.constant 0 : i32
    %c0_i32_0 = arith.constant 0 : i32
    %c0_i32_1 = arith.constant 0 : i32
    return %c0_i32, %c0_i32_0 : i32, i32
  }
  func.func @transform_4(%arg0: i32) -> (i32, i32) {
    %c0_i32 = arith.constant 0 : i32
    %c0_i32_0 = arith.constant 0 : i32
    %c0_i32_1 = arith.constant 0 : i32
    return %c0_i32, %c0_i32_0 : i32, i32
  }
  func.func @transform_5(%arg0: i32) -> (i32, i32) {
    %c0_i32 = arith.constant 0 : i32
    %c0_i32_0 = arith.constant 0 : i32
    return %arg0, %c0_i32 : i32, i32
  }
}

module attributes {stable_mosaic.version = 11 : i64} {
  func.func @_mlp_kernel(%arg0: i32, %arg1: memref<16x128xf32, #tpu.memory_space<vmem>>, %arg2: memref<128x128xf32, #tpu.memory_space<vmem>>, %arg3: memref<1x128xf32, #tpu.memory_space<vmem>>, %arg4: memref<16x128xf32, #tpu.memory_space<vmem>>) attributes {dimension_semantics = [#tpu.dimension_semantics<parallel>], iteration_bounds = array<i64: 1>, scalar_prefetch = 0 : i64, scratch_operands = 0 : i64, tpu.core_type = #tpu.core_type<tc>, window_params = [{transform_indices = @transform_0, window_bounds = array<i64: 16, 128>}, {pipeline_mode = #tpu.pipeline_mode<synchronous>, transform_indices = @transform_1, window_bounds = array<i64: 128, 128>}, {pipeline_mode = #tpu.pipeline_mode<synchronous>, transform_indices = @transform_2, window_bounds = array<i64: 1, 128>}, {transform_indices = @transform_3, window_bounds = array<i64: 16, 128>}]} {
    %c0 = arith.constant 0 : index
    %c0_0 = arith.constant 0 : index
    %0 = vector.load %arg1[%c0, %c0_0] : memref<16x128xf32, #tpu.memory_space<vmem>>, vector<16x128xf32>
    %c0_1 = arith.constant 0 : index
    %c0_2 = arith.constant 0 : index
    %1 = vector.load %arg2[%c0_1, %c0_2] : memref<128x128xf32, #tpu.memory_space<vmem>>, vector<128x128xf32>
    %c0_3 = arith.constant 0 : index
    %c0_4 = arith.constant 0 : index
    %2 = vector.load %arg3[%c0_3, %c0_4] : memref<1x128xf32, #tpu.memory_space<vmem>>, vector<1x128xf32>
    %cst = arith.constant dense<0.000000e+00> : vector<16x128xf32>
    %3 = tpu.matmul %0, %1, %cst {dimension_numbers = #tpu.dot_dimension_numbers<[1], [0], [0], [1], [0, 0, 1, 1], [], []>} : vector<16x128xf32>, vector<128x128xf32>, vector<16x128xf32> -> vector<16x128xf32>
    %4 = vector.broadcast %2 : vector<1x128xf32> to vector<16x128xf32>
    %5 = arith.addf %3, %4 : vector<16x128xf32>
    %c0_5 = arith.constant 0 : index
    %c0_6 = arith.constant 0 : index
    %6 = vector.load %arg4[%c0_5, %c0_6] : memref<16x128xf32, #tpu.memory_space<vmem>>, vector<16x128xf32>
    tpu.vector_store %arg4[%c0_5, %c0_6], %5 {strides = array<i32>} : memref<16x128xf32, #tpu.memory_space<vmem>>, vector<16x128xf32>,
    return
  }
  func.func @transform_0(%arg0: i32) -> (i32, i32) {
    %c0_i32 = arith.constant 0 : i32
    %c0_i32_0 = arith.constant 0 : i32
    return %arg0, %c0_i32 : i32, i32
  }
  func.func @transform_1(%arg0: i32) -> (i32, i32) {
    %c0_i32 = arith.constant 0 : i32
    %c0_i32_0 = arith.constant 0 : i32
    %c0_i32_1 = arith.constant 0 : i32
    return %c0_i32, %c0_i32_0 : i32, i32
  }
  func.func @transform_2(%arg0: i32) -> (i32, i32) {
    %c0_i32 = arith.constant 0 : i32
    %c0_i32_0 = arith.constant 0 : i32
    %c0_i32_1 = arith.constant 0 : i32
    return %c0_i32, %c0_i32_0 : i32, i32
  }
  func.func @transform_3(%arg0: i32) -> (i32, i32) {
    %c0_i32 = arith.constant 0 : i32
    %c0_i32_0 = arith.constant 0 : i32
    return %arg0, %c0_i32 : i32, i32
  }
}

module attributes {stable_mosaic.version = 11 : i64} {
  func.func @_mlp_kernel(%arg0: i32, %arg1: memref<16x32xf32, #tpu.memory_space<vmem>>, %arg2: memref<32x128xf32, #tpu.memory_space<vmem>>, %arg3: memref<1x128xf32, #tpu.memory_space<vmem>>, %arg4: memref<16x128xf32, #tpu.memory_space<vmem>>) attributes {dimension_semantics = [#tpu.dimension_semantics<parallel>], iteration_bounds = array<i64: 1>, scalar_prefetch = 0 : i64, scratch_operands = 0 : i64, tpu.core_type = #tpu.core_type<tc>, window_params = [{transform_indices = @transform_0, window_bounds = array<i64: 16, 32>}, {pipeline_mode = #tpu.pipeline_mode<synchronous>, transform_indices = @transform_1, window_bounds = array<i64: 32, 128>}, {pipeline_mode = #tpu.pipeline_mode<synchronous>, transform_indices = @transform_2, window_bounds = array<i64: 1, 128>}, {transform_indices = @transform_3, window_bounds = array<i64: 16, 128>}]} {
    %c0 = arith.constant 0 : index
    %c0_0 = arith.constant 0 : index
    %0 = vector.load %arg1[%c0, %c0_0] : memref<16x32xf32, #tpu.memory_space<vmem>>, vector<16x32xf32>
    %c0_1 = arith.constant 0 : index
    %c0_2 = arith.constant 0 : index
    %1 = vector.load %arg2[%c0_1, %c0_2] : memref<32x128xf32, #tpu.memory_space<vmem>>, vector<32x128xf32>
    %c0_3 = arith.constant 0 : index
    %c0_4 = arith.constant 0 : index
    %2 = vector.load %arg3[%c0_3, %c0_4] : memref<1x128xf32, #tpu.memory_space<vmem>>, vector<1x128xf32>
    %cst = arith.constant dense<0.000000e+00> : vector<16x128xf32>
    %3 = tpu.matmul %0, %1, %cst {dimension_numbers = #tpu.dot_dimension_numbers<[1], [0], [0], [1], [0, 0, 1, 1], [], []>} : vector<16x32xf32>, vector<32x128xf32>, vector<16x128xf32> -> vector<16x128xf32>
    %4 = vector.broadcast %2 : vector<1x128xf32> to vector<16x128xf32>
    %5 = arith.addf %3, %4 : vector<16x128xf32>
    %c0_5 = arith.constant 0 : index
    %c0_6 = arith.constant 0 : index
    %6 = vector.load %arg4[%c0_5, %c0_6] : memref<16x128xf32, #tpu.memory_space<vmem>>, vector<16x128xf32>
    tpu.vector_store %arg4[%c0_5, %c0_6], %5 {strides = array<i32>} : memref<16x128xf32, #tpu.memory_space<vmem>>, vector<16x128xf32>,
    return
  }
  func.func @transform_0(%arg0: i32) -> (i32, i32) {
    %c0_i32 = arith.constant 0 : i32
    %c0_i32_0 = arith.constant 0 : i32
    return %arg0, %c0_i32 : i32, i32
  }
  func.func @transform_1(%arg0: i32) -> (i32, i32) {
    %c0_i32 = arith.constant 0 : i32
    %c0_i32_0 = arith.constant 0 : i32
    %c0_i32_1 = arith.constant 0 : i32
    return %c0_i32, %c0_i32_0 : i32, i32
  }
  func.func @transform_2(%arg0: i32) -> (i32, i32) {
    %c0_i32 = arith.constant 0 : i32
    %c0_i32_0 = arith.constant 0 : i32
    %c0_i32_1 = arith.constant 0 : i32
    return %c0_i32, %c0_i32_0 : i32, i32
  }
  func.func @transform_3(%arg0: i32) -> (i32, i32) {
    %c0_i32 = arith.constant 0 : i32
    %c0_i32_0 = arith.constant 0 : i32
    return %arg0, %c0_i32 : i32, i32
  }
}

module attributes {stable_mosaic.version = 11 : i64} {
  func.func @_conv_stack_kernel(%arg0: i32, %arg1: memref<1x8x128xf32, #tpu.memory_space<vmem>>, %arg2: memref<1x8x1xf32, #tpu.memory_space<vmem>>, %arg3: memref<384x128xf32, #tpu.memory_space<vmem>>, %arg4: memref<1x128xf32, #tpu.memory_space<vmem>>, %arg5: memref<1x128xf32, #tpu.memory_space<vmem>>, %arg6: memref<128x128xf32, #tpu.memory_space<vmem>>, %arg7: memref<1x128xf32, #tpu.memory_space<vmem>>, %arg8: memref<1x128xf32, #tpu.memory_space<vmem>>, %arg9: memref<384x128xf32, #tpu.memory_space<vmem>>, %arg10: memref<1x128xf32, #tpu.memory_space<vmem>>, %arg11: memref<1x128xf32, #tpu.memory_space<vmem>>, %arg12: memref<128x128xf32, #tpu.memory_space<vmem>>, %arg13: memref<1x128xf32, #tpu.memory_space<vmem>>, %arg14: memref<1x128xf32, #tpu.memory_space<vmem>>, %arg15: memref<1x8x128xf32, #tpu.memory_space<vmem>>, %arg16: memref<24x128xf32, #tpu.memory_space<vmem>>) attributes {dimension_semantics = [#tpu.dimension_semantics<parallel>], iteration_bounds = array<i64: 2>, scalar_prefetch = 0 : i64, scratch_operands = 1 : i64, tpu.core_type = #tpu.core_type<tc>, window_params = [{transform_indices = @transform_0, window_bounds = array<i64: 1, 8, 128>}, {transform_indices = @transform_1, window_bounds = array<i64: 1, 8, 1>}, {pipeline_mode = #tpu.pipeline_mode<synchronous>, transform_indices = @transform_2, window_bounds = array<i64: 384, 128>}, {pipeline_mode = #tpu.pipeline_mode<synchronous>, transform_indices = @transform_3, window_bounds = array<i64: 1, 128>}, {pipeline_mode = #tpu.pipeline_mode<synchronous>, transform_indices = @transform_4, window_bounds = array<i64: 1, 128>}, {pipeline_mode = #tpu.pipeline_mode<synchronous>, transform_indices = @transform_5, window_bounds = array<i64: 128, 128>}, {pipeline_mode = #tpu.pipeline_mode<synchronous>, transform_indices = @transform_6, window_bounds = array<i64: 1, 128>}, {pipeline_mode = #tpu.pipeline_mode<synchronous>, transform_indices = @transform_7, window_bounds = array<i64: 1, 128>}, {pipeline_mode = #tpu.pipeline_mode<synchronous>, transform_indices = @transform_8, window_bounds = array<i64: 384, 128>}, {pipeline_mode = #tpu.pipeline_mode<synchronous>, transform_indices = @transform_9, window_bounds = array<i64: 1, 128>}, {pipeline_mode = #tpu.pipeline_mode<synchronous>, transform_indices = @transform_10, window_bounds = array<i64: 1, 128>}, {pipeline_mode = #tpu.pipeline_mode<synchronous>, transform_indices = @transform_11, window_bounds = array<i64: 128, 128>}, {pipeline_mode = #tpu.pipeline_mode<synchronous>, transform_indices = @transform_12, window_bounds = array<i64: 1, 128>}, {pipeline_mode = #tpu.pipeline_mode<synchronous>, transform_indices = @transform_13, window_bounds = array<i64: 1, 128>}, {transform_indices = @transform_14, window_bounds = array<i64: 1, 8, 128>}]} {
    %c0 = arith.constant 0 : index
    %c0_0 = arith.constant 0 : index
    %c0_1 = arith.constant 0 : index
    %0 = vector.load %arg2[%c0, %c0_0, %c0_1] : memref<1x8x1xf32, #tpu.memory_space<vmem>>, vector<1x8x1xf32>
    %1 = vector.shape_cast %0 : vector<1x8x1xf32> to vector<8x1xf32>
    %c0_2 = arith.constant 0 : index
    %c0_3 = arith.constant 0 : index
    %c0_4 = arith.constant 0 : index
    %2 = vector.load %arg1[%c0_2, %c0_3, %c0_4] : memref<1x8x128xf32, #tpu.memory_space<vmem>>, vector<1x8x128xf32>
    %3 = vector.shape_cast %2 : vector<1x8x128xf32> to vector<8x128xf32>
    %4 = vector.broadcast %1 : vector<8x1xf32> to vector<8x128xf32>
    %5 = arith.mulf %3, %4 : vector<8x128xf32>
    %cst = arith.constant 0.000000e+00 : f32
    %6 = vector.broadcast %cst : f32 to vector<24x128xf32>
    %c0_5 = arith.constant 0 : index
    %c0_6 = arith.constant 0 : index
    %7 = vector.load %arg16[%c0_5, %c0_6] : memref<24x128xf32, #tpu.memory_space<vmem>>, vector<24x128xf32>
    tpu.vector_store %arg16[%c0_5, %c0_6], %6 {strides = array<i32>} : memref<24x128xf32, #tpu.memory_space<vmem>>, vector<24x128xf32>,
    %c0_7 = arith.constant 0 : index
    %c0_8 = arith.constant 0 : index
    %8 = vector.load %arg3[%c0_7, %c0_8] : memref<384x128xf32, #tpu.memory_space<vmem>>, vector<384x128xf32>
    %c0_9 = arith.constant 0 : index
    %c0_10 = arith.constant 0 : index
    %9 = vector.load %arg4[%c0_9, %c0_10] : memref<1x128xf32, #tpu.memory_space<vmem>>, vector<1x128xf32>
    %c0_11 = arith.constant 0 : index
    %c0_12 = arith.constant 0 : index
    %10 = vector.load %arg5[%c0_11, %c0_12] : memref<1x128xf32, #tpu.memory_space<vmem>>, vector<1x128xf32>
    %c0_13 = arith.constant 0 : index
    %c0_14 = arith.constant 0 : index
    %11 = vector.load %arg6[%c0_13, %c0_14] : memref<128x128xf32, #tpu.memory_space<vmem>>, vector<128x128xf32>
    %c0_15 = arith.constant 0 : index
    %c0_16 = arith.constant 0 : index
    %12 = vector.load %arg7[%c0_15, %c0_16] : memref<1x128xf32, #tpu.memory_space<vmem>>, vector<1x128xf32>
    %c0_17 = arith.constant 0 : index
    %c0_18 = arith.constant 0 : index
    %13 = vector.load %arg8[%c0_17, %c0_18] : memref<1x128xf32, #tpu.memory_space<vmem>>, vector<1x128xf32>
    %c8 = arith.constant 8 : index
    %c0_19 = arith.constant 0 : index
    %14 = vector.load %arg16[%c8, %c0_19] : memref<24x128xf32, #tpu.memory_space<vmem>>, vector<8x128xf32>
    tpu.vector_store %arg16[%c8, %c0_19], %5 {strides = array<i32>} : memref<24x128xf32, #tpu.memory_space<vmem>>, vector<8x128xf32>,
    %c7 = arith.constant 7 : index
    %c0_20 = arith.constant 0 : index
    %15 = vector.load %arg16[%c7, %c0_20] : memref<24x128xf32, #tpu.memory_space<vmem>>, vector<8x128xf32>
    %c9 = arith.constant 9 : index
    %c0_21 = arith.constant 0 : index
    %16 = vector.load %arg16[%c9, %c0_21] : memref<24x128xf32, #tpu.memory_space<vmem>>, vector<8x128xf32>
    %17 = tpu.concatenate %15, %5, %16 in 1 : vector<8x128xf32>, vector<8x128xf32>, vector<8x128xf32> -> vector<8x384xf32>
    %cst_22 = arith.constant dense<0.000000e+00> : vector<8x128xf32>
    %18 = tpu.matmul %17, %8, %cst_22 {dimension_numbers = #tpu.dot_dimension_numbers<[1], [0], [0], [1], [0, 0, 1, 1], [], []>} : vector<8x384xf32>, vector<384x128xf32>, vector<8x128xf32> -> vector<8x128xf32>
    %19 = vector.broadcast %9 : vector<1x128xf32> to vector<8x128xf32>
    %20 = arith.addf %18, %19 : vector<8x128xf32>
    %cst_23 = arith.constant dense<0.000000e+00> : vector<8x128xf32>
    %21 = tpu.matmul %20, %11, %cst_23 {dimension_numbers = #tpu.dot_dimension_numbers<[1], [0], [0], [1], [0, 0, 1, 1], [], []>} : vector<8x128xf32>, vector<128x128xf32>, vector<8x128xf32> -> vector<8x128xf32>
    %22 = arith.subf %20, %21 : vector<8x128xf32>
    %23 = arith.mulf %22, %22 : vector<8x128xf32>
    %cst_24 = arith.constant dense<0.000000e+00> : vector<8x128xf32>
    %24 = tpu.matmul %23, %11, %cst_24 {dimension_numbers = #tpu.dot_dimension_numbers<[1], [0], [0], [1], [0, 0, 1, 1], [], []>} : vector<8x128xf32>, vector<128x128xf32>, vector<8x128xf32> -> vector<8x128xf32>
    %cst_25 = arith.constant 9.99999974E-6 : f32
    %25 = vector.broadcast %cst_25 : f32 to vector<8x128xf32>
    %26 = arith.addf %24, %25 : vector<8x128xf32>
    %27 = math.rsqrt %26 : vector<8x128xf32>
    %28 = arith.mulf %22, %27 : vector<8x128xf32>
    %29 = vector.broadcast %12 : vector<1x128xf32> to vector<8x128xf32>
    %30 = arith.mulf %28, %29 : vector<8x128xf32>
    %31 = vector.broadcast %13 : vector<1x128xf32> to vector<8x128xf32>
    %32 = arith.addf %30, %31 : vector<8x128xf32>
    %cst_26 = arith.constant 0.000000e+00 : f32
    %33 = vector.broadcast %cst_26 : f32 to vector<1x128xf32>
    %34 = arith.cmpf ogt, %10, %33 : vector<1x128xf32>
    %cst_27 = arith.constant 0.000000e+00 : f32
    %35 = vector.broadcast %cst_27 : f32 to vector<8x128xf32>
    %36 = arith.maximumf %32, %35 : vector<8x128xf32>
    %37 = vector.shape_cast %34 : vector<1x128xi1> to vector<1x128xi1>
    %38 = vector.broadcast %37 : vector<1x128xi1> to vector<8x128xi1>
    %39 = arith.select %38, %36, %32 : vector<8x128xi1>, vector<8x128xf32>
    %40 = vector.broadcast %1 : vector<8x1xf32> to vector<8x128xf32>
    %41 = arith.mulf %39, %40 : vector<8x128xf32>
    %c0_28 = arith.constant 0 : index
    %c0_29 = arith.constant 0 : index
    %42 = vector.load %arg9[%c0_28, %c0_29] : memref<384x128xf32, #tpu.memory_space<vmem>>, vector<384x128xf32>
    %c0_30 = arith.constant 0 : index
    %c0_31 = arith.constant 0 : index
    %43 = vector.load %arg10[%c0_30, %c0_31] : memref<1x128xf32, #tpu.memory_space<vmem>>, vector<1x128xf32>
    %c0_32 = arith.constant 0 : index
    %c0_33 = arith.constant 0 : index
    %44 = vector.load %arg11[%c0_32, %c0_33] : memref<1x128xf32, #tpu.memory_space<vmem>>, vector<1x128xf32>
    %c0_34 = arith.constant 0 : index
    %c0_35 = arith.constant 0 : index
    %45 = vector.load %arg12[%c0_34, %c0_35] : memref<128x128xf32, #tpu.memory_space<vmem>>, vector<128x128xf32>
    %c0_36 = arith.constant 0 : index
    %c0_37 = arith.constant 0 : index
    %46 = vector.load %arg13[%c0_36, %c0_37] : memref<1x128xf32, #tpu.memory_space<vmem>>, vector<1x128xf32>
    %c0_38 = arith.constant 0 : index
    %c0_39 = arith.constant 0 : index
    %47 = vector.load %arg14[%c0_38, %c0_39] : memref<1x128xf32, #tpu.memory_space<vmem>>, vector<1x128xf32>
    %c8_40 = arith.constant 8 : index
    %c0_41 = arith.constant 0 : index
    %48 = vector.load %arg16[%c8_40, %c0_41] : memref<24x128xf32, #tpu.memory_space<vmem>>, vector<8x128xf32>
    tpu.vector_store %arg16[%c8_40, %c0_41], %41 {strides = array<i32>} : memref<24x128xf32, #tpu.memory_space<vmem>>, vector<8x128xf32>,
    %c7_42 = arith.constant 7 : index
    %c0_43 = arith.constant 0 : index
    %49 = vector.load %arg16[%c7_42, %c0_43] : memref<24x128xf32, #tpu.memory_space<vmem>>, vector<8x128xf32>
    %c9_44 = arith.constant 9 : index
    %c0_45 = arith.constant 0 : index
    %50 = vector.load %arg16[%c9_44, %c0_45] : memref<24x128xf32, #tpu.memory_space<vmem>>, vector<8x128xf32>
    %51 = tpu.concatenate %49, %41, %50 in 1 : vector<8x128xf32>, vector<8x128xf32>, vector<8x128xf32> -> vector<8x384xf32>
    %cst_46 = arith.constant dense<0.000000e+00> : vector<8x128xf32>
    %52 = tpu.matmul %51, %42, %cst_46 {dimension_numbers = #tpu.dot_dimension_numbers<[1], [0], [0], [1], [0, 0, 1, 1], [], []>} : vector<8x384xf32>, vector<384x128xf32>, vector<8x128xf32> -> vector<8x128xf32>
    %53 = vector.broadcast %43 : vector<1x128xf32> to vector<8x128xf32>
    %54 = arith.addf %52, %53 : vector<8x128xf32>
    %cst_47 = arith.constant dense<0.000000e+00> : vector<8x128xf32>
    %55 = tpu.matmul %54, %45, %cst_47 {dimension_numbers = #tpu.dot_dimension_numbers<[1], [0], [0], [1], [0, 0, 1, 1], [], []>} : vector<8x128xf32>, vector<128x128xf32>, vector<8x128xf32> -> vector<8x128xf32>
    %56 = arith.subf %54, %55 : vector<8x128xf32>
    %57 = arith.mulf %56, %56 : vector<8x128xf32>
    %cst_48 = arith.constant dense<0.000000e+00> : vector<8x128xf32>
    %58 = tpu.matmul %57, %45, %cst_48 {dimension_numbers = #tpu.dot_dimension_numbers<[1], [0], [0], [1], [0, 0, 1, 1], [], []>} : vector<8x128xf32>, vector<128x128xf32>, vector<8x128xf32> -> vector<8x128xf32>
    %cst_49 = arith.constant 9.99999974E-6 : f32
    %59 = vector.broadcast %cst_49 : f32 to vector<8x128xf32>
    %60 = arith.addf %58, %59 : vector<8x128xf32>
    %61 = math.rsqrt %60 : vector<8x128xf32>
    %62 = arith.mulf %56, %61 : vector<8x128xf32>
    %63 = vector.broadcast %46 : vector<1x128xf32> to vector<8x128xf32>
    %64 = arith.mulf %62, %63 : vector<8x128xf32>
    %65 = vector.broadcast %47 : vector<1x128xf32> to vector<8x128xf32>
    %66 = arith.addf %64, %65 : vector<8x128xf32>
    %cst_50 = arith.constant 0.000000e+00 : f32
    %67 = vector.broadcast %cst_50 : f32 to vector<1x128xf32>
    %68 = arith.cmpf ogt, %44, %67 : vector<1x128xf32>
    %cst_51 = arith.constant 0.000000e+00 : f32
    %69 = vector.broadcast %cst_51 : f32 to vector<8x128xf32>
    %70 = arith.maximumf %66, %69 : vector<8x128xf32>
    %71 = vector.shape_cast %68 : vector<1x128xi1> to vector<1x128xi1>
    %72 = vector.broadcast %71 : vector<1x128xi1> to vector<8x128xi1>
    %73 = arith.select %72, %70, %66 : vector<8x128xi1>, vector<8x128xf32>
    %74 = vector.broadcast %1 : vector<8x1xf32> to vector<8x128xf32>
    %75 = arith.mulf %73, %74 : vector<8x128xf32>
    %c0_52 = arith.constant 0 : index
    %c0_53 = arith.constant 0 : index
    %c0_54 = arith.constant 0 : index
    %76 = vector.load %arg15[%c0_52, %c0_53, %c0_54] : memref<1x8x128xf32, #tpu.memory_space<vmem>>, vector<1x8x128xf32>
    %77 = vector.shape_cast %76 : vector<1x8x128xf32> to vector<8x128xf32>
    %78 = vector.shape_cast %75 : vector<8x128xf32> to vector<1x8x128xf32>
    tpu.vector_store %arg15[%c0_52, %c0_53, %c0_54], %78 {strides = array<i32>} : memref<1x8x128xf32, #tpu.memory_space<vmem>>, vector<1x8x128xf32>,
    return
  }
  func.func @transform_0(%arg0: i32) -> (i32, i32, i32) {
    %c0_i32 = arith.constant 0 : i32
    %c0_i32_0 = arith.constant 0 : i32
    %c0_i32_1 = arith.constant 0 : i32
    return %arg0, %c0_i32, %c0_i32_0 : i32, i32, i32
  }
  func.func @transform_1(%arg0: i32) -> (i32, i32, i32) {
    %c0_i32 = arith.constant 0 : i32
    %c0_i32_0 = arith.constant 0 : i32
    %c0_i32_1 = arith.constant 0 : i32
    return %arg0, %c0_i32, %c0_i32_0 : i32, i32, i32
  }
  func.func @transform_2(%arg0: i32) -> (i32, i32) {
    %c0_i32 = arith.constant 0 : i32
    %c0_i32_0 = arith.constant 0 : i32
    %c0_i32_1 = arith.constant 0 : i32
    return %c0_i32, %c0_i32_0 : i32, i32
  }
  func.func @transform_3(%arg0: i32) -> (i32, i32) {
    %c0_i32 = arith.constant 0 : i32
    %c0_i32_0 = arith.constant 0 : i32
    %c0_i32_1 = arith.constant 0 : i32
    return %c0_i32, %c0_i32_0 : i32, i32
  }
  func.func @transform_4(%arg0: i32) -> (i32, i32) {
    %c0_i32 = arith.constant 0 : i32
    %c0_i32_0 = arith.constant 0 : i32
    %c0_i32_1 = arith.constant 0 : i32
    return %c0_i32, %c0_i32_0 : i32, i32
  }
  func.func @transform_5(%arg0: i32) -> (i32, i32) {
    %c0_i32 = arith.constant 0 : i32
    %c0_i32_0 = arith.constant 0 : i32
    %c0_i32_1 = arith.constant 0 : i32
    return %c0_i32, %c0_i32_0 : i32, i32
  }
  func.func @transform_6(%arg0: i32) -> (i32, i32) {
    %c0_i32 = arith.constant 0 : i32
    %c0_i32_0 = arith.constant 0 : i32
    %c0_i32_1 = arith.constant 0 : i32
    return %c0_i32, %c0_i32_0 : i32, i32
  }
  func.func @transform_7(%arg0: i32) -> (i32, i32) {
    %c0_i32 = arith.constant 0 : i32
    %c0_i32_0 = arith.constant 0 : i32
    %c0_i32_1 = arith.constant 0 : i32
    return %c0_i32, %c0_i32_0 : i32, i32
  }
  func.func @transform_8(%arg0: i32) -> (i32, i32) {
    %c0_i32 = arith.constant 0 : i32
    %c0_i32_0 = arith.constant 0 : i32
    %c0_i32_1 = arith.constant 0 : i32
    return %c0_i32, %c0_i32_0 : i32, i32
  }
  func.func @transform_9(%arg0: i32) -> (i32, i32) {
    %c0_i32 = arith.constant 0 : i32
    %c0_i32_0 = arith.constant 0 : i32
    %c0_i32_1 = arith.constant 0 : i32
    return %c0_i32, %c0_i32_0 : i32, i32
  }
  func.func @transform_10(%arg0: i32) -> (i32, i32) {
    %c0_i32 = arith.constant 0 : i32
    %c0_i32_0 = arith.constant 0 : i32
    %c0_i32_1 = arith.constant 0 : i32
    return %c0_i32, %c0_i32_0 : i32, i32
  }
  func.func @transform_11(%arg0: i32) -> (i32, i32) {
    %c0_i32 = arith.constant 0 : i32
    %c0_i32_0 = arith.constant 0 : i32
    %c0_i32_1 = arith.constant 0 : i32
    return %c0_i32, %c0_i32_0 : i32, i32
  }
  func.func @transform_12(%arg0: i32) -> (i32, i32) {
    %c0_i32 = arith.constant 0 : i32
    %c0_i32_0 = arith.constant 0 : i32
    %c0_i32_1 = arith.constant 0 : i32
    return %c0_i32, %c0_i32_0 : i32, i32
  }
  func.func @transform_13(%arg0: i32) -> (i32, i32) {
    %c0_i32 = arith.constant 0 : i32
    %c0_i32_0 = arith.constant 0 : i32
    %c0_i32_1 = arith.constant 0 : i32
    return %c0_i32, %c0_i32_0 : i32, i32
  }
  func.func @transform_14(%arg0: i32) -> (i32, i32, i32) {
    %c0_i32 = arith.constant 0 : i32
    %c0_i32_0 = arith.constant 0 : i32
    %c0_i32_1 = arith.constant 0 : i32
    return %arg0, %c0_i32, %c0_i32_0 : i32, i32, i32
  }
}

module attributes {stable_mosaic.version = 11 : i64} {
  func.func @_conv_stack_kernel(%arg0: i32, %arg1: memref<1x8x128xf32, #tpu.memory_space<vmem>>, %arg2: memref<1x8x1xf32, #tpu.memory_space<vmem>>, %arg3: memref<384x128xf32, #tpu.memory_space<vmem>>, %arg4: memref<1x128xf32, #tpu.memory_space<vmem>>, %arg5: memref<1x128xf32, #tpu.memory_space<vmem>>, %arg6: memref<128x128xf32, #tpu.memory_space<vmem>>, %arg7: memref<1x128xf32, #tpu.memory_space<vmem>>, %arg8: memref<1x128xf32, #tpu.memory_space<vmem>>, %arg9: memref<384x128xf32, #tpu.memory_space<vmem>>, %arg10: memref<1x128xf32, #tpu.memory_space<vmem>>, %arg11: memref<1x128xf32, #tpu.memory_space<vmem>>, %arg12: memref<128x128xf32, #tpu.memory_space<vmem>>, %arg13: memref<1x128xf32, #tpu.memory_space<vmem>>, %arg14: memref<1x128xf32, #tpu.memory_space<vmem>>, %arg15: memref<384x128xf32, #tpu.memory_space<vmem>>, %arg16: memref<1x128xf32, #tpu.memory_space<vmem>>, %arg17: memref<1x128xf32, #tpu.memory_space<vmem>>, %arg18: memref<128x128xf32, #tpu.memory_space<vmem>>, %arg19: memref<1x128xf32, #tpu.memory_space<vmem>>, %arg20: memref<1x128xf32, #tpu.memory_space<vmem>>, %arg21: memref<384x128xf32, #tpu.memory_space<vmem>>, %arg22: memref<1x128xf32, #tpu.memory_space<vmem>>, %arg23: memref<1x128xf32, #tpu.memory_space<vmem>>, %arg24: memref<1x8x128xf32, #tpu.memory_space<vmem>>, %arg25: memref<24x128xf32, #tpu.memory_space<vmem>>) attributes {dimension_semantics = [#tpu.dimension_semantics<parallel>], iteration_bounds = array<i64: 2>, scalar_prefetch = 0 : i64, scratch_operands = 1 : i64, tpu.core_type = #tpu.core_type<tc>, window_params = [{transform_indices = @transform_0, window_bounds = array<i64: 1, 8, 128>}, {transform_indices = @transform_1, window_bounds = array<i64: 1, 8, 1>}, {pipeline_mode = #tpu.pipeline_mode<synchronous>, transform_indices = @transform_2, window_bounds = array<i64: 384, 128>}, {pipeline_mode = #tpu.pipeline_mode<synchronous>, transform_indices = @transform_3, window_bounds = array<i64: 1, 128>}, {pipeline_mode = #tpu.pipeline_mode<synchronous>, transform_indices = @transform_4, window_bounds = array<i64: 1, 128>}, {pipeline_mode = #tpu.pipeline_mode<synchronous>, transform_indices = @transform_5, window_bounds = array<i64: 128, 128>}, {pipeline_mode = #tpu.pipeline_mode<synchronous>, transform_indices = @transform_6, window_bounds = array<i64: 1, 128>}, {pipeline_mode = #tpu.pipeline_mode<synchronous>, transform_indices = @transform_7, window_bounds = array<i64: 1, 128>}, {pipeline_mode = #tpu.pipeline_mode<synchronous>, transform_indices = @transform_8, window_bounds = array<i64: 384, 128>}, {pipeline_mode = #tpu.pipeline_mode<synchronous>, transform_indices = @transform_9, window_bounds = array<i64: 1, 128>}, {pipeline_mode = #tpu.pipeline_mode<synchronous>, transform_indices = @transform_10, window_bounds = array<i64: 1, 128>}, {pipeline_mode = #tpu.pipeline_mode<synchronous>, transform_indices = @transform_11, window_bounds = array<i64: 128, 128>}, {pipeline_mode = #tpu.pipeline_mode<synchronous>, transform_indices = @transform_12, window_bounds = array<i64: 1, 128>}, {pipeline_mode = #tpu.pipeline_mode<synchronous>, transform_indices = @transform_13, window_bounds = array<i64: 1, 128>}, {pipeline_mode = #tpu.pipeline_mode<synchronous>, transform_indices = @transform_14, window_bounds = array<i64: 384, 128>}, {pipeline_mode = #tpu.pipeline_mode<synchronous>, transform_indices = @transform_15, window_bounds = array<i64: 1, 128>}, {pipeline_mode = #tpu.pipeline_mode<synchronous>, transform_indices = @transform_16, window_bounds = array<i64: 1, 128>}, {pipeline_mode = #tpu.pipeline_mode<synchronous>, transform_indices = @transform_17, window_bounds = array<i64: 128, 128>}, {pipeline_mode = #tpu.pipeline_mode<synchronous>, transform_indices = @transform_18, window_bounds = array<i64: 1, 128>}, {pipeline_mode = #tpu.pipeline_mode<synchronous>, transform_indices = @transform_19, window_bounds = array<i64: 1, 128>}, {pipeline_mode = #tpu.pipeline_mode<synchronous>, transform_indices = @transform_20, window_bounds = array<i64: 384, 128>}, {pipeline_mode = #tpu.pipeline_mode<synchronous>, transform_indices = @transform_21, window_bounds = array<i64: 1, 128>}, {pipeline_mode = #tpu.pipeline_mode<synchronous>, transform_indices = @transform_22, window_bounds = array<i64: 1, 128>}, {transform_indices = @transform_23, window_bounds = array<i64: 1, 8, 128>}]} {
    %c0 = arith.constant 0 : index
    %c0_0 = arith.constant 0 : index
    %c0_1 = arith.constant 0 : index
    %0 = vector.load %arg2[%c0, %c0_0, %c0_1] : memref<1x8x1xf32, #tpu.memory_space<vmem>>, vector<1x8x1xf32>
    %1 = vector.shape_cast %0 : vector<1x8x1xf32> to vector<8x1xf32>
    %c0_2 = arith.constant 0 : index
    %c0_3 = arith.constant 0 : index
    %c0_4 = arith.constant 0 : index
    %2 = vector.load %arg1[%c0_2, %c0_3, %c0_4] : memref<1x8x128xf32, #tpu.memory_space<vmem>>, vector<1x8x128xf32>
    %3 = vector.shape_cast %2 : vector<1x8x128xf32> to vector<8x128xf32>
    %4 = vector.broadcast %1 : vector<8x1xf32> to vector<8x128xf32>
    %5 = arith.mulf %3, %4 : vector<8x128xf32>
    %cst = arith.constant 0.000000e+00 : f32
    %6 = vector.broadcast %cst : f32 to vector<24x128xf32>
    %c0_5 = arith.constant 0 : index
    %c0_6 = arith.constant 0 : index
    %7 = vector.load %arg25[%c0_5, %c0_6] : memref<24x128xf32, #tpu.memory_space<vmem>>, vector<24x128xf32>
    tpu.vector_store %arg25[%c0_5, %c0_6], %6 {strides = array<i32>} : memref<24x128xf32, #tpu.memory_space<vmem>>, vector<24x128xf32>,
    %c0_7 = arith.constant 0 : index
    %c0_8 = arith.constant 0 : index
    %8 = vector.load %arg3[%c0_7, %c0_8] : memref<384x128xf32, #tpu.memory_space<vmem>>, vector<384x128xf32>
    %c0_9 = arith.constant 0 : index
    %c0_10 = arith.constant 0 : index
    %9 = vector.load %arg4[%c0_9, %c0_10] : memref<1x128xf32, #tpu.memory_space<vmem>>, vector<1x128xf32>
    %c0_11 = arith.constant 0 : index
    %c0_12 = arith.constant 0 : index
    %10 = vector.load %arg5[%c0_11, %c0_12] : memref<1x128xf32, #tpu.memory_space<vmem>>, vector<1x128xf32>
    %c0_13 = arith.constant 0 : index
    %c0_14 = arith.constant 0 : index
    %11 = vector.load %arg6[%c0_13, %c0_14] : memref<128x128xf32, #tpu.memory_space<vmem>>, vector<128x128xf32>
    %c0_15 = arith.constant 0 : index
    %c0_16 = arith.constant 0 : index
    %12 = vector.load %arg7[%c0_15, %c0_16] : memref<1x128xf32, #tpu.memory_space<vmem>>, vector<1x128xf32>
    %c0_17 = arith.constant 0 : index
    %c0_18 = arith.constant 0 : index
    %13 = vector.load %arg8[%c0_17, %c0_18] : memref<1x128xf32, #tpu.memory_space<vmem>>, vector<1x128xf32>
    %c8 = arith.constant 8 : index
    %c0_19 = arith.constant 0 : index
    %14 = vector.load %arg25[%c8, %c0_19] : memref<24x128xf32, #tpu.memory_space<vmem>>, vector<8x128xf32>
    tpu.vector_store %arg25[%c8, %c0_19], %5 {strides = array<i32>} : memref<24x128xf32, #tpu.memory_space<vmem>>, vector<8x128xf32>,
    %c7 = arith.constant 7 : index
    %c0_20 = arith.constant 0 : index
    %15 = vector.load %arg25[%c7, %c0_20] : memref<24x128xf32, #tpu.memory_space<vmem>>, vector<8x128xf32>
    %c9 = arith.constant 9 : index
    %c0_21 = arith.constant 0 : index
    %16 = vector.load %arg25[%c9, %c0_21] : memref<24x128xf32, #tpu.memory_space<vmem>>, vector<8x128xf32>
    %17 = tpu.concatenate %15, %5, %16 in 1 : vector<8x128xf32>, vector<8x128xf32>, vector<8x128xf32> -> vector<8x384xf32>
    %cst_22 = arith.constant dense<0.000000e+00> : vector<8x128xf32>
    %18 = tpu.matmul %17, %8, %cst_22 {dimension_numbers = #tpu.dot_dimension_numbers<[1], [0], [0], [1], [0, 0, 1, 1], [], []>} : vector<8x384xf32>, vector<384x128xf32>, vector<8x128xf32> -> vector<8x128xf32>
    %19 = vector.broadcast %9 : vector<1x128xf32> to vector<8x128xf32>
    %20 = arith.addf %18, %19 : vector<8x128xf32>
    %cst_23 = arith.constant dense<0.000000e+00> : vector<8x128xf32>
    %21 = tpu.matmul %20, %11, %cst_23 {dimension_numbers = #tpu.dot_dimension_numbers<[1], [0], [0], [1], [0, 0, 1, 1], [], []>} : vector<8x128xf32>, vector<128x128xf32>, vector<8x128xf32> -> vector<8x128xf32>
    %22 = arith.subf %20, %21 : vector<8x128xf32>
    %23 = arith.mulf %22, %22 : vector<8x128xf32>
    %cst_24 = arith.constant dense<0.000000e+00> : vector<8x128xf32>
    %24 = tpu.matmul %23, %11, %cst_24 {dimension_numbers = #tpu.dot_dimension_numbers<[1], [0], [0], [1], [0, 0, 1, 1], [], []>} : vector<8x128xf32>, vector<128x128xf32>, vector<8x128xf32> -> vector<8x128xf32>
    %cst_25 = arith.constant 9.99999974E-6 : f32
    %25 = vector.broadcast %cst_25 : f32 to vector<8x128xf32>
    %26 = arith.addf %24, %25 : vector<8x128xf32>
    %27 = math.rsqrt %26 : vector<8x128xf32>
    %28 = arith.mulf %22, %27 : vector<8x128xf32>
    %29 = vector.broadcast %12 : vector<1x128xf32> to vector<8x128xf32>
    %30 = arith.mulf %28, %29 : vector<8x128xf32>
    %31 = vector.broadcast %13 : vector<1x128xf32> to vector<8x128xf32>
    %32 = arith.addf %30, %31 : vector<8x128xf32>
    %cst_26 = arith.constant 0.000000e+00 : f32
    %33 = vector.broadcast %cst_26 : f32 to vector<1x128xf32>
    %34 = arith.cmpf ogt, %10, %33 : vector<1x128xf32>
    %cst_27 = arith.constant 0.000000e+00 : f32
    %35 = vector.broadcast %cst_27 : f32 to vector<8x128xf32>
    %36 = arith.maximumf %32, %35 : vector<8x128xf32>
    %37 = vector.shape_cast %34 : vector<1x128xi1> to vector<1x128xi1>
    %38 = vector.broadcast %37 : vector<1x128xi1> to vector<8x128xi1>
    %39 = arith.select %38, %36, %32 : vector<8x128xi1>, vector<8x128xf32>
    %40 = vector.broadcast %1 : vector<8x1xf32> to vector<8x128xf32>
    %41 = arith.mulf %39, %40 : vector<8x128xf32>
    %c0_28 = arith.constant 0 : index
    %c0_29 = arith.constant 0 : index
    %42 = vector.load %arg9[%c0_28, %c0_29] : memref<384x128xf32, #tpu.memory_space<vmem>>, vector<384x128xf32>
    %c0_30 = arith.constant 0 : index
    %c0_31 = arith.constant 0 : index
    %43 = vector.load %arg10[%c0_30, %c0_31] : memref<1x128xf32, #tpu.memory_space<vmem>>, vector<1x128xf32>
    %c0_32 = arith.constant 0 : index
    %c0_33 = arith.constant 0 : index
    %44 = vector.load %arg11[%c0_32, %c0_33] : memref<1x128xf32, #tpu.memory_space<vmem>>, vector<1x128xf32>
    %c0_34 = arith.constant 0 : index
    %c0_35 = arith.constant 0 : index
    %45 = vector.load %arg12[%c0_34, %c0_35] : memref<128x128xf32, #tpu.memory_space<vmem>>, vector<128x128xf32>
    %c0_36 = arith.constant 0 : index
    %c0_37 = arith.constant 0 : index
    %46 = vector.load %arg13[%c0_36, %c0_37] : memref<1x128xf32, #tpu.memory_space<vmem>>, vector<1x128xf32>
    %c0_38 = arith.constant 0 : index
    %c0_39 = arith.constant 0 : index
    %47 = vector.load %arg14[%c0_38, %c0_39] : memref<1x128xf32, #tpu.memory_space<vmem>>, vector<1x128xf32>
    %c8_40 = arith.constant 8 : index
    %c0_41 = arith.constant 0 : index
    %48 = vector.load %arg25[%c8_40, %c0_41] : memref<24x128xf32, #tpu.memory_space<vmem>>, vector<8x128xf32>
    tpu.vector_store %arg25[%c8_40, %c0_41], %41 {strides = array<i32>} : memref<24x128xf32, #tpu.memory_space<vmem>>, vector<8x128xf32>,
    %c7_42 = arith.constant 7 : index
    %c0_43 = arith.constant 0 : index
    %49 = vector.load %arg25[%c7_42, %c0_43] : memref<24x128xf32, #tpu.memory_space<vmem>>, vector<8x128xf32>
    %c9_44 = arith.constant 9 : index
    %c0_45 = arith.constant 0 : index
    %50 = vector.load %arg25[%c9_44, %c0_45] : memref<24x128xf32, #tpu.memory_space<vmem>>, vector<8x128xf32>
    %51 = tpu.concatenate %49, %41, %50 in 1 : vector<8x128xf32>, vector<8x128xf32>, vector<8x128xf32> -> vector<8x384xf32>
    %cst_46 = arith.constant dense<0.000000e+00> : vector<8x128xf32>
    %52 = tpu.matmul %51, %42, %cst_46 {dimension_numbers = #tpu.dot_dimension_numbers<[1], [0], [0], [1], [0, 0, 1, 1], [], []>} : vector<8x384xf32>, vector<384x128xf32>, vector<8x128xf32> -> vector<8x128xf32>
    %53 = vector.broadcast %43 : vector<1x128xf32> to vector<8x128xf32>
    %54 = arith.addf %52, %53 : vector<8x128xf32>
    %cst_47 = arith.constant dense<0.000000e+00> : vector<8x128xf32>
    %55 = tpu.matmul %54, %45, %cst_47 {dimension_numbers = #tpu.dot_dimension_numbers<[1], [0], [0], [1], [0, 0, 1, 1], [], []>} : vector<8x128xf32>, vector<128x128xf32>, vector<8x128xf32> -> vector<8x128xf32>
    %56 = arith.subf %54, %55 : vector<8x128xf32>
    %57 = arith.mulf %56, %56 : vector<8x128xf32>
    %cst_48 = arith.constant dense<0.000000e+00> : vector<8x128xf32>
    %58 = tpu.matmul %57, %45, %cst_48 {dimension_numbers = #tpu.dot_dimension_numbers<[1], [0], [0], [1], [0, 0, 1, 1], [], []>} : vector<8x128xf32>, vector<128x128xf32>, vector<8x128xf32> -> vector<8x128xf32>
    %cst_49 = arith.constant 9.99999974E-6 : f32
    %59 = vector.broadcast %cst_49 : f32 to vector<8x128xf32>
    %60 = arith.addf %58, %59 : vector<8x128xf32>
    %61 = math.rsqrt %60 : vector<8x128xf32>
    %62 = arith.mulf %56, %61 : vector<8x128xf32>
    %63 = vector.broadcast %46 : vector<1x128xf32> to vector<8x128xf32>
    %64 = arith.mulf %62, %63 : vector<8x128xf32>
    %65 = vector.broadcast %47 : vector<1x128xf32> to vector<8x128xf32>
    %66 = arith.addf %64, %65 : vector<8x128xf32>
    %cst_50 = arith.constant 0.000000e+00 : f32
    %67 = vector.broadcast %cst_50 : f32 to vector<1x128xf32>
    %68 = arith.cmpf ogt, %44, %67 : vector<1x128xf32>
    %cst_51 = arith.constant 0.000000e+00 : f32
    %69 = vector.broadcast %cst_51 : f32 to vector<8x128xf32>
    %70 = arith.maximumf %66, %69 : vector<8x128xf32>
    %71 = vector.shape_cast %68 : vector<1x128xi1> to vector<1x128xi1>
    %72 = vector.broadcast %71 : vector<1x128xi1> to vector<8x128xi1>
    %73 = arith.select %72, %70, %66 : vector<8x128xi1>, vector<8x128xf32>
    %74 = vector.broadcast %1 : vector<8x1xf32> to vector<8x128xf32>
    %75 = arith.mulf %73, %74 : vector<8x128xf32>
    %c0_52 = arith.constant 0 : index
    %c0_53 = arith.constant 0 : index
    %76 = vector.load %arg15[%c0_52, %c0_53] : memref<384x128xf32, #tpu.memory_space<vmem>>, vector<384x128xf32>
    %c0_54 = arith.constant 0 : index
    %c0_55 = arith.constant 0 : index
    %77 = vector.load %arg16[%c0_54, %c0_55] : memref<1x128xf32, #tpu.memory_space<vmem>>, vector<1x128xf32>
    %c0_56 = arith.constant 0 : index
    %c0_57 = arith.constant 0 : index
    %78 = vector.load %arg17[%c0_56, %c0_57] : memref<1x128xf32, #tpu.memory_space<vmem>>, vector<1x128xf32>
    %c0_58 = arith.constant 0 : index
    %c0_59 = arith.constant 0 : index
    %79 = vector.load %arg18[%c0_58, %c0_59] : memref<128x128xf32, #tpu.memory_space<vmem>>, vector<128x128xf32>
    %c0_60 = arith.constant 0 : index
    %c0_61 = arith.constant 0 : index
    %80 = vector.load %arg19[%c0_60, %c0_61] : memref<1x128xf32, #tpu.memory_space<vmem>>, vector<1x128xf32>
    %c0_62 = arith.constant 0 : index
    %c0_63 = arith.constant 0 : index
    %81 = vector.load %arg20[%c0_62, %c0_63] : memref<1x128xf32, #tpu.memory_space<vmem>>, vector<1x128xf32>
    %c8_64 = arith.constant 8 : index
    %c0_65 = arith.constant 0 : index
    %82 = vector.load %arg25[%c8_64, %c0_65] : memref<24x128xf32, #tpu.memory_space<vmem>>, vector<8x128xf32>
    tpu.vector_store %arg25[%c8_64, %c0_65], %75 {strides = array<i32>} : memref<24x128xf32, #tpu.memory_space<vmem>>, vector<8x128xf32>,
    %c7_66 = arith.constant 7 : index
    %c0_67 = arith.constant 0 : index
    %83 = vector.load %arg25[%c7_66, %c0_67] : memref<24x128xf32, #tpu.memory_space<vmem>>, vector<8x128xf32>
    %c9_68 = arith.constant 9 : index
    %c0_69 = arith.constant 0 : index
    %84 = vector.load %arg25[%c9_68, %c0_69] : memref<24x128xf32, #tpu.memory_space<vmem>>, vector<8x128xf32>
    %85 = tpu.concatenate %83, %75, %84 in 1 : vector<8x128xf32>, vector<8x128xf32>, vector<8x128xf32> -> vector<8x384xf32>
    %cst_70 = arith.constant dense<0.000000e+00> : vector<8x128xf32>
    %86 = tpu.matmul %85, %76, %cst_70 {dimension_numbers = #tpu.dot_dimension_numbers<[1], [0], [0], [1], [0, 0, 1, 1], [], []>} : vector<8x384xf32>, vector<384x128xf32>, vector<8x128xf32> -> vector<8x128xf32>
    %87 = vector.broadcast %77 : vector<1x128xf32> to vector<8x128xf32>
    %88 = arith.addf %86, %87 : vector<8x128xf32>
    %cst_71 = arith.constant dense<0.000000e+00> : vector<8x128xf32>
    %89 = tpu.matmul %88, %79, %cst_71 {dimension_numbers = #tpu.dot_dimension_numbers<[1], [0], [0], [1], [0, 0, 1, 1], [], []>} : vector<8x128xf32>, vector<128x128xf32>, vector<8x128xf32> -> vector<8x128xf32>
    %90 = arith.subf %88, %89 : vector<8x128xf32>
    %91 = arith.mulf %90, %90 : vector<8x128xf32>
    %cst_72 = arith.constant dense<0.000000e+00> : vector<8x128xf32>
    %92 = tpu.matmul %91, %79, %cst_72 {dimension_numbers = #tpu.dot_dimension_numbers<[1], [0], [0], [1], [0, 0, 1, 1], [], []>} : vector<8x128xf32>, vector<128x128xf32>, vector<8x128xf32> -> vector<8x128xf32>
    %cst_73 = arith.constant 9.99999974E-6 : f32
    %93 = vector.broadcast %cst_73 : f32 to vector<8x128xf32>
    %94 = arith.addf %92, %93 : vector<8x128xf32>
    %95 = math.rsqrt %94 : vector<8x128xf32>
    %96 = arith.mulf %90, %95 : vector<8x128xf32>
    %97 = vector.broadcast %80 : vector<1x128xf32> to vector<8x128xf32>
    %98 = arith.mulf %96, %97 : vector<8x128xf32>
    %99 = vector.broadcast %81 : vector<1x128xf32> to vector<8x128xf32>
    %100 = arith.addf %98, %99 : vector<8x128xf32>
    %cst_74 = arith.constant 0.000000e+00 : f32
    %101 = vector.broadcast %cst_74 : f32 to vector<1x128xf32>
    %102 = arith.cmpf ogt, %78, %101 : vector<1x128xf32>
    %cst_75 = arith.constant 0.000000e+00 : f32
    %103 = vector.broadcast %cst_75 : f32 to vector<8x128xf32>
    %104 = arith.maximumf %100, %103 : vector<8x128xf32>
    %105 = vector.shape_cast %102 : vector<1x128xi1> to vector<1x128xi1>
    %106 = vector.broadcast %105 : vector<1x128xi1> to vector<8x128xi1>
    %107 = arith.select %106, %104, %100 : vector<8x128xi1>, vector<8x128xf32>
    %108 = vector.broadcast %1 : vector<8x1xf32> to vector<8x128xf32>
    %109 = arith.mulf %107, %108 : vector<8x128xf32>
    %c0_76 = arith.constant 0 : index
    %c0_77 = arith.constant 0 : index
    %110 = vector.load %arg21[%c0_76, %c0_77] : memref<384x128xf32, #tpu.memory_space<vmem>>, vector<384x128xf32>
    %c0_78 = arith.constant 0 : index
    %c0_79 = arith.constant 0 : index
    %111 = vector.load %arg22[%c0_78, %c0_79] : memref<1x128xf32, #tpu.memory_space<vmem>>, vector<1x128xf32>
    %c0_80 = arith.constant 0 : index
    %c0_81 = arith.constant 0 : index
    %112 = vector.load %arg23[%c0_80, %c0_81] : memref<1x128xf32, #tpu.memory_space<vmem>>, vector<1x128xf32>
    %c8_82 = arith.constant 8 : index
    %c0_83 = arith.constant 0 : index
    %113 = vector.load %arg25[%c8_82, %c0_83] : memref<24x128xf32, #tpu.memory_space<vmem>>, vector<8x128xf32>
    tpu.vector_store %arg25[%c8_82, %c0_83], %109 {strides = array<i32>} : memref<24x128xf32, #tpu.memory_space<vmem>>, vector<8x128xf32>,
    %c7_84 = arith.constant 7 : index
    %c0_85 = arith.constant 0 : index
    %114 = vector.load %arg25[%c7_84, %c0_85] : memref<24x128xf32, #tpu.memory_space<vmem>>, vector<8x128xf32>
    %c9_86 = arith.constant 9 : index
    %c0_87 = arith.constant 0 : index
    %115 = vector.load %arg25[%c9_86, %c0_87] : memref<24x128xf32, #tpu.memory_space<vmem>>, vector<8x128xf32>
    %116 = tpu.concatenate %114, %109, %115 in 1 : vector<8x128xf32>, vector<8x128xf32>, vector<8x128xf32> -> vector<8x384xf32>
    %cst_88 = arith.constant dense<0.000000e+00> : vector<8x128xf32>
    %117 = tpu.matmul %116, %110, %cst_88 {dimension_numbers = #tpu.dot_dimension_numbers<[1], [0], [0], [1], [0, 0, 1, 1], [], []>} : vector<8x384xf32>, vector<384x128xf32>, vector<8x128xf32> -> vector<8x128xf32>
    %118 = vector.broadcast %111 : vector<1x128xf32> to vector<8x128xf32>
    %119 = arith.addf %117, %118 : vector<8x128xf32>
    %cst_89 = arith.constant 0.000000e+00 : f32
    %120 = vector.broadcast %cst_89 : f32 to vector<1x128xf32>
    %121 = arith.cmpf ogt, %112, %120 : vector<1x128xf32>
    %cst_90 = arith.constant 0.000000e+00 : f32
    %122 = vector.broadcast %cst_90 : f32 to vector<8x128xf32>
    %123 = arith.maximumf %119, %122 : vector<8x128xf32>
    %124 = vector.shape_cast %121 : vector<1x128xi1> to vector<1x128xi1>
    %125 = vector.broadcast %124 : vector<1x128xi1> to vector<8x128xi1>
    %126 = arith.select %125, %123, %119 : vector<8x128xi1>, vector<8x128xf32>
    %127 = vector.broadcast %1 : vector<8x1xf32> to vector<8x128xf32>
    %128 = arith.mulf %126, %127 : vector<8x128xf32>
    %c0_91 = arith.constant 0 : index
    %c0_92 = arith.constant 0 : index
    %c0_93 = arith.constant 0 : index
    %129 = vector.load %arg24[%c0_91, %c0_92, %c0_93] : memref<1x8x128xf32, #tpu.memory_space<vmem>>, vector<1x8x128xf32>
    %130 = vector.shape_cast %129 : vector<1x8x128xf32> to vector<8x128xf32>
    %131 = vector.shape_cast %128 : vector<8x128xf32> to vector<1x8x128xf32>
    tpu.vector_store %arg24[%c0_91, %c0_92, %c0_93], %131 {strides = array<i32>} : memref<1x8x128xf32, #tpu.memory_space<vmem>>, vector<1x8x128xf32>,
    return
  }
  func.func @transform_0(%arg0: i32) -> (i32, i32, i32) {
    %c0_i32 = arith.constant 0 : i32
    %c0_i32_0 = arith.constant 0 : i32
    %c0_i32_1 = arith.constant 0 : i32
    return %arg0, %c0_i32, %c0_i32_0 : i32, i32, i32
  }
  func.func @transform_1(%arg0: i32) -> (i32, i32, i32) {
    %c0_i32 = arith.constant 0 : i32
    %c0_i32_0 = arith.constant 0 : i32
    %c0_i32_1 = arith.constant 0 : i32
    return %arg0, %c0_i32, %c0_i32_0 : i32, i32, i32
  }
  func.func @transform_2(%arg0: i32) -> (i32, i32) {
    %c0_i32 = arith.constant 0 : i32
    %c0_i32_0 = arith.constant 0 : i32
    %c0_i32_1 = arith.constant 0 : i32
    return %c0_i32, %c0_i32_0 : i32, i32
  }
  func.func @transform_3(%arg0: i32) -> (i32, i32) {
    %c0_i32 = arith.constant 0 : i32
    %c0_i32_0 = arith.constant 0 : i32
    %c0_i32_1 = arith.constant 0 : i32
    return %c0_i32, %c0_i32_0 : i32, i32
  }
  func.func @transform_4(%arg0: i32) -> (i32, i32) {
    %c0_i32 = arith.constant 0 : i32
    %c0_i32_0 = arith.constant 0 : i32
    %c0_i32_1 = arith.constant 0 : i32
    return %c0_i32, %c0_i32_0 : i32, i32
  }
  func.func @transform_5(%arg0: i32) -> (i32, i32) {
    %c0_i32 = arith.constant 0 : i32
    %c0_i32_0 = arith.constant 0 : i32
    %c0_i32_1 = arith.constant 0 : i32
    return %c0_i32, %c0_i32_0 : i32, i32
  }
  func.func @transform_6(%arg0: i32) -> (i32, i32) {
    %c0_i32 = arith.constant 0 : i32
    %c0_i32_0 = arith.constant 0 : i32
    %c0_i32_1 = arith.constant 0 : i32
    return %c0_i32, %c0_i32_0 : i32, i32
  }
  func.func @transform_7(%arg0: i32) -> (i32, i32) {
    %c0_i32 = arith.constant 0 : i32
    %c0_i32_0 = arith.constant 0 : i32
    %c0_i32_1 = arith.constant 0 : i32
    return %c0_i32, %c0_i32_0 : i32, i32
  }
  func.func @transform_8(%arg0: i32) -> (i32, i32) {
    %c0_i32 = arith.constant 0 : i32
    %c0_i32_0 = arith.constant 0 : i32
    %c0_i32_1 = arith.constant 0 : i32
    return %c0_i32, %c0_i32_0 : i32, i32
  }
  func.func @transform_9(%arg0: i32) -> (i32, i32) {
    %c0_i32 = arith.constant 0 : i32
    %c0_i32_0 = arith.constant 0 : i32
    %c0_i32_1 = arith.constant 0 : i32
    return %c0_i32, %c0_i32_0 : i32, i32
  }
  func.func @transform_10(%arg0: i32) -> (i32, i32) {
    %c0_i32 = arith.constant 0 : i32
    %c0_i32_0 = arith.constant 0 : i32
    %c0_i32_1 = arith.constant 0 : i32
    return %c0_i32, %c0_i32_0 : i32, i32
  }
  func.func @transform_11(%arg0: i32) -> (i32, i32) {
    %c0_i32 = arith.constant 0 : i32
    %c0_i32_0 = arith.constant 0 : i32
    %c0_i32_1 = arith.constant 0 : i32
    return %c0_i32, %c0_i32_0 : i32, i32
  }
  func.func @transform_12(%arg0: i32) -> (i32, i32) {
    %c0_i32 = arith.constant 0 : i32
    %c0_i32_0 = arith.constant 0 : i32
    %c0_i32_1 = arith.constant 0 : i32
    return %c0_i32, %c0_i32_0 : i32, i32
  }
  func.func @transform_13(%arg0: i32) -> (i32, i32) {
    %c0_i32 = arith.constant 0 : i32
    %c0_i32_0 = arith.constant 0 : i32
    %c0_i32_1 = arith.constant 0 : i32
    return %c0_i32, %c0_i32_0 : i32, i32
  }
  func.func @transform_14(%arg0: i32) -> (i32, i32) {
    %c0_i32 = arith.constant 0 : i32
    %c0_i32_0 = arith.constant 0 : i32
    %c0_i32_1 = arith.constant 0 : i32
    return %c0_i32, %c0_i32_0 : i32, i32
  }
  func.func @transform_15(%arg0: i32) -> (i32, i32) {
    %c0_i32 = arith.constant 0 : i32
    %c0_i32_0 = arith.constant 0 : i32
    %c0_i32_1 = arith.constant 0 : i32
    return %c0_i32, %c0_i32_0 : i32, i32
  }
  func.func @transform_16(%arg0: i32) -> (i32, i32) {
    %c0_i32 = arith.constant 0 : i32
    %c0_i32_0 = arith.constant 0 : i32
    %c0_i32_1 = arith.constant 0 : i32
    return %c0_i32, %c0_i32_0 : i32, i32
  }
  func.func @transform_17(%arg0: i32) -> (i32, i32) {
    %c0_i32 = arith.constant 0 : i32
    %c0_i32_0 = arith.constant 0 : i32
    %c0_i32_1 = arith.constant 0 : i32
    return %c0_i32, %c0_i32_0 : i32, i32
  }
  func.func @transform_18(%arg0: i32) -> (i32, i32) {
    %c0_i32 = arith.constant 0 : i32
    %c0_i32_0 = arith.constant 0 : i32
    %c0_i32_1 = arith.constant 0 : i32
    return %c0_i32, %c0_i32_0 : i32, i32
  }
  func.func @transform_19(%arg0: i32) -> (i32, i32) {
    %c0_i32 = arith.constant 0 : i32
    %c0_i32_0 = arith.constant 0 : i32
    %c0_i32_1 = arith.constant 0 : i32
    return %c0_i32, %c0_i32_0 : i32, i32
  }
  func.func @transform_20(%arg0: i32) -> (i32, i32) {
    %c0_i32 = arith.constant 0 : i32
    %c0_i32_0 = arith.constant 0 : i32
    %c0_i32_1 = arith.constant 0 : i32
    return %c0_i32, %c0_i32_0 : i32, i32
  }
  func.func @transform_21(%arg0: i32) -> (i32, i32) {
    %c0_i32 = arith.constant 0 : i32
    %c0_i32_0 = arith.constant 0 : i32
    %c0_i32_1 = arith.constant 0 : i32
    return %c0_i32, %c0_i32_0 : i32, i32
  }
  func.func @transform_22(%arg0: i32) -> (i32, i32) {
    %c0_i32 = arith.constant 0 : i32
    %c0_i32_0 = arith.constant 0 : i32
    %c0_i32_1 = arith.constant 0 : i32
    return %c0_i32, %c0_i32_0 : i32, i32
  }
  func.func @transform_23(%arg0: i32) -> (i32, i32, i32) {
    %c0_i32 = arith.constant 0 : i32
    %c0_i32_0 = arith.constant 0 : i32
    %c0_i32_1 = arith.constant 0 : i32
    return %arg0, %c0_i32, %c0_i32_0 : i32, i32, i32
  }
}

module attributes {stable_mosaic.version = 11 : i64} {
  func.func @_mlp_kernel(%arg0: i32, %arg1: memref<16x160xf32, #tpu.memory_space<vmem>>, %arg2: memref<160x128xf32, #tpu.memory_space<vmem>>, %arg3: memref<1x128xf32, #tpu.memory_space<vmem>>, %arg4: memref<16x128xf32, #tpu.memory_space<vmem>>) attributes {dimension_semantics = [#tpu.dimension_semantics<parallel>], iteration_bounds = array<i64: 1>, scalar_prefetch = 0 : i64, scratch_operands = 0 : i64, tpu.core_type = #tpu.core_type<tc>, window_params = [{transform_indices = @transform_0, window_bounds = array<i64: 16, 160>}, {pipeline_mode = #tpu.pipeline_mode<synchronous>, transform_indices = @transform_1, window_bounds = array<i64: 160, 128>}, {pipeline_mode = #tpu.pipeline_mode<synchronous>, transform_indices = @transform_2, window_bounds = array<i64: 1, 128>}, {transform_indices = @transform_3, window_bounds = array<i64: 16, 128>}]} {
    %c0 = arith.constant 0 : index
    %c0_0 = arith.constant 0 : index
    %0 = vector.load %arg1[%c0, %c0_0] : memref<16x160xf32, #tpu.memory_space<vmem>>, vector<16x160xf32>
    %c0_1 = arith.constant 0 : index
    %c0_2 = arith.constant 0 : index
    %1 = vector.load %arg2[%c0_1, %c0_2] : memref<160x128xf32, #tpu.memory_space<vmem>>, vector<160x128xf32>
    %c0_3 = arith.constant 0 : index
    %c0_4 = arith.constant 0 : index
    %2 = vector.load %arg3[%c0_3, %c0_4] : memref<1x128xf32, #tpu.memory_space<vmem>>, vector<1x128xf32>
    %cst = arith.constant dense<0.000000e+00> : vector<16x128xf32>
    %3 = tpu.matmul %0, %1, %cst {dimension_numbers = #tpu.dot_dimension_numbers<[1], [0], [0], [1], [0, 0, 1, 1], [], []>} : vector<16x160xf32>, vector<160x128xf32>, vector<16x128xf32> -> vector<16x128xf32>
    %4 = vector.broadcast %2 : vector<1x128xf32> to vector<16x128xf32>
    %5 = arith.addf %3, %4 : vector<16x128xf32>
    %cst_5 = arith.constant 0.000000e+00 : f32
    %6 = vector.broadcast %cst_5 : f32 to vector<16x128xf32>
    %7 = arith.maximumf %5, %6 : vector<16x128xf32>
    %c0_6 = arith.constant 0 : index
    %c0_7 = arith.constant 0 : index
    %8 = vector.load %arg4[%c0_6, %c0_7] : memref<16x128xf32, #tpu.memory_space<vmem>>, vector<16x128xf32>
    tpu.vector_store %arg4[%c0_6, %c0_7], %7 {strides = array<i32>} : memref<16x128xf32, #tpu.memory_space<vmem>>, vector<16x128xf32>,
    return
  }
  func.func @transform_0(%arg0: i32) -> (i32, i32) {
    %c0_i32 = arith.constant 0 : i32
    %c0_i32_0 = arith.constant 0 : i32
    return %arg0, %c0_i32 : i32, i32
  }
  func.func @transform_1(%arg0: i32) -> (i32, i32) {
    %c0_i32 = arith.constant 0 : i32
    %c0_i32_0 = arith.constant 0 : i32
    %c0_i32_1 = arith.constant 0 : i32
    return %c0_i32, %c0_i32_0 : i32, i32
  }
  func.func @transform_2(%arg0: i32) -> (i32, i32) {
    %c0_i32 = arith.constant 0 : i32
    %c0_i32_0 = arith.constant 0 : i32
    %c0_i32_1 = arith.constant 0 : i32
    return %c0_i32, %c0_i32_0 : i32, i32
  }
  func.func @transform_3(%arg0: i32) -> (i32, i32) {
    %c0_i32 = arith.constant 0 : i32
    %c0_i32_0 = arith.constant 0 : i32
    return %arg0, %c0_i32 : i32, i32
  }
}

</mosaic_0001>

<bundles_post_ra>
// kernel: custom-call.6
= control target key start
LH: loop header
LB: loop body
LE: loop exit
PB: predicated region body
PF: predicated region fallthrough
CT: control target
= control target key end

     0   :  { %s6_s0 = inlined_call_operand.vmem [shape: f32[8,2,2,16], index: 0, kind: output, shape index: {}]  }

// kernel: custom-call.1
= control target key start
LH: loop header
LB: loop body
LE: loop exit
PB: predicated region body
PF: predicated region fallthrough
CT: control target
= control target key end

     0   :  { %s6_s0 = inlined_call_operand.vmem [shape: f32[2,2,16], index: 0, kind: output, shape index: {}]  }

// kernel: custom-call
= control target key start
LH: loop header
LB: loop body
LE: loop exit
PB: predicated region body
PF: predicated region fallthrough
CT: control target
= control target key end

     0   :  { %s6_s0 = inlined_call_operand.vmem [shape: bf16[2,2,16], index: 0, kind: output, shape index: {}]  }

// kernel: custom-call.7
= control target key start
LH: loop header
LB: loop body
LE: loop exit
PB: predicated region body
PF: predicated region fallthrough
CT: control target
= control target key end

     0   :  { %s6_s0 = inlined_call_operand.vmem [shape: f32[8,2,2,16], index: 0, kind: output, shape index: {}]  }

// kernel: detector_forward.6
= control target key start
LH: loop header
LB: loop body
LE: loop exit
PB: predicated region body
PF: predicated region fallthrough
CT: control target
= control target key end

     0   :  { %vm36_vm0 = vcmask 457728   ;;  %s428_s1 = inlined_call_operand.vmem [shape: f32[56,128], index: 1, kind: input, shape index: {}]   ;;  %s429_s0 = inlined_call_operand.vmem [shape: f32[16,56], index: 0, kind: input, shape index: {}]   ;;  %s430_s3 = inlined_call_operand.vmem [shape: f32[128,128], index: 3, kind: input, shape index: {}]   ;;  %s431_s2 = inlined_call_operand.vmem [shape: f32[1,128], index: 2, kind: input, shape index: {}]   ;;  %s432_s4 = inlined_call_operand.vmem [shape: f32[1,128], index: 4, kind: input, shape index: {}]   ;;  %s433_s5 = inlined_call_operand.vmem [shape: f32[16,128], index: 5, kind: output, shape index: {}]  }
   0x1   :  { %v28_v0 = vld [vmem:[%s428_s1 + $0x30] sm:$0xff]  ;;  %v27_v1 = vld [vmem:[%s428_s1 + $0x28] sm:$0xff]  ;;  %v26_v2 = vld [vmem:[%s428_s1 + $0x20] sm:$0xff] }
   0x2   :  { %257 = vmatprep.subr.mxu0 %v28_v0  ;;  %v20_v3 = vld [vmem:[%s429_s0] sm:$0xff]  ;;  %v135_v4 = vld [vmem:[%s430_s3 + $0x78] sm:$0xff]  ;;  %v134_v5 = vld [vmem:[%s430_s3 + $0x70] sm:$0xff] }
   0x3   :  { %258 = vmatpush3.msra.mxu0 %v28_v0  ;;  %271 = vmatprep.mubr.msk.f32.mxu0 %vm36_vm0, %v20_v3  ;;  %v25_v6 = vld [vmem:[%s428_s1 + $0x18] sm:$0xff]  ;;  %v133_v7 = vld [vmem:[%s430_s3 + $0x68] sm:$0xff]  ;;  %v24_v8 = vld [vmem:[%s428_s1 + $0x10] sm:$0xff] }
   0x4   :  { %259 = vmatprep.subr.mxu0 %v27_v1  ;;  %274 = vmatprep.subr.mxu1 %v135_v4  ;;  %v132_v9 = vld [vmem:[%s430_s3 + $0x60] sm:$0xff]  ;;  %v23_v10 = vld [vmem:[%s428_s1 + $0x8] sm:$0xff]  ;;  %v131_v11 = vld [vmem:[%s430_s3 + $0x58] sm:$0xff] }
   0x5   :  { %260 = vmatpush3.msra.mxu0 %v27_v1  ;;  %275 = vmatpush3.msra.mxu1 %v135_v4  ;;  %v22_v12 = vld [vmem:[%s428_s1] sm:$0xff]  ;;  %v130_v13 = vld [vmem:[%s430_s3 + $0x50] sm:$0xff]  ;;  %v21_v14 = vld [vmem:[%s429_s0 + $0x8] sm:$0xff] }
   0x6   :  { %261 = vmatprep.subr.mxu0 %v26_v2  ;;  %276 = vmatprep.subr.mxu1 %v134_v5  ;;  %v129_v15 = vld [vmem:[%s430_s3 + $0x48] sm:$0xff]  ;;  %v128_v16 = vld [vmem:[%s430_s3 + $0x40] sm:$0xff]  ;;  %v127_v17 = vld [vmem:[%s430_s3 + $0x38] sm:$0xff] }
   0x7   :  { %262 = vmatpush3.msra.mxu0 %v26_v2  ;;  %277 = vmatpush3.msra.mxu1 %v134_v5  ;;  %v126_v18 = vld [vmem:[%s430_s3 + $0x30] sm:$0xff]  ;;  %v125_v19 = vld [vmem:[%s430_s3 + $0x28] sm:$0xff]  ;;  %v124_v20 = vld [vmem:[%s430_s3 + $0x20] sm:$0xff] }
   0x8   :  { %263 = vmatprep.subr.mxu0 %v25_v6  ;;  %278 = vmatprep.subr.mxu1 %v133_v7  ;;  %v123_v21 = vld [vmem:[%s430_s3 + $0x18] sm:$0xff]  ;;  %v122_v22 = vld [vmem:[%s430_s3 + $0x10] sm:$0xff]  ;;  %v121_v23 = vld [vmem:[%s430_s3 + $0x8] sm:$0xff] }
   0x9   :  { %264 = vmatpush3.msra.mxu0 %v25_v6  ;;  %279 = vmatpush3.msra.mxu1 %v133_v7  ;;  %v120_v24 = vld [vmem:[%s430_s3] sm:$0xff] }
   0xa   :  { %265 = vmatprep.subr.mxu0 %v24_v8  ;;  %280 = vmatprep.subr.mxu1 %v132_v9  ;;  %v226_v25 = vld [vmem:[%s431_s2] ss:$0 sm:$0xff] }
   0xb   :  { %266 = vmatpush3.msra.mxu0 %v24_v8  ;;  %281 = vmatpush3.msra.mxu1 %v132_v9  ;;  %v229_v32 = vld [vmem:[%s432_s4] ss:$0 sm:$0xff] }
   0xc   :  { %267 = vmatprep.subr.mxu0 %v23_v10  ;;  %282 = vmatprep.subr.mxu1 %v131_v11 }
   0xd   :  { %268 = vmatpush3.msra.mxu0 %v23_v10  ;;  %283 = vmatpush3.msra.mxu1 %v131_v11 }
   0xe   :  { %269 = vmatprep.subr.mxu0 %v22_v12  ;;  %284 = vmatprep.subr.mxu1 %v130_v13 }
   0xf   :  { %270 = vmatpush3.msra.mxu0 %v22_v12  ;;  %285 = vmatpush3.msra.mxu1 %v130_v13 }
  0x10   :  { %272 = vmatmul.mubr.msk.f32.vlgmr.msra.gmra.mxu0 %vm36_vm0, %v21_v14  ;;  %286 = vmatprep.subr.mxu1 %v129_v15 }
  0x11   :  { %287 = vmatpush3.msra.mxu1 %v129_v15 }
  0x12   :  { %288 = vmatprep.subr.mxu1 %v128_v16 }
  0x13   :  { %289 = vmatpush3.msra.mxu1 %v128_v16 }
  0x14   :  { %290 = vmatprep.subr.mxu1 %v127_v17 }
  0x15   :  { %291 = vmatpush3.msra.mxu1 %v127_v17 }
  0x16   :  { %292 = vmatprep.subr.mxu1 %v126_v18 }
  0x17   :  { %293 = vmatpush3.msra.mxu1 %v126_v18 }
  0x18   :  { %294 = vmatprep.subr.mxu1 %v125_v19 }
  0x19   :  { %295 = vmatpush3.msra.mxu1 %v125_v19 }
  0x1a   :  { %296 = vmatprep.subr.mxu1 %v124_v20 }
  0x1b   :  { %297 = vmatpush3.msra.mxu1 %v124_v20 }
  0x1c   :  { %298 = vmatprep.subr.mxu1 %v123_v21 }
  0x1d   :  { %299 = vmatpush3.msra.mxu1 %v123_v21 }
  0x1e   :  { %300 = vmatprep.subr.mxu1 %v122_v22 }
  0x1f   :  { %301 = vmatpush3.msra.mxu1 %v122_v22 }
  0x20   :  { %302 = vmatprep.subr.mxu1 %v121_v23 }
  0x21   :  { %303 = vmatpush3.msra.mxu1 %v121_v23 }
  0x22   :  { %304 = vmatprep.subr.mxu1 %v120_v24 }
  0x23   :  { %305 = vmatpush3.msra.mxu1 %v120_v24 }
  0xd0   :  { %v273_v26 = vpop.f32.mrf.mxu0 }
  0xd1   :  { %v115_v27 = vadd.f32 %v273_v26, %v226_v25 }
  0xd2   :  { %v109_v28 = vpop.f32.mrf.mxu0 }
  0xd3   :  { %v110_v29 = vadd.f32 %v226_v25, %v109_v28  ;;  %v119_v31 = vmax.f32 %v115_v27, 0.0 }
  0xd5   :  { %v118_v30 = vmax.f32 %v110_v29, 0.0 }
  0xd7   :  { %306 = vmatprep.mubr.f32.mxu1 %v118_v30 }
  0xd8   :  { %307 = vmatmul.mubr.f32.vlgmr.msra.gmra.mxu1 %v119_v31 }
 0x198   :  { %v308_v33 = vpop.f32.mrf.mxu1 }
 0x199   :  { %v215_v34 = vadd.f32 %v308_v33, %v229_v32 }
 0x19a   :  { %v209_v35 = vpop.f32.mrf.mxu1 }
 0x19b   :  { %v219_v36 = vmax.f32 %v215_v34, 0.0  ;;  %v210_v37 = vadd.f32 %v229_v32, %v209_v35 }
 0x19d   :  { %221 = vst [vmem:[%s433_s5 + $0x8] sm:$0xff] %v219_v36  ;;  %v218_v38 = vmax.f32 %v210_v37, 0.0 }
 0x19f   :  { %220 = vst [vmem:[%s433_s5] sm:$0xff] %v218_v38 }

// kernel: detector_forward.7
= control target key start
LH: loop header
LB: loop body
LE: loop exit
PB: predicated region body
PF: predicated region fallthrough
CT: control target
= control target key end

     0   :  { %s257_s1 = inlined_call_operand.vmem [shape: f32[128,128], index: 1, kind: input, shape index: {}]   ;;  %s258_s0 = inlined_call_operand.vmem [shape: f32[16,128], index: 0, kind: input, shape index: {}]   ;;  %s259_s2 = inlined_call_operand.vmem [shape: f32[1,128], index: 2, kind: input, shape index: {}]   ;;  %s260_s3 = inlined_call_operand.vmem [shape: f32[16,128], index: 3, kind: output, shape index: {}]  }
   0x1   :  { %v31_v0 = vld [vmem:[%s257_s1 + $0x78] sm:$0xff]  ;;  %v30_v1 = vld [vmem:[%s257_s1 + $0x70] sm:$0xff]  ;;  %v29_v2 = vld [vmem:[%s257_s1 + $0x68] sm:$0xff] }
   0x2   :  { %139 = vmatprep.subr.mxu0 %v31_v0  ;;  %v28_v3 = vld [vmem:[%s257_s1 + $0x60] sm:$0xff]  ;;  %v27_v5 = vld [vmem:[%s257_s1 + $0x58] sm:$0xff]  ;;  %v26_v6 = vld [vmem:[%s257_s1 + $0x50] sm:$0xff] }
   0x3   :  { %140 = vmatpush3.msra.mxu0 %v31_v0  ;;  %v14_v4 = vld [vmem:[%s258_s0] sm:$0xff]  ;;  %v25_v7 = vld [vmem:[%s257_s1 + $0x48] sm:$0xff]  ;;  %v23_v9 = vld [vmem:[%s257_s1 + $0x38] sm:$0xff] }
   0x4   :  { %141 = vmatprep.subr.mxu0 %v30_v1  ;;  %171 = vmatprep.mubr.f32.mxu0 %v14_v4  ;;  %v24_v8 = vld [vmem:[%s257_s1 + $0x40] sm:$0xff]  ;;  %v22_v10 = vld [vmem:[%s257_s1 + $0x30] sm:$0xff]  ;;  %v21_v11 = vld [vmem:[%s257_s1 + $0x28] sm:$0xff] }
   0x5   :  { %142 = vmatpush3.msra.mxu0 %v30_v1  ;;  %v20_v12 = vld [vmem:[%s257_s1 + $0x20] sm:$0xff]  ;;  %v19_v13 = vld [vmem:[%s257_s1 + $0x18] sm:$0xff]  ;;  %v18_v14 = vld [vmem:[%s257_s1 + $0x10] sm:$0xff] }
   0x6   :  { %143 = vmatprep.subr.mxu0 %v29_v2  ;;  %v17_v15 = vld [vmem:[%s257_s1 + $0x8] sm:$0xff]  ;;  %v16_v16 = vld [vmem:[%s257_s1] sm:$0xff] }
   0x7   :  { %144 = vmatpush3.msra.mxu0 %v29_v2  ;;  %v15_v17 = vld [vmem:[%s258_s0 + $0x8] sm:$0xff]  ;;  %v120_v18 = vld [vmem:[%s259_s2] ss:$0 sm:$0xff] }
   0x8   :  { %145 = vmatprep.subr.mxu0 %v28_v3 }
   0x9   :  { %146 = vmatpush3.msra.mxu0 %v28_v3 }
   0xa   :  { %147 = vmatprep.subr.mxu0 %v27_v5 }
   0xb   :  { %148 = vmatpush3.msra.mxu0 %v27_v5 }
   0xc   :  { %149 = vmatprep.subr.mxu0 %v26_v6 }
   0xd   :  { %150 = vmatpush3.msra.mxu0 %v26_v6 }
   0xe   :  { %151 = vmatprep.subr.mxu0 %v25_v7 }
   0xf   :  { %152 = vmatpush3.msra.mxu0 %v25_v7 }
  0x10   :  { %153 = vmatprep.subr.mxu0 %v24_v8 }
  0x11   :  { %154 = vmatpush3.msra.mxu0 %v24_v8 }
  0x12   :  { %155 = vmatprep.subr.mxu0 %v23_v9 }
  0x13   :  { %156 = vmatpush3.msra.mxu0 %v23_v9 }
  0x14   :  { %157 = vmatprep.subr.mxu0 %v22_v10 }
  0x15   :  { %158 = vmatpush3.msra.mxu0 %v22_v10 }
  0x16   :  { %159 = vmatprep.subr.mxu0 %v21_v11 }
  0x17   :  { %160 = vmatpush3.msra.mxu0 %v21_v11 }
  0x18   :  { %161 = vmatprep.subr.mxu0 %v20_v12 }
  0x19   :  { %162 = vmatpush3.msra.mxu0 %v20_v12 }
  0x1a   :  { %163 = vmatprep.subr.mxu0 %v19_v13 }
  0x1b   :  { %164 = vmatpush3.msra.mxu0 %v19_v13 }
  0x1c   :  { %165 = vmatprep.subr.mxu0 %v18_v14 }
  0x1d   :  { %166 = vmatpush3.msra.mxu0 %v18_v14 }
  0x1e   :  { %167 = vmatprep.subr.mxu0 %v17_v15 }
  0x1f   :  { %168 = vmatpush3.msra.mxu0 %v17_v15 }
  0x20   :  { %169 = vmatprep.subr.mxu0 %v16_v16 }
  0x21   :  { %170 = vmatpush3.msra.mxu0 %v16_v16 }
  0x22   :  { %172 = vmatmul.mubr.f32.vlgmr.msra.gmra.mxu0 %v15_v17 }
  0xe2   :  { %v173_v19 = vpop.f32.mrf.mxu0 }
  0xe3   :  { %v111_v20 = vadd.f32 %v173_v19, %v120_v18 }
  0xe4   :  { %v105_v21 = vpop.f32.mrf.mxu0 }
  0xe5   :  { %115 = vst [vmem:[%s260_s3 + $0x8] sm:$0xff] %v111_v20  ;;  %v106_v22 = vadd.f32 %v120_v18, %v105_v21 }
  0xe7   :  { %114 = vst [vmem:[%s260_s3] sm:$0xff] %v106_v22 }

// kernel: detector_forward.8
= control target key start
LH: loop header
LB: loop body
LE: loop exit
PB: predicated region body
PF: predicated region fallthrough
CT: control target
= control target key end

     0   :  { %vm27_vm0 = vcmask 261120   ;;  %s184_s1 = inlined_call_operand.vmem [shape: f32[32,128], index: 1, kind: input, shape index: {}]   ;;  %s185_s0 = inlined_call_operand.vmem [shape: f32[16,32], index: 0, kind: input, shape index: {}]   ;;  %s186_s2 = inlined_call_operand.vmem [shape: f32[1,128], index: 2, kind: input, shape index: {}]   ;;  %s187_s3 = inlined_call_operand.vmem [shape: f32[16,128], index: 3, kind: output, shape index: {}]  }
   0x1   :  { %v19_v0 = vld [vmem:[%s184_s1 + $0x18] sm:$0xff]  ;;  %v18_v1 = vld [vmem:[%s184_s1 + $0x10] sm:$0xff]  ;;  %v14_v2 = vld [vmem:[%s185_s0] sm:$0xff] }
   0x2   :  { %124 = vmatprep.subr.mxu0 %v19_v0  ;;  %v17_v3 = vld [vmem:[%s184_s1 + $0x8] sm:$0xff]  ;;  %132 = vmatprep.mubr.msk.f32.mxu0 %vm27_vm0, %v14_v2  ;;  %v16_v4 = vld [vmem:[%s184_s1] sm:$0xff] }
   0x3   :  { %125 = vmatpush3.msra.mxu0 %v19_v0  ;;  %v15_v5 = vld [vmem:[%s185_s0 + $0x8] sm:$0xff]  ;;  %v115_v6 = vld [vmem:[%s186_s2] ss:$0 sm:$0xff] }
   0x4   :  { %126 = vmatprep.subr.mxu0 %v18_v1 }
   0x5   :  { %127 = vmatpush3.msra.mxu0 %v18_v1 }
   0x6   :  { %128 = vmatprep.subr.mxu0 %v17_v3 }
   0x7   :  { %129 = vmatpush3.msra.mxu0 %v17_v3 }
   0x8   :  { %130 = vmatprep.subr.mxu0 %v16_v4 }
   0x9   :  { %131 = vmatpush3.msra.mxu0 %v16_v4 }
   0xa   :  { %133 = vmatmul.mubr.msk.f32.vlgmr.msra.gmra.mxu0 %vm27_vm0, %v15_v5 }
  0xca   :  { %v134_v7 = vpop.f32.mrf.mxu0 }
  0xcb   :  { %v106_v8 = vadd.f32 %v134_v7, %v115_v6 }
  0xcc   :  { %v100_v9 = vpop.f32.mrf.mxu0 }
  0xcd   :  { %110 = vst [vmem:[%s187_s3 + $0x8] sm:$0xff] %v106_v8  ;;  %v101_v10 = vadd.f32 %v115_v6, %v100_v9 }
  0xcf   :  { %109 = vst [vmem:[%s187_s3] sm:$0xff] %v101_v10 }

// kernel: detector_forward.10
= control target key start
LH: loop header
LB: loop body
LE: loop exit
PB: predicated region body
PF: predicated region fallthrough
CT: control target
= control target key end

     0   :  { %8 = vsyncpa [#allocation3], 0  ;;  %s215_s12 = smov [#allocation2]   ;;  %s358_s0 = inlined_call_operand.vmem [shape: f32[16,160], index: 0, kind: input, shape index: {}]   ;;  %s359_s1 = inlined_call_operand.vmem [shape: f32[160,128], index: 1, kind: input, shape index: {}]   ;;  %s360_s2 = inlined_call_operand.hbm [shape: f32[1,128], index: 2, kind: input, shape index: {}]   ;;  %s361_s3 = inlined_call_operand.vmem [shape: f32[16,128], index: 3, kind: output, shape index: {}]  }
   0x1   :  { %s19_s13 = sshll.u32 %s215_s12, 4  ;;  %s20_s13 = int_to_ptr.vmem [resolvable:$true] %s19_s13 }
   0x2   :  { %s201_s14 = scalar_lea.vmem %s20_s13, 16  ;;  %s205_s15 = scalar_lea.vmem %s20_s13, 32 }
   0x3   :  { %p202_p0 = scmp.ne.s32.totalorder %s20_s13, %s201_s14  ;;  %p206_p1 = scmp.lt.s32.totalorder %s20_s13, %s20_s13 }
   0x4   :  { %p207_p2 = scmp.lt.s32.totalorder %s205_s15, %s201_s14 }
   0x6   :  { %p208_p3 = por %p207_p2, %p206_p1 }
   0x8   :  { %p209_p4 = pnand %p208_p3, %p202_p0 }
   0xa   :  { %212 = shalt.err (!%p209_p4)
}
   0xb   :  { %22 = dma.hbm_to_vmem [thread:$0]  %s360_s2, 16, %s20_s13, [#allocation3]  }
   0xc   :  { %213 = dma.done.wait [#allocation3], 16  }
   0xd   :  { %214 = vsyncadd [#allocation3], 4294967280  ;;  %v216_v0 = vmov 0.0   ;;  %v45_v1 = vld [vmem:[%s359_s1 + $0x78] sm:$0xff]  ;;  %v44_v2 = vld [vmem:[%s359_s1 + $0x70] sm:$0xff]  ;;  %vm57_vm0 = vcmask 261120  }
   0xe   :  { %64 = vmatprep.subr.mxu0 %v216_v0  ;;  %151 = vmatprep.subr.mxu1 %v216_v0  ;;  %v43_v3 = vld [vmem:[%s359_s1 + $0x68] sm:$0xff]  ;;  %v42_v4 = vld [vmem:[%s359_s1 + $0x60] sm:$0xff]  ;;  %v41_v5 = vld [vmem:[%s359_s1 + $0x58] sm:$0xff] }
   0xf   :  { %65 = vmatpush1.msra.mxu0 %v45_v1  ;;  %171 = vmatpush1.msra.mxu1 %v45_v1  ;;  %v40_v6 = vld [vmem:[%s359_s1 + $0x50] sm:$0xff]  ;;  %v39_v7 = vld [vmem:[%s359_s1 + $0x48] sm:$0xff]  ;;  %v38_v8 = vld [vmem:[%s359_s1 + $0x40] sm:$0xff] }
  0x10   :  { %66 = vmatprep.subr.mxu0 %v216_v0  ;;  %152 = vmatprep.subr.mxu1 %v216_v0  ;;  %v37_v9 = vld [vmem:[%s359_s1 + $0x38] sm:$0xff]  ;;  %v36_v10 = vld [vmem:[%s359_s1 + $0x30] sm:$0xff]  ;;  %v35_v11 = vld [vmem:[%s359_s1 + $0x28] sm:$0xff] }
  0x11   :  { %67 = vmatpush1.msra.mxu0 %v44_v2  ;;  %172 = vmatpush1.msra.mxu1 %v44_v2  ;;  %v34_v12 = vld [vmem:[%s359_s1 + $0x20] sm:$0xff]  ;;  %v33_v13 = vld [vmem:[%s359_s1 + $0x18] sm:$0xff]  ;;  %v32_v14 = vld [vmem:[%s359_s1 + $0x10] sm:$0xff] }
  0x12   :  { %68 = vmatprep.subr.mxu0 %v216_v0  ;;  %153 = vmatprep.subr.mxu1 %v216_v0  ;;  %v31_v15 = vld [vmem:[%s359_s1 + $0x8] sm:$0xff]  ;;  %v30_v16 = vld [vmem:[%s359_s1] sm:$0xff]  ;;  %v49_v17 = vld [vmem:[%s359_s1 + $0x98] sm:$0xff] }
  0x13   :  { %69 = vmatpush1.msra.mxu0 %v43_v3  ;;  %173 = vmatpush1.msra.mxu1 %v43_v3  ;;  %v48_v18 = vld [vmem:[%s359_s1 + $0x90] sm:$0xff]  ;;  %v47_v19 = vld [vmem:[%s359_s1 + $0x88] sm:$0xff]  ;;  %v46_v20 = vld [vmem:[%s359_s1 + $0x80] sm:$0xff] }
  0x14   :  { %70 = vmatprep.subr.mxu0 %v216_v0  ;;  %154 = vmatprep.subr.mxu1 %v216_v0  ;;  %v27_v21 = vld [vmem:[%s358_s0 + $0x8] sm:$0xff]  ;;  %v29_v22 = vld [vmem:[%s358_s0 + $0x18] sm:$0xff]  ;;  %v26_v23 = vld [vmem:[%s358_s0] sm:$0xff] }
  0x15   :  { %71 = vmatpush1.msra.mxu0 %v42_v4  ;;  %174 = vmatpush1.msra.mxu1 %v42_v4  ;;  %v28_v24 = vld [vmem:[%s358_s0 + $0x10] sm:$0xff]  ;;  %v148_v25 = vld [vmem:[#allocation2] ss:$0 sm:$0xff] }
  0x16   :  { %72 = vmatprep.subr.mxu0 %v216_v0  ;;  %155 = vmatprep.subr.mxu1 %v216_v0 }
  0x17   :  { %73 = vmatpush1.msra.mxu0 %v41_v5  ;;  %175 = vmatpush1.msra.mxu1 %v41_v5 }
  0x18   :  { %74 = vmatprep.subr.mxu0 %v216_v0  ;;  %156 = vmatprep.subr.mxu1 %v216_v0 }
  0x19   :  { %75 = vmatpush1.msra.mxu0 %v40_v6  ;;  %176 = vmatpush1.msra.mxu1 %v40_v6 }
  0x1a   :  { %76 = vmatprep.subr.mxu0 %v216_v0  ;;  %157 = vmatprep.subr.mxu1 %v216_v0 }
  0x1b   :  { %77 = vmatpush1.msra.mxu0 %v39_v7  ;;  %177 = vmatpush1.msra.mxu1 %v39_v7 }
  0x1c   :  { %78 = vmatprep.subr.mxu0 %v216_v0  ;;  %158 = vmatprep.subr.mxu1 %v216_v0 }
  0x1d   :  { %79 = vmatpush1.msra.mxu0 %v38_v8  ;;  %178 = vmatpush1.msra.mxu1 %v38_v8 }
  0x1e   :  { %80 = vmatprep.subr.mxu0 %v216_v0  ;;  %159 = vmatprep.subr.mxu1 %v216_v0 }
  0x1f   :  { %81 = vmatpush1.msra.mxu0 %v37_v9  ;;  %179 = vmatpush1.msra.mxu1 %v37_v9 }
  0x20   :  { %82 = vmatprep.subr.mxu0 %v216_v0  ;;  %160 = vmatprep.subr.mxu1 %v216_v0 }
  0x21   :  { %83 = vmatpush1.msra.mxu0 %v36_v10  ;;  %180 = vmatpush1.msra.mxu1 %v36_v10 }
  0x22   :  { %84 = vmatprep.subr.mxu0 %v216_v0  ;;  %161 = vmatprep.subr.mxu1 %v216_v0 }
  0x23   :  { %85 = vmatpush1.msra.mxu0 %v35_v11  ;;  %181 = vmatpush1.msra.mxu1 %v35_v11 }
  0x24   :  { %86 = vmatprep.subr.mxu0 %v216_v0  ;;  %162 = vmatprep.subr.mxu1 %v216_v0 }
  0x25   :  { %87 = vmatpush1.msra.mxu0 %v34_v12  ;;  %182 = vmatpush1.msra.mxu1 %v34_v12 }
  0x26   :  { %88 = vmatprep.subr.mxu0 %v216_v0  ;;  %163 = vmatprep.subr.mxu1 %v216_v0 }
  0x27   :  { %89 = vmatpush1.msra.mxu0 %v33_v13  ;;  %183 = vmatpush1.msra.mxu1 %v33_v13 }
  0x28   :  { %90 = vmatprep.subr.mxu0 %v216_v0  ;;  %164 = vmatprep.subr.mxu1 %v216_v0 }
  0x29   :  { %91 = vmatpush1.msra.mxu0 %v32_v14  ;;  %184 = vmatpush1.msra.mxu1 %v32_v14 }
  0x2a   :  { %92 = vmatprep.subr.mxu0 %v216_v0  ;;  %165 = vmatprep.subr.mxu1 %v216_v0 }
  0x2b   :  { %93 = vmatpush1.msra.mxu0 %v31_v15  ;;  %185 = vmatpush1.msra.mxu1 %v31_v15 }
  0x2c   :  { %94 = vmatprep.subr.mxu0 %v216_v0  ;;  %166 = vmatprep.subr.mxu1 %v216_v0 }
  0x2d   :  { %95 = vmatpush1.msra.mxu0 %v30_v16  ;;  %186 = vmatpush1.msra.mxu1 %v30_v16 }
  0x2e   :  { %120 = vmatprep.subr.mxu0 %v216_v0  ;;  %167 = vmatprep.subr.mxu1 %v216_v0 }
  0x2f   :  { %121 = vmatpush2.msra.mxu0 %v49_v17  ;;  %187 = vmatpush2.msra.mxu1 %v49_v17 }
  0x30   :  { %122 = vmatprep.subr.mxu0 %v216_v0  ;;  %168 = vmatprep.subr.mxu1 %v216_v0 }
  0x31   :  { %123 = vmatpush2.msra.mxu0 %v48_v18  ;;  %188 = vmatpush2.msra.mxu1 %v48_v18 }
  0x32   :  { %124 = vmatprep.subr.mxu0 %v216_v0  ;;  %169 = vmatprep.subr.mxu1 %v216_v0 }
  0x33   :  { %125 = vmatpush2.msra.mxu0 %v47_v19  ;;  %189 = vmatpush2.msra.mxu1 %v47_v19 }
  0x34   :  { %126 = vmatprep.subr.mxu0 %v216_v0  ;;  %170 = vmatprep.subr.mxu1 %v216_v0 }
  0x35   :  { %127 = vmatpush2.msra.mxu0 %v46_v20  ;;  %190 = vmatpush2.msra.mxu1 %v46_v20 }
  0x36   :  { %149 = vmatprep.mubr.msk.f32.mxu0 %vm57_vm0, %v27_v21  ;;  %150 = vmatprep.mubr.msk.f32.mxu1 %vm57_vm0, %v29_v22 }
  0x37   :  { %129 = vmatmul.mubr.f32.vlgmr.msra.gmra.mxu0 %v26_v23  ;;  %134 = vmatmul.mubr.f32.vlgmr.msra.gmra.mxu1 %v28_v24 }
  0xf7   :  { %v130_v26 = vpop.f32.mrf.mxu0  ;;  %v135_v27 = vpop.f32.mrf.mxu1 }
  0xf8   :  { %v131_v28 = vadd.f32 %v148_v25, %v130_v26  ;;  %v136_v29 = vadd.f32 %v148_v25, %v135_v27 }
  0xf9   :  { %v132_v30 = vpop.f32.mrf.mxu0  ;;  %v137_v31 = vpop.f32.mrf.mxu1 }
  0xfa   :  { %v139_v32 = vmax.f32 %v131_v28, 0.0  ;;  %v140_v33 = vmax.f32 %v136_v29, 0.0 }
  0xfc   :  { %141 = vst [vmem:[%s361_s3] sm:$0xff] %v139_v32  ;;  %142 = vst [vmem:[%s361_s3 + $0x8] sm:$0xff] %v140_v33 }
  0xfd   :  { %147 = vsyncpa [#allocation3], 1 }

// kernel: detector_forward.9
= control target key start
LH: loop header
LB: loop body
LE: loop exit
PB: predicated region body
PF: predicated region fallthrough
CT: control target
= control target key end

     0   :  { %19 = vsyncpa [#allocation4], 0  ;;  %s3007_s0 = inlined_call_operand.vmem [shape: f32[2,8,128], index: 0, kind: input, shape index: {}]   ;;  %s3008_s1 = inlined_call_operand.vmem [shape: f32[2,8,1], index: 1, kind: input, shape index: {}]   ;;  %s3009_s2 = inlined_call_operand.vmem [shape: f32[384,128], index: 2, kind: input, shape index: {}]   ;;  %s3010_s3 = inlined_call_operand.hbm [shape: f32[1,128], index: 3, kind: input, shape index: {}]   ;;  %s3011_s4 = inlined_call_operand.hbm [shape: f32[1,128], index: 4, kind: input, shape index: {}]   ;;  %s3012_s5 = inlined_call_operand.vmem [shape: f32[128,128], index: 5, kind: input, shape index: {}]   ;;  %s3013_s6 = inlined_call_operand.hbm [shape: f32[1,128], index: 6, kind: input, shape index: {}]   ;;  %s3014_s7 = inlined_call_operand.hbm [shape: f32[1,128], index: 7, kind: input, shape index: {}]   ;;  %s3015_s8 = inlined_call_operand.vmem [shape: f32[384,128], index: 8, kind: input, shape index: {}]   ;;  %s3016_s9 = inlined_call_operand.hbm [shape: f32[1,128], index: 9, kind: input, shape index: {}]   ;;  %s3017_s10 = inlined_call_operand.hbm [shape: f32[1,128], index: 10, kind: input, shape index: {}]   ;;  %s3018_s11 = inlined_call_operand.vmem [shape: f32[128,128], index: 11, kind: input, shape index: {}]   ;;  %s3019_s12 = inlined_call_operand.hbm [shape: f32[1,128], index: 12, kind: input, shape index: {}]   ;;  %s3020_s13 = inlined_call_operand.hbm [shape: f32[1,128], index: 13, kind: input, shape index: {}]   ;;  %s3021_s14 = inlined_call_operand.vmem [shape: f32[2,8,128], index: 14, kind: output, shape index: {}]  }
   0x1   :  { %20 = vsyncpa [#allocation6], 0 }
   0x2   :  { %21 = vsyncpa [#allocation9], 0 }
   0x3   :  { %22 = vsyncpa [#allocation12], 0 }
   0x4   :  { %23 = vsyncpa [#allocation15], 0  ;;  %s2340_s29 = smov 0  }
   0x5 LB: > { %s2254_s30 = smov [#allocation5]   ;;  %s2346_s16 = sadd.s32 4294967295, %s2252_s29   ;;  %s2252_s29 = sphi %s2340_s29, %s29_s29  }
   0x6   : > { %s391_s15 = sshll.u32 %s2254_s30, 4  ;;  %p1509_p0 = scmp.ge.s32.totalorder %s2252_s29, 1  ;;  %s392_s15 = int_to_ptr.vmem [resolvable:$true] %s391_s15 }
   0x7   : > { %p364_p1 = scmp.lt.s32.totalorder %s2252_s29, 3  ;;  %p3022_p2 = scmp.eq.s32.totalorder %s2346_s16, 0 }
   0x8   : > { %s2255_s18 = smov [#allocation8]   ;;  %s2256_s20 = smov [#allocation11]  }
   0x9   : > { %p2351_p3 = pnand %p1509_p0, %p364_p1  ;;  %s416_s19 = sshll.u32 %s2255_s18, 4  ;;  %s2357_s19 = int_to_ptr.vmem [resolvable:$true] %s416_s19 }
   0xa   : > { %s441_s21 = sshll.u32 %s2256_s20, 4  ;;  %s2257_s23 = smov [#allocation3]   ;;  %s2365_s21 = int_to_ptr.vmem [resolvable:$true] %s441_s21 }
   0xb   : > { %p1953_p4 = pneg %p2351_p3  ;;  %s380_s24 = sshll.u32 %s2257_s23, 4  ;;  %s2367_s24 = int_to_ptr.vmem [resolvable:$true] %s380_s24 }
   0xc   : > { %s2029_s26 = scalar_lea.vmem %s392_s15, 16  ;;  %s2036_s27 = scalar_lea.vmem %s392_s15, 32 }
   0xd   : > { %p2361_p5 = pnand %p3022_p2, %p1953_p4  ;;  %p2030_p7 = scmp.ne.s32.totalorder %s392_s15, %s2029_s26 }
   0xe   : > { %p2037_p10 = scmp.lt.s32.totalorder %s392_s15, %s392_s15  ;;  %p2038_p11 = scmp.lt.s32.totalorder %s2036_s27, %s2029_s26 }
   0xf   : > { %p2371_p6 = pneg %p2361_p5 }
  0x10   : > { %p2039_p12 = por %p2038_p11, %p2037_p10 }
  0x11   : > { %p2032_p8 = pnand %p2030_p7, %p2371_p6 }
  0x13   : > { %p2033_p9 = pneg %p2032_p8 }
  0x15   : > { %p2040_p13 = pnand %p2039_p12, %p2033_p9 }
  0x17   : > { %2043 = shalt.err (!%p2040_p13)
}
  0x18   : > { %1959 = dma.hbm_to_vmem [thread:$0]  (!%p2361_p5), %s3011_s4, 16, %s392_s15, [#allocation6]  }
  0x19   : > { %s2055_s18 = scalar_lea.vmem %s2357_s19, 16  ;;  %s2062_s20 = scalar_lea.vmem %s2357_s19, 32 }
  0x1a   : > { %p2056_p0 = scmp.ne.s32.totalorder %s2357_s19, %s2055_s18  ;;  %p2063_p7 = scmp.lt.s32.totalorder %s2357_s19, %s2357_s19 }
  0x1b   : > { %p2064_p8 = scmp.lt.s32.totalorder %s2062_s20, %s2055_s18 }
  0x1c   : > { %p2058_p1 = pnand %p2056_p0, %p2371_p6 }
  0x1d   : > { %p2065_p9 = por %p2064_p8, %p2063_p7 }
  0x1e   : > { %p2059_p4 = pneg %p2058_p1 }
  0x20   : > { %p2066_p10 = pnand %p2065_p9, %p2059_p4 }
  0x22   : > { %2069 = shalt.err (!%p2066_p10)
}
  0x23   : > { %1965 = dma.hbm_to_vmem [thread:$0]  (!%p2361_p5), %s3014_s7, 16, %s2357_s19, [#allocation9]  }
  0x24   : > { %s2081_s15 = scalar_lea.vmem %s2365_s21, 16  ;;  %s2088_s27 = scalar_lea.vmem %s2365_s21, 32 }
  0x25   : > { %p2082_p11 = scmp.ne.s32.totalorder %s2365_s21, %s2081_s15  ;;  %p2089_p0 = scmp.lt.s32.totalorder %s2365_s21, %s2365_s21 }
  0x26   : > { %p2090_p1 = scmp.lt.s32.totalorder %s2088_s27, %s2081_s15 }
  0x27   : > { %p2084_p12 = pnand %p2082_p11, %p2371_p6 }
  0x28   : > { %p2091_p4 = por %p2090_p1, %p2089_p0 }
  0x29   : > { %p2085_p13 = pneg %p2084_p12 }
  0x2b   : > { %p2092_p7 = pnand %p2091_p4, %p2085_p13 }
  0x2d   : > { %2095 = shalt.err (!%p2092_p7)
}
  0x2e   : > { %1971 = dma.hbm_to_vmem [thread:$0]  (!%p2361_p5), %s3017_s10, 16, %s2365_s21, [#allocation12]  }
  0x2f   : > { %s2107_s19 = scalar_lea.vmem %s2367_s24, 16  ;;  %s2114_s18 = scalar_lea.vmem %s2367_s24, 32 }
  0x30   : > { %p2108_p8 = scmp.ne.s32.totalorder %s2367_s24, %s2107_s19  ;;  %p2115_p11 = scmp.lt.s32.totalorder %s2367_s24, %s2367_s24 }
  0x31   : > { %p2116_p12 = scmp.lt.s32.totalorder %s2114_s18, %s2107_s19 }
  0x32   : > { %p2110_p9 = pnand %p2108_p8, %p2371_p6 }
  0x33   : > { %p2117_p13 = por %p2116_p12, %p2115_p11 }
  0x34   : > { %p2111_p10 = pneg %p2110_p9 }
  0x36   : > { %p2118_p0 = pnand %p2117_p13, %p2111_p10 }
  0x38   : > { %2121 = shalt.err (!%p2118_p0)
}
  0x39   : > { %1956 = dma.hbm_to_vmem [thread:$0]  (!%p2361_p5), %s3010_s3, 16, %s2367_s24, [#allocation4]  }
  0x3a   : > { %s2258_s21 = smov [#allocation7]   ;;  %s2259_s15 = smov [#allocation10]  }
  0x3b   : > { %s405_s26 = sshll.u32 %s2258_s21, 4  ;;  %s430_s27 = sshll.u32 %s2259_s15, 4  ;;  %s406_s26 = int_to_ptr.vmem [resolvable:$true] %s405_s26  ;;  %s431_s27 = int_to_ptr.vmem [resolvable:$true] %s430_s27 }
  0x3c   : > { %s2133_s28 = scalar_lea.vmem %s406_s26, 16  ;;  %s2140_s30 = scalar_lea.vmem %s406_s26, 32 }
  0x3d   : > { %p2134_p1 = scmp.ne.s32.totalorder %s406_s26, %s2133_s28  ;;  %p2141_p8 = scmp.lt.s32.totalorder %s406_s26, %s406_s26 }
  0x3e   : > { %p2142_p9 = scmp.lt.s32.totalorder %s2140_s30, %s2133_s28 }
  0x3f   : > { %p2136_p4 = pnand %p2134_p1, %p2371_p6 }
  0x40   : > { %p2143_p10 = por %p2142_p9, %p2141_p8 }
  0x41   : > { %p2137_p7 = pneg %p2136_p4 }
  0x43   : > { %p2144_p11 = pnand %p2143_p10, %p2137_p7 }
  0x45   : > { %2147 = shalt.err (!%p2144_p11)
}
  0x46   : > { %1962 = dma.hbm_to_vmem [thread:$0]  (!%p2361_p5), %s3013_s6, 16, %s406_s26, [#allocation6]  }
  0x47   : > { %s2159_s18 = scalar_lea.vmem %s431_s27, 16  ;;  %s2166_s20 = scalar_lea.vmem %s431_s27, 32 }
  0x48   : > { %p2160_p12 = scmp.ne.s32.totalorder %s431_s27, %s2159_s18  ;;  %p2167_p1 = scmp.lt.s32.totalorder %s431_s27, %s431_s27 }
  0x49   : > { %p2168_p4 = scmp.lt.s32.totalorder %s2166_s20, %s2159_s18 }
  0x4a   : > { %p2162_p13 = pnand %p2160_p12, %p2371_p6 }
  0x4b   : > { %p2169_p2 = por %p2168_p4, %p2167_p1 }
  0x4c   : > { %p2163_p0 = pneg %p2162_p13 }
  0x4e   : > { %p2170_p8 = pnand %p2169_p2, %p2163_p0 }
  0x50   : > { %2173 = shalt.err (!%p2170_p8)
}
  0x51   : > { %1968 = dma.hbm_to_vmem [thread:$0]  (!%p2361_p5), %s3016_s9, 16, %s431_s27, [#allocation9]  }
  0x52   : > { %s2260_s26 = smov [#allocation13]   ;;  %s2261_s28 = smov [#allocation14]  }
  0x53   : > { %s455_s15 = sshll.u32 %s2260_s26, 4  ;;  %s466_s30 = sshll.u32 %s2261_s28, 4  ;;  %s456_s15 = int_to_ptr.vmem [resolvable:$true] %s455_s15  ;;  %s467_s30 = int_to_ptr.vmem [resolvable:$true] %s466_s30 }
  0x54   : > { %s2185_s19 = scalar_lea.vmem %s456_s15, 16  ;;  %s2192_s24 = scalar_lea.vmem %s456_s15, 32 }
  0x55   : > { %p2186_p7 = scmp.ne.s32.totalorder %s456_s15, %s2185_s19  ;;  %p2193_p2 = scmp.lt.s32.totalorder %s456_s15, %s456_s15 }
  0x56   : > { %p2194_p11 = scmp.lt.s32.totalorder %s2192_s24, %s2185_s19 }
  0x57   : > { %p2188_p9 = pnand %p2186_p7, %p2371_p6 }
  0x58   : > { %p2195_p12 = por %p2194_p11, %p2193_p2 }
  0x59   : > { %p2189_p10 = pneg %p2188_p9 }
  0x5b   : > { %p2196_p13 = pnand %p2195_p12, %p2189_p10 }
  0x5d   : > { %2199 = shalt.err (!%p2196_p13)
}
  0x5e   : > { %1974 = dma.hbm_to_vmem [thread:$0]  (!%p2361_p5), %s3019_s12, 16, %s456_s15, [#allocation12]  }
  0x5f   : > { %s2211_s20 = scalar_lea.vmem %s467_s30, 16  ;;  %s2218_s23 = scalar_lea.vmem %s467_s30, 32 }
  0x60   : > { %p2212_p0 = scmp.ne.s32.totalorder %s467_s30, %s2211_s20  ;;  %p2219_p8 = scmp.lt.s32.totalorder %s467_s30, %s467_s30 }
  0x61   : > { %p2220_p7 = scmp.lt.s32.totalorder %s2218_s23, %s2211_s20 }
  0x62   : > { %p2214_p1 = pnand %p2212_p0, %p2371_p6 }
  0x63   : > { %p2221_p9 = por %p2220_p7, %p2219_p8 }
  0x64   : > { %p2215_p4 = pneg %p2214_p1 }
  0x66   : > { %p2222_p2 = pnand %p2221_p9, %p2215_p4 }
  0x68   : > { %2225 = shalt.err (!%p2222_p2)
}
  0x69   : > { %1977 = dma.hbm_to_vmem [thread:$0]  (!%p2361_p5), %s3020_s13, 16, %s467_s30, [#allocation15]  }
  0x6a   : > { %493 = sbr.rel (%p2351_p3) target bundleno = 1511 (0x5e7), region = 76  ;;  %p3026_p10 = scmp.eq.s32.totalorder (!%p2351_p3), %s2346_s16, 0 }
  0x6f   : > { %2231 = dma.done.wait (%p3026_p10), [#allocation4], 16   ;;  %p3027_p6 = pmov %p3026_p10 }
  0x71   : > { %2233 = vsyncadd (%p3027_p6), [#allocation4], 4294967280  ;;  %p3028_p11 = pmov %p3027_p6 }
  0x72   : > { %p3029_p12 = pmov %p3027_p6 }
  0x73   : > { %2235 = dma.done.wait (%p3028_p11), [#allocation6], 32  }
  0x74   : > { %2237 = vsyncadd (%p3029_p12), [#allocation6], 4294967264  ;;  %p3030_p13 = pmov %p3027_p6 }
  0x75   : > { %p3031_p5 = pmov %p3027_p6 }
  0x76   : > { %2239 = dma.done.wait (%p3030_p13), [#allocation9], 32  }
  0x77   : > { %2241 = vsyncadd (%p3031_p5), [#allocation9], 4294967264  ;;  %p3032_p3 = pmov %p3031_p5 }
  0x79   : > { %2243 = dma.done.wait (%p3032_p3), [#allocation12], 32   ;;  %p3033_p0 = pmov %p3032_p3 }
  0x7b   : > { %2245 = vsyncadd (%p3033_p0), [#allocation12], 4294967264  ;;  %p3034_p1 = pmov %p3033_p0 }
  0x7c   : > { %p3035_p4 = pmov %p3033_p0 }
  0x7d   : > { %2247 = dma.done.wait (%p3034_p1), [#allocation15], 16  }
  0x7e   : > { %2249 = vsyncadd (%p3035_p4), [#allocation15], 4294967280  ;;  %v970_v0 = vlaneseq  ;;  %p569_p8 = scmp.lt.s32.totalorder %s2346_s16, 1  ;;  %v2262_v1 = vmov 0   ;;  %v2263_v2 = vmov 0.0   ;;  %vm2264_vm0 = vmmov 0  }
  0x7f   : > { %2013 = vset.pattern.permute.xlu0 %v2262_v1  ;;  %1711 = vmatprep.subr.mxu1 %v2263_v2  ;;  %589 = vst [vmem:[#allocation2] sm:$0xff] %v2263_v2  ;;  %591 = vst [vmem:[#allocation2 + $0x10] sm:$0xff] %v2263_v2  ;;  %v1026_v4 = vld [vmem:[#allocation11] sm:$0x1]  ;;  %v623_v7 = vld [vmem:[%s3009_s2 + $0xf8] sm:$0xff] }
  0x80   : > { %s3037_s16 = smov (!%p569_p8, %s2346_s16), 1  ;;  %v2477_v3 = vshrl.u32 %v970_v0, 7  ;;  %1743 = vmatprep.mubr.msk.f32.mxu1 %vm2264_vm0, %v2263_v2  ;;  %vm1352_vm1 = vcmp.gt.f32.partialorder %v1026_v4, 0.0  ;;  %v607_v8 = vld [vmem:[%s3009_s2 + $0x78] sm:$0xff]  ;;  %1539 = vmatprep.subr.mxu0 %v623_v7  ;;  %v622_v11 = vld [vmem:[%s3009_s2 + $0xf0] sm:$0xff]  ;;  %v621_v15 = vld [vmem:[%s3009_s2 + $0xe8] sm:$0xff] }
  0x81   : > { %s2479_s17 = sshll.u32 %s3037_s16, 3  ;;  %v639_v9 = vld [vmem:[%s3009_s2 + $0x178] sm:$0xff]  ;;  %v1354_v10 = vsel %vm1352_vm1, 1, %v2262_v1  ;;  %v606_v12 = vld [vmem:[%s3009_s2 + $0x70] sm:$0xff]  ;;  %1540 = vmatpush3.msra.mxu0 %v607_v8  ;;  %v637_v16 = vld [vmem:[%s3009_s2 + $0x168] sm:$0xff] }
  0x82   : > { %s576_s15 = scalar_lea.vmem %s3008_s1, %s2479_s17  ;;  %v972_v6 = vsub.s32 0, %v2477_v3  ;;  %1712 = vmatpush3.msra.mxu1 %v639_v9  ;;  %v638_v13 = vld [vmem:[%s3009_s2 + $0x170] sm:$0xff]  ;;  %1541 = vmatprep.subr.mxu0 %v622_v11  ;;  %v605_v17 = vld [vmem:[%s3009_s2 + $0x68] sm:$0xff]  ;;  %v620_v18 = vld [vmem:[%s3009_s2 + $0xe0] sm:$0xff]  ;;  %s572_s28 = scalar_lea.vmem %s3007_s0, %s2479_s17 }
  0x83   : > { %v581_v5 = vld [vmem:[%s576_s15] sm:$0xff]  ;;  %1713 = vmatprep.subr.mxu1 %v2263_v2  ;;  %1542 = vmatpush3.msra.mxu0 %v606_v12  ;;  %v619_v21 = vld [vmem:[%s3009_s2 + $0xd8] sm:$0xff]  ;;  %v618_v24 = vld [vmem:[%s3009_s2 + $0xd0] sm:$0xff]  ;;  %s580_s21 = scalar_lea.vmem %s3021_s14, %s2479_s17 }
  0x84   : > { %585 = vperm.xlu0 %2013, %v581_v5   ;;  %v2509_v14 = vrot.slane %v1354_v10, %v972_v6  ;;  %1714 = vmatpush3.msra.mxu1 %v638_v13  ;;  %v636_v19 = vld [vmem:[%s3009_s2 + $0x160] sm:$0xff]  ;;  %v635_v22 = vld [vmem:[%s3009_s2 + $0x158] sm:$0xff]  ;;  %v634_v25 = vld [vmem:[%s3009_s2 + $0x150] sm:$0xff] }
  0x85   : > { %1715 = vmatprep.subr.mxu1 %v2263_v2  ;;  %1543 = vmatprep.subr.mxu0 %v621_v15  ;;  %v604_v20 = vld [vmem:[%s3009_s2 + $0x60] sm:$0xff]  ;;  %v603_v23 = vld [vmem:[%s3009_s2 + $0x58] sm:$0xff]  ;;  %v602_v26 = vld [vmem:[%s3009_s2 + $0x50] sm:$0xff] }
  0x86   : > { %1716 = vmatpush3.msra.mxu1 %v637_v16  ;;  %1544 = vmatpush3.msra.mxu0 %v605_v17  ;;  %v617_v27 = vld [vmem:[%s3009_s2 + $0xc8] sm:$0xff]  ;;  %v616_v30 = vld [vmem:[%s3009_s2 + $0xc0] sm:$0xff]  ;;  %v615_v33 = vld [vmem:[%s3009_s2 + $0xb8] sm:$0xff]  ;;  %vm1359_vm4 = vcmp.eq.s32.totalorder %v2509_v14, 1 }
  0x87   : > { %1717 = vmatprep.subr.mxu1 %v2263_v2  ;;  %1545 = vmatprep.subr.mxu0 %v620_v18  ;;  %v633_v28 = vld [vmem:[%s3009_s2 + $0x148] sm:$0xff]  ;;  %v632_v31 = vld [vmem:[%s3009_s2 + $0x140] sm:$0xff]  ;;  %v631_v34 = vld [vmem:[%s3009_s2 + $0x138] sm:$0xff] }
  0x88   : > { %1718 = vmatpush3.msra.mxu1 %v636_v19  ;;  %1546 = vmatpush3.msra.mxu0 %v604_v20  ;;  %v601_v29 = vld [vmem:[%s3009_s2 + $0x48] sm:$0xff]  ;;  %v600_v32 = vld [vmem:[%s3009_s2 + $0x40] sm:$0xff]  ;;  %v599_v35 = vld [vmem:[%s3009_s2 + $0x38] sm:$0xff] }
  0x89   : > { %1719 = vmatprep.subr.mxu1 %v2263_v2  ;;  %1547 = vmatprep.subr.mxu0 %v619_v21  ;;  %v614_v36 = vld [vmem:[%s3009_s2 + $0xb0] sm:$0xff]  ;;  %v613_v39 = vld [vmem:[%s3009_s2 + $0xa8] sm:$0xff]  ;;  %v612_v42 = vld [vmem:[%s3009_s2 + $0xa0] sm:$0xff] }
  0x8a   : > { %1720 = vmatpush3.msra.mxu1 %v635_v22  ;;  %1548 = vmatpush3.msra.mxu0 %v603_v23  ;;  %v630_v37 = vld [vmem:[%s3009_s2 + $0x130] sm:$0xff]  ;;  %v629_v40 = vld [vmem:[%s3009_s2 + $0x128] sm:$0xff]  ;;  %v628_v43 = vld [vmem:[%s3009_s2 + $0x120] sm:$0xff] }
  0x8b   : > { %1721 = vmatprep.subr.mxu1 %v2263_v2  ;;  %1549 = vmatprep.subr.mxu0 %v618_v24  ;;  %v598_v38 = vld [vmem:[%s3009_s2 + $0x30] sm:$0xff]  ;;  %v597_v41 = vld [vmem:[%s3009_s2 + $0x28] sm:$0xff]  ;;  %v596_v44 = vld [vmem:[%s3009_s2 + $0x20] sm:$0xff] }
  0x8c   : > { %1722 = vmatpush3.msra.mxu1 %v634_v25  ;;  %1550 = vmatpush3.msra.mxu0 %v602_v26  ;;  %v611_v45 = vld [vmem:[%s3009_s2 + $0x98] sm:$0xff]  ;;  %v610_v48 = vld [vmem:[%s3009_s2 + $0x90] sm:$0xff]  ;;  %v609_v51 = vld [vmem:[%s3009_s2 + $0x88] sm:$0xff] }
  0x8d   : > { %1723 = vmatprep.subr.mxu1 %v2263_v2  ;;  %1551 = vmatprep.subr.mxu0 %v617_v27  ;;  %v627_v46 = vld [vmem:[%s3009_s2 + $0x118] sm:$0xff]  ;;  %v626_v49 = vld [vmem:[%s3009_s2 + $0x110] sm:$0xff]  ;;  %v625_v52 = vld [vmem:[%s3009_s2 + $0x108] sm:$0xff] }
  0x8e   : > { %1724 = vmatpush3.msra.mxu1 %v633_v28  ;;  %1552 = vmatpush3.msra.mxu0 %v601_v29  ;;  %v595_v47 = vld [vmem:[%s3009_s2 + $0x18] sm:$0xff]  ;;  %v594_v50 = vld [vmem:[%s3009_s2 + $0x10] sm:$0xff]  ;;  %v593_v53 = vld [vmem:[%s3009_s2 + $0x8] sm:$0xff] }
  0x8f   : > { %1725 = vmatprep.subr.mxu1 %v2263_v2  ;;  %1553 = vmatprep.subr.mxu0 %v616_v30  ;;  %v608_v54 = vld [vmem:[%s3009_s2 + $0x80] sm:$0xff]  ;;  %v657_v60 = vld [vmem:[%s3012_s5 + $0x78] sm:$0xff]  ;;  %v656_v63 = vld [vmem:[%s3012_s5 + $0x70] sm:$0xff] }
  0x90   : > { %1726 = vmatpush3.msra.mxu1 %v632_v31  ;;  %1554 = vmatpush3.msra.mxu0 %v600_v32  ;;  %v624_v55 = vld [vmem:[%s3009_s2 + $0x100] sm:$0xff]  ;;  %v655_v0 = vld [vmem:[%s3012_s5 + $0x68] sm:$0xff]  ;;  %v653_v5 = vld [vmem:[%s3012_s5 + $0x58] sm:$0xff] }
  0x91   : > { %1727 = vmatprep.subr.mxu1 %v2263_v2  ;;  %1555 = vmatprep.subr.mxu0 %v615_v33  ;;  %v592_v56 = vld [vmem:[%s3009_s2] sm:$0xff]  ;;  %v652_v7 = vld [vmem:[%s3012_s5 + $0x50] sm:$0xff]  ;;  %v651_v8 = vld [vmem:[%s3012_s5 + $0x48] sm:$0xff] }
  0x92   : > { %1728 = vmatpush3.msra.mxu1 %v631_v34  ;;  %1556 = vmatpush3.msra.mxu0 %v599_v35  ;;  %v582_v57 = vld [vmem:[%s572_s28] sm:$0xff]  ;;  %v649_v10 = vld [vmem:[%s3012_s5 + $0x38] sm:$0xff]  ;;  %v648_v11 = vld [vmem:[%s3012_s5 + $0x30] sm:$0xff] }
  0x93   : > { %1729 = vmatprep.subr.mxu1 %v2263_v2  ;;  %1557 = vmatprep.subr.mxu0 %v614_v36  ;;  %v654_v4 = vld [vmem:[%s3012_s5 + $0x60] sm:$0xff]  ;;  %v647_v12 = vld [vmem:[%s3012_s5 + $0x28] sm:$0xff]  ;;  %v645_v15 = vld [vmem:[%s3012_s5 + $0x18] sm:$0xff] }
  0x94   : > { %1730 = vmatpush3.msra.mxu1 %v630_v37  ;;  %1558 = vmatpush3.msra.mxu0 %v598_v38  ;;  %v650_v9 = vld [vmem:[%s3012_s5 + $0x40] sm:$0xff]  ;;  %v644_v16 = vld [vmem:[%s3012_s5 + $0x10] sm:$0xff]  ;;  %v643_v17 = vld [vmem:[%s3012_s5 + $0x8] sm:$0xff] }
  0x95   : > { %1731 = vmatprep.subr.mxu1 %v2263_v2  ;;  %1559 = vmatprep.subr.mxu0 %v613_v39  ;;  %v646_v13 = vld [vmem:[%s3012_s5 + $0x20] sm:$0xff]  ;;  %v1531_v21 = vld [vmem:[#allocation3] ss:$0 sm:$0xff]  ;;  %v1007_v34 = vld [vmem:[%s3015_s8 + $0xf0] sm:$0xff] }
  0x96   : > { %1732 = vmatpush3.msra.mxu1 %v629_v40  ;;  %1560 = vmatpush3.msra.mxu0 %v597_v41  ;;  %v642_v18 = vld [vmem:[%s3012_s5] sm:$0xff]  ;;  %v1008_v31 = vld [vmem:[%s3015_s8 + $0xf8] sm:$0xff]  ;;  %v991_v35 = vld [vmem:[%s3015_s8 + $0x70] sm:$0xff] }
  0x97   : > { %1733 = vmatprep.subr.mxu1 %v2263_v2  ;;  %1561 = vmatprep.subr.mxu0 %v612_v42  ;;  %v992_v32 = vld [vmem:[%s3015_s8 + $0x78] sm:$0xff]  ;;  %v1023_v36 = vld [vmem:[%s3015_s8 + $0x170] sm:$0xff]  ;;  %v1006_v37 = vld [vmem:[%s3015_s8 + $0xe8] sm:$0xff] }
  0x98   : > { %1734 = vmatpush3.msra.mxu1 %v628_v43  ;;  %1562 = vmatpush3.msra.mxu0 %v596_v44  ;;  %v1024_v33 = vld [vmem:[%s3015_s8 + $0x178] sm:$0xff]  ;;  %v1022_v38 = vld [vmem:[%s3015_s8 + $0x168] sm:$0xff]  ;;  %v1005_v40 = vld [vmem:[%s3015_s8 + $0xe0] sm:$0xff] }
  0x99   : > { %1735 = vmatprep.subr.mxu1 %v2263_v2  ;;  %1563 = vmatprep.subr.mxu0 %v611_v45  ;;  %v990_v39 = vld [vmem:[%s3015_s8 + $0x68] sm:$0xff]  ;;  %v1021_v41 = vld [vmem:[%s3015_s8 + $0x160] sm:$0xff]  ;;  %v1004_v43 = vld [vmem:[%s3015_s8 + $0xd8] sm:$0xff] }
  0x9a   : > { %1736 = vmatpush3.msra.mxu1 %v627_v46  ;;  %1564 = vmatpush3.msra.mxu0 %v595_v47  ;;  %v989_v42 = vld [vmem:[%s3015_s8 + $0x60] sm:$0xff]  ;;  %v1020_v44 = vld [vmem:[%s3015_s8 + $0x158] sm:$0xff]  ;;  %v1003_v46 = vld [vmem:[%s3015_s8 + $0xd0] sm:$0xff] }
  0x9b   : > { %1737 = vmatprep.subr.mxu1 %v2263_v2  ;;  %1565 = vmatprep.subr.mxu0 %v610_v48  ;;  %v988_v45 = vld [vmem:[%s3015_s8 + $0x58] sm:$0xff]  ;;  %v1019_v47 = vld [vmem:[%s3015_s8 + $0x150] sm:$0xff] }
  0x9c   : > { %1738 = vmatpush3.msra.mxu1 %v626_v49  ;;  %1566 = vmatpush3.msra.mxu0 %v594_v50  ;;  %v987_v48 = vld [vmem:[%s3015_s8 + $0x50] sm:$0xff]  ;;  %v1002_v49 = vld [vmem:[%s3015_s8 + $0xc8] sm:$0xff] }
  0x9d   : > { %1739 = vmatprep.subr.mxu1 %v2263_v2  ;;  %1567 = vmatprep.subr.mxu0 %v609_v51  ;;  %v1018_v50 = vld [vmem:[%s3015_s8 + $0x148] sm:$0xff]  ;;  %v1041_v3 = vld [vmem:[%s3018_s11 + $0x70] sm:$0xff] }
  0x9e   : > { %1740 = vmatpush3.msra.mxu1 %v625_v52  ;;  %1568 = vmatpush3.msra.mxu0 %v593_v53  ;;  %v986_v51 = vld [vmem:[%s3015_s8 + $0x48] sm:$0xff]  ;;  %v1001_v52 = vld [vmem:[%s3015_s8 + $0xc0] sm:$0xff] }
  0x9f   : > { %1741 = vmatprep.subr.mxu1 %v2263_v2  ;;  %1569 = vmatprep.subr.mxu0 %v608_v54  ;;  %v1017_v53 = vld [vmem:[%s3015_s8 + $0x140] sm:$0xff] }
  0xa0   : > { %1742 = vmatpush3.msra.mxu1 %v624_v55  ;;  %1570 = vmatpush3.msra.mxu0 %v592_v56  ;;  %v985_v54 = vld [vmem:[%s3015_s8 + $0x40] sm:$0xff]  ;;  %v1000_v55 = vld [vmem:[%s3015_s8 + $0xb8] sm:$0xff] }
  0xa1   : > { %1781 = vmatprep.subr.mxu1 %v2263_v2  ;;  %1746 = vmatprep.subr.mxu0 %v2263_v2  ;;  %v1016_v56 = vld [vmem:[%s3015_s8 + $0x138] sm:$0xff] }
  0xff   : > { %v2658_v58 = vpop.permute.xlu0 %585 }
 0x100   : > { %v588_v59 = vmul.f32 %v2658_v58, %v582_v57  ;;  %v984_v57 = vld [vmem:[%s3015_s8 + $0x38] sm:$0xff] }
 0x102   : > { %660 = vst [vmem:[#allocation2 + $0x8] sm:$0xff] %v588_v59  ;;  %733 = vmatprep.mubr.f32.mxu0 %v588_v59  ;;  %v999_v59 = vld [vmem:[%s3015_s8 + $0xb0] sm:$0xff] }
 0x109   : > { %v661_v61 = vld [vmem:[#allocation2 + $0x7] sm:$0xff] }
 0x10a   : > { %v662_v62 = vld [vmem:[#allocation2 + $0x9] sm:$0xff]  ;;  %734 = vmatmul.mubr.f32.vlgmr.msra.gmra.mxu0 %v661_v61 }
 0x10b   : > { %1744 = vmatmul.mubr.f32.vlgmr.msra.gmra.mxu1 %v662_v62  ;;  %1747 = vmatpush3.msra.mxu0 %v657_v60  ;;  %v983_v61 = vld [vmem:[%s3015_s8 + $0x30] sm:$0xff]  ;;  %v998_v62 = vld [vmem:[%s3015_s8 + $0xa8] sm:$0xff] }
 0x10c   : > { %1778 = vmatprep.mubr.msk.f32.mxu0 %vm2264_vm0, %v2263_v2  ;;  %1748 = vmatprep.subr.mxu0 %v2263_v2 }
 0x10d   : > { %1782 = vmatpush3.msra.mxu1 %v657_v60  ;;  %1749 = vmatpush3.msra.mxu0 %v656_v63  ;;  %v1015_v60 = vld [vmem:[%s3015_s8 + $0x130] sm:$0xff] }
 0x10e   : > { %1783 = vmatprep.subr.mxu1 %v2263_v2  ;;  %1750 = vmatprep.subr.mxu0 %v2263_v2 }
 0x10f   : > { %1784 = vmatpush3.msra.mxu1 %v656_v63  ;;  %1751 = vmatpush3.msra.mxu0 %v655_v0  ;;  %v1014_v63 = vld [vmem:[%s3015_s8 + $0x128] sm:$0xff] }
 0x110   : > { %1785 = vmatprep.subr.mxu1 %v2263_v2  ;;  %1752 = vmatprep.subr.mxu0 %v2263_v2 }
 0x111   : > { %1786 = vmatpush3.msra.mxu1 %v655_v0  ;;  %1753 = vmatpush3.msra.mxu0 %v654_v4  ;;  %v982_v0 = vld [vmem:[%s3015_s8 + $0x28] sm:$0xff] }
 0x112   : > { %1787 = vmatprep.subr.mxu1 %v2263_v2  ;;  %1754 = vmatprep.subr.mxu0 %v2263_v2 }
 0x113   : > { %1788 = vmatpush3.msra.mxu1 %v654_v4  ;;  %1755 = vmatpush3.msra.mxu0 %v653_v5  ;;  %v997_v4 = vld [vmem:[%s3015_s8 + $0xa0] sm:$0xff] }
 0x114   : > { %1789 = vmatprep.subr.mxu1 %v2263_v2  ;;  %1756 = vmatprep.subr.mxu0 %v2263_v2 }
 0x115   : > { %1790 = vmatpush3.msra.mxu1 %v653_v5  ;;  %1757 = vmatpush3.msra.mxu0 %v652_v7  ;;  %v1013_v5 = vld [vmem:[%s3015_s8 + $0x120] sm:$0xff] }
 0x116   : > { %1791 = vmatprep.subr.mxu1 %v2263_v2  ;;  %1758 = vmatprep.subr.mxu0 %v2263_v2 }
 0x117   : > { %1792 = vmatpush3.msra.mxu1 %v652_v7  ;;  %1759 = vmatpush3.msra.mxu0 %v651_v8  ;;  %v981_v7 = vld [vmem:[%s3015_s8 + $0x20] sm:$0xff] }
 0x118   : > { %1793 = vmatprep.subr.mxu1 %v2263_v2  ;;  %1760 = vmatprep.subr.mxu0 %v2263_v2 }
 0x119   : > { %1794 = vmatpush3.msra.mxu1 %v651_v8  ;;  %1761 = vmatpush3.msra.mxu0 %v650_v9  ;;  %v996_v8 = vld [vmem:[%s3015_s8 + $0x98] sm:$0xff] }
 0x11a   : > { %1795 = vmatprep.subr.mxu1 %v2263_v2  ;;  %1762 = vmatprep.subr.mxu0 %v2263_v2 }
 0x11b   : > { %1796 = vmatpush3.msra.mxu1 %v650_v9  ;;  %1763 = vmatpush3.msra.mxu0 %v649_v10  ;;  %v980_v9 = vld [vmem:[%s3015_s8 + $0x18] sm:$0xff] }
 0x11c   : > { %1797 = vmatprep.subr.mxu1 %v2263_v2  ;;  %1764 = vmatprep.subr.mxu0 %v2263_v2 }
 0x11d   : > { %1798 = vmatpush3.msra.mxu1 %v649_v10  ;;  %1765 = vmatpush3.msra.mxu0 %v648_v11  ;;  %v1012_v10 = vld [vmem:[%s3015_s8 + $0x118] sm:$0xff] }
 0x11e   : > { %1799 = vmatprep.subr.mxu1 %v2263_v2  ;;  %1766 = vmatprep.subr.mxu0 %v2263_v2 }
 0x11f   : > { %1800 = vmatpush3.msra.mxu1 %v648_v11  ;;  %1767 = vmatpush3.msra.mxu0 %v647_v12  ;;  %v995_v11 = vld [vmem:[%s3015_s8 + $0x90] sm:$0xff] }
 0x120   : > { %1801 = vmatprep.subr.mxu1 %v2263_v2  ;;  %1768 = vmatprep.subr.mxu0 %v2263_v2 }
 0x121   : > { %1802 = vmatpush3.msra.mxu1 %v647_v12  ;;  %1813 = vmatprep.mubr.msk.f32.mxu1 %vm2264_vm0, %v2263_v2  ;;  %v979_v12 = vld [vmem:[%s3015_s8 + $0x10] sm:$0xff] }
 0x122   : > { %1803 = vmatprep.subr.mxu1 %v2263_v2  ;;  %1769 = vmatpush3.msra.mxu0 %v646_v13 }
 0x123   : > { %1804 = vmatpush3.msra.mxu1 %v646_v13  ;;  %1770 = vmatprep.subr.mxu0 %v2263_v2  ;;  %v1011_v13 = vld [vmem:[%s3015_s8 + $0x110] sm:$0xff] }
 0x124   : > { %1805 = vmatprep.subr.mxu1 %v2263_v2  ;;  %1771 = vmatpush3.msra.mxu0 %v645_v15 }
 0x125   : > { %1806 = vmatpush3.msra.mxu1 %v645_v15  ;;  %1772 = vmatprep.subr.mxu0 %v2263_v2  ;;  %v994_v15 = vld [vmem:[%s3015_s8 + $0x88] sm:$0xff] }
 0x126   : > { %1807 = vmatprep.subr.mxu1 %v2263_v2  ;;  %1773 = vmatpush3.msra.mxu0 %v644_v16 }
 0x127   : > { %1808 = vmatpush3.msra.mxu1 %v644_v16  ;;  %1774 = vmatprep.subr.mxu0 %v2263_v2  ;;  %v978_v16 = vld [vmem:[%s3015_s8 + $0x8] sm:$0xff] }
 0x128   : > { %1809 = vmatprep.subr.mxu1 %v2263_v2  ;;  %1775 = vmatpush3.msra.mxu0 %v643_v17 }
 0x129   : > { %1810 = vmatpush3.msra.mxu1 %v643_v17  ;;  %1776 = vmatprep.subr.mxu0 %v2263_v2  ;;  %v1010_v17 = vld [vmem:[%s3015_s8 + $0x108] sm:$0xff] }
 0x12a   : > { %1811 = vmatprep.subr.mxu1 %v2263_v2  ;;  %1777 = vmatpush3.msra.mxu0 %v642_v18 }
 0x12b   : > { %1812 = vmatpush3.msra.mxu1 %v642_v18  ;;  %1625 = vmatprep.subr.mxu0 %v1008_v31  ;;  %v993_v18 = vld [vmem:[%s3015_s8 + $0x80] sm:$0xff]  ;;  %v1533_v31 = vld [vmem:[#allocation8] ss:$0 sm:$0xff] }
 0x12c   : > { %1816 = vmatprep.subr.mxu1 %v2263_v2 }
 0x1ca   : > { %v1571_v19 = vpop.f32.mrf.mxu0 }
 0x1cb   : > { %v805_v20 = vpop.f32.mrf.mxu1 }
 0x1cc   : > { %v1572_v22 = vpop.f32.mrf.mxu0 }
 0x1cd   : > { %v1745_v23 = vpop.f32.mrf.mxu1  ;;  %v1573_v24 = vadd.f32 %v1572_v22, %v1571_v19  ;;  %v977_v19 = vld [vmem:[%s3015_s8] sm:$0xff] }
 0x1cf   : > { %v736_v25 = vadd.f32 %v1573_v24, %v1531_v21  ;;  %v641_v24 = vld [vmem:[#allocation5] sm:$0x1] }
 0x1d0   : > { %vm967_vm2 = vcmp.gt.f32.partialorder %v641_v24, 0.0 }
 0x1d1   : > { %v806_v26 = vadd.f32 %v805_v20, %v736_v25  ;;  %v1009_v20 = vld [vmem:[%s3015_s8 + $0x100] sm:$0xff]  ;;  %v969_v25 = vsel %vm967_vm2, 1, %v2262_v1  ;;  %v1042_v1 = vld [vmem:[%s3018_s11 + $0x78] sm:$0xff] }
 0x1d3   : > { %1779 = vmatmul.mubr.f32.vlgmr.msra.gmra.mxu0 %v806_v26 }
 0x1d4   : > { %1626 = vmatpush3.msra.mxu0 %v992_v32 }
 0x1d5   : > { %1627 = vmatprep.subr.mxu0 %v1007_v34 }
 0x1d6   : > { %1628 = vmatpush3.msra.mxu0 %v991_v35 }
 0x1d7   : > { %1629 = vmatprep.subr.mxu0 %v1006_v37 }
 0x1d8   : > { %1630 = vmatpush3.msra.mxu0 %v990_v39  ;;  %v1038_v39 = vld [vmem:[%s3018_s11 + $0x58] sm:$0xff] }
 0x1d9   : > { %1631 = vmatprep.subr.mxu0 %v1005_v40  ;;  %v1037_v40 = vld [vmem:[%s3018_s11 + $0x50] sm:$0xff] }
 0x1da   : > { %1632 = vmatpush3.msra.mxu0 %v989_v42  ;;  %v1035_v42 = vld [vmem:[%s3018_s11 + $0x40] sm:$0xff] }
 0x1db   : > { %1633 = vmatprep.subr.mxu0 %v1004_v43  ;;  %v1034_v43 = vld [vmem:[%s3018_s11 + $0x38] sm:$0xff] }
 0x1dc   : > { %1634 = vmatpush3.msra.mxu0 %v988_v45  ;;  %v1032_v45 = vld [vmem:[%s3018_s11 + $0x28] sm:$0xff] }
 0x1dd   : > { %1635 = vmatprep.subr.mxu0 %v1003_v46  ;;  %v1031_v46 = vld [vmem:[%s3018_s11 + $0x20] sm:$0xff] }
 0x1de   : > { %1636 = vmatpush3.msra.mxu0 %v987_v48  ;;  %v1029_v48 = vld [vmem:[%s3018_s11 + $0x10] sm:$0xff] }
 0x1df   : > { %1637 = vmatprep.subr.mxu0 %v1002_v49  ;;  %v1028_v49 = vld [vmem:[%s3018_s11 + $0x8] sm:$0xff] }
 0x1e0   : > { %1638 = vmatpush3.msra.mxu0 %v986_v51 }
 0x1e1   : > { %1639 = vmatprep.subr.mxu0 %v1001_v52 }
 0x1e2   : > { %1640 = vmatpush3.msra.mxu0 %v985_v54 }
 0x1e3   : > { %1641 = vmatprep.subr.mxu0 %v1000_v55 }
 0x1e4   : > { %1642 = vmatpush3.msra.mxu0 %v984_v57 }
 0x1e5   : > { %1643 = vmatprep.subr.mxu0 %v999_v59 }
 0x1e6   : > { %1644 = vmatpush3.msra.mxu0 %v983_v61 }
 0x1e7   : > { %1645 = vmatprep.subr.mxu0 %v998_v62 }
 0x1e8   : > { %1646 = vmatpush3.msra.mxu0 %v982_v0 }
 0x1e9   : > { %1647 = vmatprep.subr.mxu0 %v997_v4 }
 0x1ea   : > { %1648 = vmatpush3.msra.mxu0 %v981_v7  ;;  %v1535_v7 = vld [vmem:[#allocation13] ss:$0 sm:$0xff] }
 0x1eb   : > { %1649 = vmatprep.subr.mxu0 %v996_v8 }
 0x1ec   : > { %1650 = vmatpush3.msra.mxu0 %v980_v9  ;;  %v1536_v9 = vld [vmem:[#allocation14] ss:$0 sm:$0xff] }
 0x1ed   : > { %1651 = vmatprep.subr.mxu0 %v995_v11 }
 0x1ee   : > { %1652 = vmatpush3.msra.mxu0 %v979_v12 }
 0x1ef   : > { %1653 = vmatprep.subr.mxu0 %v994_v15 }
 0x1f0   : > { %1654 = vmatpush3.msra.mxu0 %v978_v16 }
 0x1f1   : > { %1655 = vmatprep.subr.mxu0 %v993_v18 }
 0x1f2   : > { %1656 = vmatpush3.msra.mxu0 %v977_v19 }
 0x1f3   : > { %1851 = vmatprep.subr.mxu0 %v2263_v2 }
 0x293   : > { %v875_v27 = vpop.f32.mrf.mxu0 }
 0x294   : > { %v2744_v28 = vsub.f32 %v806_v26, %v875_v27  ;;  %v1532_v27 = vld [vmem:[#allocation7] ss:$0 sm:$0xff] }
 0x295   : > { %v1780_v29 = vpop.f32.mrf.mxu0 }
 0x296   : > { %v880_v30 = vmul.f32 %v2744_v28, %v2744_v28 }
 0x298   : > { %1814 = vmatmul.mubr.f32.vlgmr.msra.gmra.mxu1 %v880_v30  ;;  %v973_v30 = vrot.slane %v969_v25, %v972_v6  ;;  %v1040_v6 = vld [vmem:[%s3018_s11 + $0x68] sm:$0xff] }
 0x299   : > { %1848 = vmatprep.mubr.msk.f32.mxu1 %vm2264_vm0, %v2263_v2  ;;  %1817 = vmatpush3.msra.mxu1 %v1024_v33 }
 0x29a   : > { %1818 = vmatprep.subr.mxu1 %v2263_v2  ;;  %vm974_vm3 = vcmp.eq.s32.totalorder %v973_v30, 1 }
 0x29b   : > { %1819 = vmatpush3.msra.mxu1 %v1023_v36 }
 0x29c   : > { %1820 = vmatprep.subr.mxu1 %v2263_v2 }
 0x29d   : > { %1821 = vmatpush3.msra.mxu1 %v1022_v38 }
 0x29e   : > { %1822 = vmatprep.subr.mxu1 %v2263_v2 }
 0x29f   : > { %1823 = vmatpush3.msra.mxu1 %v1021_v41  ;;  %v1036_v41 = vld [vmem:[%s3018_s11 + $0x48] sm:$0xff] }
 0x2a0   : > { %1824 = vmatprep.subr.mxu1 %v2263_v2 }
 0x2a1   : > { %1825 = vmatpush3.msra.mxu1 %v1020_v44  ;;  %v1033_v44 = vld [vmem:[%s3018_s11 + $0x30] sm:$0xff] }
 0x2a2   : > { %1826 = vmatprep.subr.mxu1 %v2263_v2 }
 0x2a3   : > { %1827 = vmatpush3.msra.mxu1 %v1019_v47  ;;  %v1030_v47 = vld [vmem:[%s3018_s11 + $0x18] sm:$0xff] }
 0x2a4   : > { %1828 = vmatprep.subr.mxu1 %v2263_v2 }
 0x2a5   : > { %1829 = vmatpush3.msra.mxu1 %v1018_v50  ;;  %v1027_v50 = vld [vmem:[%s3018_s11] sm:$0xff] }
 0x2a6   : > { %1830 = vmatprep.subr.mxu1 %v2263_v2 }
 0x2a7   : > { %1831 = vmatpush3.msra.mxu1 %v1017_v53  ;;  %v1534_v53 = vld [vmem:[#allocation10] ss:$0 sm:$0xff] }
 0x2a8   : > { %1832 = vmatprep.subr.mxu1 %v2263_v2 }
 0x2a9   : > { %1833 = vmatpush3.msra.mxu1 %v1016_v56 }
 0x2aa   : > { %1834 = vmatprep.subr.mxu1 %v2263_v2 }
 0x2ab   : > { %1835 = vmatpush3.msra.mxu1 %v1015_v60 }
 0x2ac   : > { %1836 = vmatprep.subr.mxu1 %v2263_v2 }
 0x2ad   : > { %1837 = vmatpush3.msra.mxu1 %v1014_v63 }
 0x2ae   : > { %1838 = vmatprep.subr.mxu1 %v2263_v2 }
 0x2af   : > { %1839 = vmatpush3.msra.mxu1 %v1013_v5 }
 0x2b0   : > { %1840 = vmatprep.subr.mxu1 %v2263_v2 }
 0x2b1   : > { %1841 = vmatpush3.msra.mxu1 %v1012_v10 }
 0x2b2   : > { %1842 = vmatprep.subr.mxu1 %v2263_v2 }
 0x2b3   : > { %1843 = vmatpush3.msra.mxu1 %v1011_v13 }
 0x2b4   : > { %1844 = vmatprep.subr.mxu1 %v2263_v2 }
 0x2b5   : > { %1845 = vmatpush3.msra.mxu1 %v1010_v17 }
 0x2b6   : > { %1846 = vmatprep.subr.mxu1 %v2263_v2 }
 0x2b7   : > { %1847 = vmatpush3.msra.mxu1 %v1009_v20 }
 0x2b8   : > { %1886 = vmatprep.subr.mxu1 %v2263_v2 }
 0x358   : > { %v947_v21 = vpop.f32.mrf.mxu1 }
 0x359   : > { %v948_v22 = vadd.f32 1e-05, %v947_v21 }
 0x35a   : > { %v1815_v23 = vpop.f32.mrf.mxu1 }
 0x35b   : > { %2014 = vrsqrt.f32 %v948_v22 }
 0x368   : > { %v2015_v26 = vpop.eup %2014 }
 0x369   : > { %v952_v29 = vmul.f32 %v2015_v26, %v2744_v28  ;;  %v1039_v28 = vld [vmem:[%s3018_s11 + $0x60] sm:$0xff] }
 0x36b   : > { %v959_v32 = vmul.f32 %v1532_v27, %v952_v29 }
 0x36d   : > { %v966_v33 = vadd.f32 %v1533_v31, %v959_v32 }
 0x36f   : > { %v968_v34 = vmax.f32 %v966_v33, 0.0 }
 0x371   : > { %v975_v35 = vsel %vm974_vm3, %v968_v34, %v966_v33 }
 0x372   : > { %v976_v36 = vmul.f32 %v975_v35, %v2658_v58 }
 0x374   : > { %1045 = vst [vmem:[#allocation2 + $0x8] sm:$0xff] %v976_v36  ;;  %1118 = vmatprep.mubr.f32.mxu0 %v976_v36 }
 0x37b   : > { %v1046_v37 = vld [vmem:[#allocation2 + $0x7] sm:$0xff] }
 0x37c   : > { %v1047_v38 = vld [vmem:[#allocation2 + $0x9] sm:$0xff]  ;;  %1119 = vmatmul.mubr.f32.vlgmr.msra.gmra.mxu0 %v1046_v37 }
 0x37d   : > { %1849 = vmatmul.mubr.f32.vlgmr.msra.gmra.mxu1 %v1047_v38  ;;  %1852 = vmatpush3.msra.mxu0 %v1042_v1 }
 0x37e   : > { %1883 = vmatprep.mubr.msk.f32.mxu0 %vm2264_vm0, %v2263_v2  ;;  %1853 = vmatprep.subr.mxu0 %v2263_v2 }
 0x37f   : > { %1887 = vmatpush3.msra.mxu1 %v1042_v1  ;;  %1854 = vmatpush3.msra.mxu0 %v1041_v3 }
 0x380   : > { %1888 = vmatprep.subr.mxu1 %v2263_v2  ;;  %1855 = vmatprep.subr.mxu0 %v2263_v2 }
 0x381   : > { %1889 = vmatpush3.msra.mxu1 %v1041_v3  ;;  %1856 = vmatpush3.msra.mxu0 %v1040_v6 }
 0x382   : > { %1890 = vmatprep.subr.mxu1 %v2263_v2  ;;  %1857 = vmatprep.subr.mxu0 %v2263_v2 }
 0x383   : > { %1891 = vmatpush3.msra.mxu1 %v1040_v6  ;;  %1858 = vmatpush3.msra.mxu0 %v1039_v28 }
 0x384   : > { %1892 = vmatprep.subr.mxu1 %v2263_v2  ;;  %1859 = vmatprep.subr.mxu0 %v2263_v2 }
 0x385   : > { %1893 = vmatpush3.msra.mxu1 %v1039_v28  ;;  %1860 = vmatpush3.msra.mxu0 %v1038_v39 }
 0x386   : > { %1894 = vmatprep.subr.mxu1 %v2263_v2  ;;  %1861 = vmatprep.subr.mxu0 %v2263_v2 }
 0x387   : > { %1895 = vmatpush3.msra.mxu1 %v1038_v39  ;;  %1862 = vmatpush3.msra.mxu0 %v1037_v40 }
 0x388   : > { %1896 = vmatprep.subr.mxu1 %v2263_v2  ;;  %1863 = vmatprep.subr.mxu0 %v2263_v2 }
 0x389   : > { %1897 = vmatpush3.msra.mxu1 %v1037_v40  ;;  %1864 = vmatpush3.msra.mxu0 %v1036_v41 }
 0x38a   : > { %1898 = vmatprep.subr.mxu1 %v2263_v2  ;;  %1865 = vmatprep.subr.mxu0 %v2263_v2 }
 0x38b   : > { %1899 = vmatpush3.msra.mxu1 %v1036_v41  ;;  %1866 = vmatpush3.msra.mxu0 %v1035_v42 }
 0x38c   : > { %1900 = vmatprep.subr.mxu1 %v2263_v2  ;;  %1867 = vmatprep.subr.mxu0 %v2263_v2 }
 0x38d   : > { %1901 = vmatpush3.msra.mxu1 %v1035_v42  ;;  %1868 = vmatpush3.msra.mxu0 %v1034_v43 }
 0x38e   : > { %1902 = vmatprep.subr.mxu1 %v2263_v2  ;;  %1869 = vmatprep.subr.mxu0 %v2263_v2 }
 0x38f   : > { %1903 = vmatpush3.msra.mxu1 %v1034_v43  ;;  %1870 = vmatpush3.msra.mxu0 %v1033_v44 }
 0x390   : > { %1904 = vmatprep.subr.mxu1 %v2263_v2  ;;  %1871 = vmatprep.subr.mxu0 %v2263_v2 }
 0x391   : > { %1905 = vmatpush3.msra.mxu1 %v1033_v44  ;;  %1872 = vmatpush3.msra.mxu0 %v1032_v45 }
 0x392   : > { %1906 = vmatprep.subr.mxu1 %v2263_v2  ;;  %1873 = vmatprep.subr.mxu0 %v2263_v2 }
 0x393   : > { %1907 = vmatpush3.msra.mxu1 %v1032_v45  ;;  %1918 = vmatprep.mubr.msk.f32.mxu1 %vm2264_vm0, %v2263_v2 }
 0x394   : > { %1908 = vmatprep.subr.mxu1 %v2263_v2  ;;  %1874 = vmatpush3.msra.mxu0 %v1031_v46 }
 0x395   : > { %1909 = vmatpush3.msra.mxu1 %v1031_v46  ;;  %1875 = vmatprep.subr.mxu0 %v2263_v2 }
 0x396   : > { %1910 = vmatprep.subr.mxu1 %v2263_v2  ;;  %1876 = vmatpush3.msra.mxu0 %v1030_v47 }
 0x397   : > { %1911 = vmatpush3.msra.mxu1 %v1030_v47  ;;  %1877 = vmatprep.subr.mxu0 %v2263_v2 }
 0x398   : > { %1912 = vmatprep.subr.mxu1 %v2263_v2  ;;  %1878 = vmatpush3.msra.mxu0 %v1029_v48 }
 0x399   : > { %1913 = vmatpush3.msra.mxu1 %v1029_v48  ;;  %1879 = vmatprep.subr.mxu0 %v2263_v2 }
 0x39a   : > { %1914 = vmatprep.subr.mxu1 %v2263_v2  ;;  %1880 = vmatpush3.msra.mxu0 %v1028_v49 }
 0x39b   : > { %1915 = vmatpush3.msra.mxu1 %v1028_v49  ;;  %1881 = vmatprep.subr.mxu0 %v2263_v2 }
 0x39c   : > { %1916 = vmatprep.subr.mxu1 %v2263_v2  ;;  %1882 = vmatpush3.msra.mxu0 %v1027_v50 }
 0x39d   : > { %1917 = vmatpush3.msra.mxu1 %v1027_v50 }
 0x43c   : > { %v1657_v51 = vpop.f32.mrf.mxu0 }
 0x43d   : > { %v1190_v52 = vpop.f32.mrf.mxu1 }
 0x43e   : > { %v1658_v54 = vpop.f32.mrf.mxu0 }
 0x43f   : > { %v1850_v55 = vpop.f32.mrf.mxu1  ;;  %v1659_v56 = vadd.f32 %v1658_v54, %v1657_v51 }
 0x441   : > { %v1121_v57 = vadd.f32 %v1659_v56, %v1534_v53 }
 0x443   : > { %v1191_v59 = vadd.f32 %v1190_v52, %v1121_v57 }
 0x445   : > { %1884 = vmatmul.mubr.f32.vlgmr.msra.gmra.mxu0 %v1191_v59 }
 0x505   : > { %v1260_v60 = vpop.f32.mrf.mxu0 }
 0x506   : > { %v1264_v61 = vsub.f32 %v1191_v59, %v1260_v60 }
 0x507   : > { %v1885_v62 = vpop.f32.mrf.mxu0 }
 0x508   : > { %v1265_v63 = vmul.f32 %v1264_v61, %v1264_v61 }
 0x50a   : > { %1919 = vmatmul.mubr.f32.vlgmr.msra.gmra.mxu1 %v1265_v63 }
 0x5ca   : > { %v1332_v0 = vpop.f32.mrf.mxu1 }
 0x5cb   : > { %v1333_v4 = vadd.f32 1e-05, %v1332_v0 }
 0x5cc   : > { %v1920_v2 = vpop.f32.mrf.mxu1 }
 0x5cd   : > { %2016 = vrsqrt.f32 %v1333_v4 }
 0x5da   : > { %v2017_v5 = vpop.eup %2016 }
 0x5db   : > { %v1337_v8 = vmul.f32 %v2017_v5, %v1264_v61 }
 0x5dd   : > { %v1344_v10 = vmul.f32 %v1535_v7, %v1337_v8 }
 0x5df   : > { %v1351_v11 = vadd.f32 %v1536_v9, %v1344_v10 }
 0x5e1   : > { %v1353_v12 = vmax.f32 %v1351_v11, 0.0 }
 0x5e3   : > { %v1360_v13 = vsel %vm1359_vm4, %v1353_v12, %v1351_v11 }
 0x5e4   : > { %v1361_v15 = vmul.f32 %v1360_v13, %v2658_v58 }
 0x5e6   : > { %1362 = vst [vmem:[%s580_s21] sm:$0xff] %v1361_v15 }
 0x5e7 PF: > { %s29_s29 = sadd.s32 1, %s2252_s29  }
 0x5e8   : > { %p26_p7 = scmp.ge.s32.totalorder %s29_s29, 4  }
 0x5ea   :  { %28 = sbr.rel (!%p26_p7) target bundleno = 5 (0x5), region = 142 }
 0x5ef   :  { %1382 = vsyncpa [#allocation4], 1 }
 0x5f0   :  { %1384 = vsyncpa [#allocation4 + $0x1], 1 }
 0x5f1   :  { %1385 = vsyncpa [#allocation6], 1 }
 0x5f2   :  { %1386 = vsyncpa [#allocation9], 1 }
 0x5f3   :  { %1387 = vsyncpa [#allocation12], 1 }
 0x5f4   :  { %1388 = vsyncpa [#allocation15], 1 }

// kernel: detector_forward.11
= control target key start
LH: loop header
LB: loop body
LE: loop exit
PB: predicated region body
PF: predicated region fallthrough
CT: control target
= control target key end

     0   :  { %s5051_s0 = inlined_call_operand.vmem [shape: f32[2,8,128], index: 0, kind: input, shape index: {}]   ;;  %s5052_s1 = inlined_call_operand.vmem [shape: f32[2,8,1], index: 1, kind: input, shape index: {}]   ;;  %s5053_s2 = inlined_call_operand.vmem [shape: f32[384,128], index: 2, kind: input, shape index: {}]   ;;  %s5054_s3 = inlined_call_operand.hbm [shape: f32[1,128], index: 3, kind: input, shape index: {}]   ;;  %s5055_s4 = inlined_call_operand.hbm [shape: f32[1,128], index: 4, kind: input, shape index: {}]   ;;  %s5056_s5 = inlined_call_operand.vmem [shape: f32[128,128], index: 5, kind: input, shape index: {}]   ;;  %s5057_s6 = inlined_call_operand.hbm [shape: f32[1,128], index: 6, kind: input, shape index: {}]   ;;  %s5058_s7 = inlined_call_operand.hbm [shape: f32[1,128], index: 7, kind: input, shape index: {}]   ;;  %s5059_s8 = inlined_call_operand.vmem [shape: f32[384,128], index: 8, kind: input, shape index: {}]   ;;  %s5060_s9 = inlined_call_operand.hbm [shape: f32[1,128], index: 9, kind: input, shape index: {}]   ;;  %s5061_s10 = inlined_call_operand.hbm [shape: f32[1,128], index: 10, kind: input, shape index: {}]   ;;  %s5062_s11 = inlined_call_operand.vmem [shape: f32[128,128], index: 11, kind: input, shape index: {}]   ;;  %s5063_s12 = inlined_call_operand.hbm [shape: f32[1,128], index: 12, kind: input, shape index: {}]   ;;  %s5064_s13 = inlined_call_operand.hbm [shape: f32[1,128], index: 13, kind: input, shape index: {}]   ;;  %s5065_s14 = inlined_call_operand.vmem [shape: f32[384,128], index: 14, kind: input, shape index: {}]   ;;  %s5066_s15 = inlined_call_operand.hbm [shape: f32[1,128], index: 15, kind: input, shape index: {}]   ;;  %s5067_s16 = inlined_call_operand.hbm [shape: f32[1,128], index: 16, kind: input, shape index: {}]   ;;  %s5068_s17 = inlined_call_operand.hbm [shape: f32[128,128], index: 17, kind: input, shape index: {}]   ;;  %s5069_s18 = inlined_call_operand.hbm [shape: f32[1,128], index: 18, kind: input, shape index: {}]   ;;  %s5070_s19 = inlined_call_operand.hbm [shape: f32[1,128], index: 19, kind: input, shape index: {}]   ;;  %s5071_s20 = inlined_call_operand.vmem [shape: f32[384,128], index: 20, kind: input, shape index: {}]   ;;  %s5072_s21 = inlined_call_operand.hbm [shape: f32[1,128], index: 21, kind: input, shape index: {}]   ;;  %s5073_s22 = inlined_call_operand.hbm [shape: f32[1,128], index: 22, kind: input, shape index: {}]   ;;  %s5074_s23 = inlined_call_operand.vmem [shape: f32[2,8,128], index: 23, kind: output, shape index: {}]  }
   0x1   :  { %5079 = sst [smem:[#allocation34_spill]] %s5051_s0 }
   0x2   :  { %5080 = sst [smem:[#allocation35_spill]] %s5052_s1 }
   0x3   :  { %5081 = sst [smem:[#allocation36_spill]] %s5053_s2 }
   0x4   :  { %5082 = sst [smem:[#allocation37_spill]] %s5054_s3 }
   0x5   :  { %5083 = sst [smem:[#allocation38_spill]] %s5055_s4 }
   0x6   :  { %5084 = sst [smem:[#allocation39_spill]] %s5056_s5 }
   0x7   :  { %5085 = sst [smem:[#allocation40_spill]] %s5057_s6 }
   0x8   :  { %5086 = sst [smem:[#allocation41_spill]] %s5058_s7 }
   0x9   :  { %5087 = sst [smem:[#allocation42_spill]] %s5061_s10 }
   0xa   :  { %28 = vsyncpa [#allocation4], 0 }
   0xb   :  { %29 = vsyncpa [#allocation6], 0 }
   0xc   :  { %30 = vsyncpa [#allocation9], 0 }
   0xd   :  { %31 = vsyncpa [#allocation12], 0 }
   0xe   :  { %32 = vsyncpa [#allocation15], 0 }
   0xf   :  { %33 = vsyncpa [#allocation18], 0 }
  0x10   :  { %34 = vsyncpa [#allocation21], 0 }
  0x11   :  { %35 = vsyncpa [#allocation24], 0  ;;  %s3951_s4 = smov 0  }
  0x12 LB: > { %s3811_s30 = smov [#allocation5]   ;;  %s3957_s25 = sadd.s32 4294967295, %s3809_s4   ;;  %s3809_s4 = sphi %s3951_s4, %s41_s4  }
  0x13   : > { %s592_s24 = sshll.u32 %s3811_s30, 4  ;;  %p2501_p0 = scmp.ge.s32.totalorder %s3809_s4, 1  ;;  %s593_s24 = int_to_ptr.vmem [resolvable:$true] %s592_s24 }
  0x14   : > { %p565_p1 = scmp.lt.s32.totalorder %s3809_s4, 3  ;;  %p5077_p2 = scmp.eq.s32.totalorder %s3957_s25, 0 }
  0x15   : > { %s3812_s1 = smov [#allocation8]   ;;  %s3813_s2 = smov [#allocation11]  }
  0x16   : > { %p3962_p3 = pnand %p2501_p0, %p565_p1  ;;  %s617_s26 = sshll.u32 %s3812_s1, 4  ;;  %s3968_s26 = int_to_ptr.vmem [resolvable:$true] %s617_s26 }
  0x17   : > { %s642_s6 = sshll.u32 %s3813_s2, 4  ;;  %s3814_s7 = smov [#allocation14]   ;;  %s3976_s6 = int_to_ptr.vmem [resolvable:$true] %s642_s6 }
  0x18   : > { %s5088_s5 = scalar_select %p3962_p3, 1, 0 }
  0x19   : > { %p3269_p4 = pneg %p3962_p3  ;;  %s667_s28 = sshll.u32 %s3814_s7, 4  ;;  %s3978_s28 = int_to_ptr.vmem [resolvable:$true] %s667_s28 }
  0x1a   : > { %s3392_s3 = scalar_lea.vmem %s593_s24, 16  ;;  %s3399_s0 = scalar_lea.vmem %s593_s24, 32 }
  0x1b   : > { %p3972_p5 = pnand %p5077_p2, %p3269_p4  ;;  %p3393_p7 = scmp.ne.s32.totalorder %s593_s24, %s3392_s3 }
  0x1c   : > { %p3400_p10 = scmp.lt.s32.totalorder %s593_s24, %s593_s24  ;;  %p3401_p11 = scmp.lt.s32.totalorder %s3399_s0, %s3392_s3 }
  0x1d   : > { %p3982_p6 = pneg %p3972_p5 }
  0x1e   : > { %p3402_p12 = por %p3401_p11, %p3400_p10 }
  0x1f   : > { %p3395_p8 = pnand %p3393_p7, %p3982_p6 }
  0x21   : > { %p3396_p9 = pneg %p3395_p8 }
  0x23   : > { %p3403_p13 = pnand %p3402_p12, %p3396_p9 }
  0x25   : > { %3406 = shalt.err (!%p3403_p13)
}
  0x26   : > { %s5091_s2 = sld [smem:[#allocation38_spill]]  ;;  %s3418_s7 = scalar_lea.vmem %s3968_s26, 16 }
  0x27   : > { %p3419_p0 = scmp.ne.s32.totalorder %s3968_s26, %s3418_s7  ;;  %s3425_s3 = scalar_lea.vmem %s3968_s26, 32 }
  0x28   : > { %p3426_p7 = scmp.lt.s32.totalorder %s3968_s26, %s3968_s26  ;;  %p3427_p8 = scmp.lt.s32.totalorder %s3425_s3, %s3418_s7 }
  0x29   : > { %p3421_p1 = pnand %p3419_p0, %p3982_p6 }
  0x2a   : > { %p3428_p9 = por %p3427_p8, %p3426_p7 }
  0x2b   : > { %p3422_p4 = pneg %p3421_p1 }
  0x2c   : > { %3275 = dma.hbm_to_vmem [thread:$0]  (!%p3972_p5), %s5091_s2, 16, %s593_s24, [#allocation6]  }
  0x2d   : > { %p3429_p10 = pnand %p3428_p9, %p3422_p4 }
  0x2f   : > { %3432 = shalt.err (!%p3429_p10)
}
  0x30   : > { %s5092_s1 = sld [smem:[#allocation41_spill]]  ;;  %s3444_s24 = scalar_lea.vmem %s3976_s6, 16 }
  0x31   : > { %p3445_p11 = scmp.ne.s32.totalorder %s3976_s6, %s3444_s24  ;;  %s3451_s2 = scalar_lea.vmem %s3976_s6, 32 }
  0x32   : > { %p3452_p0 = scmp.lt.s32.totalorder %s3976_s6, %s3976_s6  ;;  %p3453_p1 = scmp.lt.s32.totalorder %s3451_s2, %s3444_s24 }
  0x33   : > { %p3447_p12 = pnand %p3445_p11, %p3982_p6 }
  0x34   : > { %p3454_p4 = por %p3453_p1, %p3452_p0 }
  0x35   : > { %p3448_p13 = pneg %p3447_p12 }
  0x36   : > { %3281 = dma.hbm_to_vmem [thread:$0]  (!%p3972_p5), %s5092_s1, 16, %s3968_s26, [#allocation9]  }
  0x37   : > { %p3455_p7 = pnand %p3454_p4, %p3448_p13 }
  0x39   : > { %3458 = shalt.err (!%p3455_p7)
}
  0x3a   : > { %s5093_s10 = sld [smem:[#allocation42_spill]]  ;;  %s3470_s26 = scalar_lea.vmem %s3978_s28, 16 }
  0x3b   : > { %p3471_p8 = scmp.ne.s32.totalorder %s3978_s28, %s3470_s26  ;;  %s3477_s0 = scalar_lea.vmem %s3978_s28, 32 }
  0x3c   : > { %p3478_p11 = scmp.lt.s32.totalorder %s3978_s28, %s3978_s28  ;;  %p3479_p12 = scmp.lt.s32.totalorder %s3477_s0, %s3470_s26 }
  0x3d   : > { %p3473_p9 = pnand %p3471_p8, %p3982_p6 }
  0x3e   : > { %p3480_p13 = por %p3479_p12, %p3478_p11 }
  0x3f   : > { %p3474_p10 = pneg %p3473_p9 }
  0x40   : > { %3287 = dma.hbm_to_vmem [thread:$0]  (!%p3972_p5), %s5093_s10, 16, %s3976_s6, [#allocation12]  }
  0x41   : > { %p3481_p0 = pnand %p3480_p13, %p3474_p10 }
  0x43   : > { %3484 = shalt.err (!%p3481_p0)
}
  0x44   : > { %3293 = dma.hbm_to_vmem [thread:$0]  (!%p3972_p5), %s5064_s13, 16, %s3978_s28, [#allocation15]  }
  0x45   : > { %s3815_s6 = smov [#allocation17]   ;;  %s3816_s2 = smov [#allocation20]  }
  0x46   : > { %s692_s24 = sshll.u32 %s3815_s6, 4  ;;  %s716_s7 = sshll.u32 %s3816_s2, 4  ;;  %s693_s24 = int_to_ptr.vmem [resolvable:$true] %s692_s24  ;;  %s717_s7 = int_to_ptr.vmem [resolvable:$true] %s716_s7 }
  0x47   : > { %s3496_s3 = scalar_lea.vmem %s693_s24, 16  ;;  %s3503_s26 = scalar_lea.vmem %s693_s24, 32 }
  0x48   : > { %p3497_p1 = scmp.ne.s32.totalorder %s693_s24, %s3496_s3  ;;  %p3504_p8 = scmp.lt.s32.totalorder %s693_s24, %s693_s24 }
  0x49   : > { %p3505_p9 = scmp.lt.s32.totalorder %s3503_s26, %s3496_s3 }
  0x4a   : > { %p3499_p4 = pnand %p3497_p1, %p3982_p6 }
  0x4b   : > { %p3506_p10 = por %p3505_p9, %p3504_p8 }
  0x4c   : > { %p3500_p7 = pneg %p3499_p4 }
  0x4e   : > { %p3507_p11 = pnand %p3506_p10, %p3500_p7 }
  0x50   : > { %3510 = shalt.err (!%p3507_p11)
}
  0x51   : > { %3299 = dma.hbm_to_vmem [thread:$0]  (!%p3972_p5), %s5067_s16, 16, %s693_s24, [#allocation18]  }
  0x52   : > { %s3522_s30 = scalar_lea.vmem %s717_s7, 16  ;;  %s3529_s1 = scalar_lea.vmem %s717_s7, 32 }
  0x53   : > { %p3523_p12 = scmp.ne.s32.totalorder %s717_s7, %s3522_s30  ;;  %p3530_p1 = scmp.lt.s32.totalorder %s717_s7, %s717_s7 }
  0x54   : > { %p3531_p4 = scmp.lt.s32.totalorder %s3529_s1, %s3522_s30 }
  0x55   : > { %p3525_p13 = pnand %p3523_p12, %p3982_p6 }
  0x56   : > { %p3532_p2 = por %p3531_p4, %p3530_p1 }
  0x57   : > { %p3526_p0 = pneg %p3525_p13 }
  0x59   : > { %p3533_p8 = pnand %p3532_p2, %p3526_p0 }
  0x5b   : > { %3536 = shalt.err (!%p3533_p8)
}
  0x5c   : > { %3305 = dma.hbm_to_vmem [thread:$0]  (!%p3972_p5), %s5069_s18, 16, %s717_s7, [#allocation21]  }
  0x5d   : > { %s3817_s24 = smov [#allocation23]   ;;  %s3818_s26 = smov [#allocation3]  }
  0x5e   : > { %s741_s3 = sshll.u32 %s3817_s24, 4  ;;  %s581_s0 = sshll.u32 %s3818_s26, 4  ;;  %s742_s3 = int_to_ptr.vmem [resolvable:$true] %s741_s3  ;;  %s582_s0 = int_to_ptr.vmem [resolvable:$true] %s581_s0 }
  0x5f   : > { %s3548_s28 = scalar_lea.vmem %s742_s3, 16  ;;  %s3555_s30 = scalar_lea.vmem %s742_s3, 32 }
  0x60   : > { %p3549_p7 = scmp.ne.s32.totalorder %s742_s3, %s3548_s28  ;;  %p3556_p2 = scmp.lt.s32.totalorder %s742_s3, %s742_s3 }
  0x61   : > { %p3557_p11 = scmp.lt.s32.totalorder %s3555_s30, %s3548_s28 }
  0x62   : > { %p3551_p9 = pnand %p3549_p7, %p3982_p6 }
  0x63   : > { %p3558_p12 = por %p3557_p11, %p3556_p2 }
  0x64   : > { %p3552_p10 = pneg %p3551_p9 }
  0x66   : > { %p3559_p13 = pnand %p3558_p12, %p3552_p10 }
  0x68   : > { %3562 = shalt.err (!%p3559_p13)
}
  0x69   : > { %3311 = dma.hbm_to_vmem [thread:$0]  (!%p3972_p5), %s5072_s21, 16, %s742_s3, [#allocation24]  }
  0x6a   : > { %s3574_s6 = scalar_lea.vmem %s582_s0, 16  ;;  %s3581_s2 = scalar_lea.vmem %s582_s0, 32 }
  0x6b   : > { %p3575_p0 = scmp.ne.s32.totalorder %s582_s0, %s3574_s6  ;;  %p3582_p8 = scmp.lt.s32.totalorder %s582_s0, %s582_s0 }
  0x6c   : > { %p3583_p7 = scmp.lt.s32.totalorder %s3581_s2, %s3574_s6 }
  0x6d   : > { %p3577_p1 = pnand %p3575_p0, %p3982_p6 }
  0x6e   : > { %p3584_p9 = por %p3583_p7, %p3582_p8 }
  0x6f   : > { %p3578_p4 = pneg %p3577_p1 }
  0x71   : > { %p3585_p2 = pnand %p3584_p9, %p3578_p4 }
  0x73   : > { %3588 = shalt.err (!%p3585_p2)
}
  0x74   : > { %s5094_s28 = sld [smem:[#allocation37_spill]]  ;;  %s3819_s3 = smov [#allocation7]  }
  0x75   : > { %s606_s30 = sshll.u32 %s3819_s3, 4  ;;  %s3820_s1 = smov [#allocation10]   ;;  %s607_s30 = int_to_ptr.vmem [resolvable:$true] %s606_s30 }
  0x76   : > { %s631_s7 = sshll.u32 %s3820_s1, 4  ;;  %s3600_s10 = scalar_lea.vmem %s607_s30, 16  ;;  %s632_s7 = int_to_ptr.vmem [resolvable:$true] %s631_s7 }
  0x77   : > { %p3601_p10 = scmp.ne.s32.totalorder %s607_s30, %s3600_s10  ;;  %s3607_s6 = scalar_lea.vmem %s607_s30, 32 }
  0x78   : > { %p3608_p13 = scmp.lt.s32.totalorder %s607_s30, %s607_s30  ;;  %p3609_p0 = scmp.lt.s32.totalorder %s3607_s6, %s3600_s10 }
  0x79   : > { %p3603_p11 = pnand %p3601_p10, %p3982_p6 }
  0x7a   : > { %3272 = dma.hbm_to_vmem [thread:$0]  (!%p3972_p5), %s5094_s28, 16, %s582_s0, [#allocation4]  }
  0x7b   : > { %p3604_p12 = pneg %p3603_p11  ;;  %p3610_p1 = por %p3609_p0, %p3608_p13 }
  0x7d   : > { %p3611_p4 = pnand %p3610_p1, %p3604_p12 }
  0x7f   : > { %3614 = shalt.err (!%p3611_p4)
}
  0x80   : > { %s5095_s24 = sld [smem:[#allocation40_spill]]  ;;  %s3626_s26 = scalar_lea.vmem %s632_s7, 16 }
  0x81   : > { %p3627_p8 = scmp.ne.s32.totalorder %s632_s7, %s3626_s26  ;;  %s3633_s28 = scalar_lea.vmem %s632_s7, 32 }
  0x82   : > { %p3634_p2 = scmp.lt.s32.totalorder %s632_s7, %s632_s7  ;;  %p3635_p10 = scmp.lt.s32.totalorder %s3633_s28, %s3626_s26 }
  0x83   : > { %p3629_p7 = pnand %p3627_p8, %p3982_p6 }
  0x84   : > { %p3636_p11 = por %p3635_p10, %p3634_p2 }
  0x85   : > { %p3630_p9 = pneg %p3629_p7 }
  0x86   : > { %3278 = dma.hbm_to_vmem [thread:$0]  (!%p3972_p5), %s5095_s24, 16, %s607_s30, [#allocation6]  }
  0x87   : > { %p3637_p13 = pnand %p3636_p11, %p3630_p9 }
  0x89   : > { %3640 = shalt.err (!%p3637_p13)
}
  0x8a   : > { %3284 = dma.hbm_to_vmem [thread:$0]  (!%p3972_p5), %s5060_s9, 16, %s632_s7, [#allocation9]  }
  0x8b   : > { %s3821_s30 = smov [#allocation13]   ;;  %s3822_s6 = smov [#allocation16]  }
  0x8c   : > { %s656_s1 = sshll.u32 %s3821_s30, 4  ;;  %s681_s2 = sshll.u32 %s3822_s6, 4  ;;  %s657_s1 = int_to_ptr.vmem [resolvable:$true] %s656_s1  ;;  %s682_s2 = int_to_ptr.vmem [resolvable:$true] %s681_s2 }
  0x8d   : > { %s3652_s0 = scalar_lea.vmem %s657_s1, 16  ;;  %s3659_s24 = scalar_lea.vmem %s657_s1, 32 }
  0x8e   : > { %p3653_p12 = scmp.ne.s32.totalorder %s657_s1, %s3652_s0  ;;  %p3660_p4 = scmp.lt.s32.totalorder %s657_s1, %s657_s1 }
  0x8f   : > { %p3661_p8 = scmp.lt.s32.totalorder %s3659_s24, %s3652_s0 }
  0x90   : > { %p3655_p0 = pnand %p3653_p12, %p3982_p6 }
  0x91   : > { %p3662_p7 = por %p3661_p8, %p3660_p4 }
  0x92   : > { %p3656_p1 = pneg %p3655_p0 }
  0x94   : > { %p3663_p9 = pnand %p3662_p7, %p3656_p1 }
  0x96   : > { %3666 = shalt.err (!%p3663_p9)
}
  0x97   : > { %3290 = dma.hbm_to_vmem [thread:$0]  (!%p3972_p5), %s5063_s12, 16, %s657_s1, [#allocation12]  }
  0x98   : > { %s3678_s28 = scalar_lea.vmem %s682_s2, 16  ;;  %s3685_s10 = scalar_lea.vmem %s682_s2, 32 }
  0x99   : > { %p3679_p2 = scmp.ne.s32.totalorder %s682_s2, %s3678_s28  ;;  %p3686_p13 = scmp.lt.s32.totalorder %s682_s2, %s682_s2 }
  0x9a   : > { %p3687_p12 = scmp.lt.s32.totalorder %s3685_s10, %s3678_s28 }
  0x9b   : > { %p3681_p10 = pnand %p3679_p2, %p3982_p6 }
  0x9c   : > { %p3688_p0 = por %p3687_p12, %p3686_p13 }
  0x9d   : > { %p3682_p11 = pneg %p3681_p10 }
  0x9f   : > { %p3689_p4 = pnand %p3688_p0, %p3682_p11 }
  0xa1   : > { %3692 = shalt.err (!%p3689_p4)
}
  0xa2   : > { %3296 = dma.hbm_to_vmem [thread:$0]  (!%p3972_p5), %s5066_s15, 16, %s682_s2, [#allocation15]  }
  0xa3   : > { %s3823_s1 = smov [#allocation19]  }
  0xa4   : > { %s702_s6 = sshll.u32 %s3823_s1, 4  ;;  %s703_s6 = int_to_ptr.vmem [resolvable:$true] %s702_s6 }
  0xa5   : > { %s3704_s0 = scalar_lea.vmem %s703_s6, 2048  ;;  %p3712_p9 = scmp.lt.s32.totalorder %s703_s6, %s703_s6 }
  0xa6   : > { %p3705_p1 = scmp.ne.s32.totalorder %s703_s6, %s3704_s0  ;;  %p3713_p2 = scmp.lt.s32.totalorder %s3704_s0, %s3704_s0 }
  0xa8   : > { %p3707_p8 = pnand %p3705_p1, %p3982_p6  ;;  %p3714_p10 = por %p3713_p2, %p3712_p9 }
  0xaa   : > { %p3708_p7 = pneg %p3707_p8 }
  0xac   : > { %p3715_p11 = pnand %p3714_p10, %p3708_p7 }
  0xae   : > { %3718 = shalt.err (!%p3715_p11)
}
  0xaf   : > { %s3824_s24 = smov 128   ;;  %s3825_s26 = smov 8  }
  0xb0   : > { %3302 = dma.hbm_to_vmem [thread:$0]  (!%p3972_p5), %s5068_s17, 2048, %s703_s6, [#allocation18], %s3824_s24, %s3824_s24, %s3825_s26  }
  0xb1   : > { %s3826_s28 = smov [#allocation22]   ;;  %s3827_s3 = smov [#allocation25]  }
  0xb2   : > { %s727_s10 = sshll.u32 %s3826_s28, 4  ;;  %s752_s30 = sshll.u32 %s3827_s3, 4  ;;  %s728_s10 = int_to_ptr.vmem [resolvable:$true] %s727_s10  ;;  %s753_s30 = int_to_ptr.vmem [resolvable:$true] %s752_s30 }
  0xb3   : > { %s3730_s1 = scalar_lea.vmem %s728_s10, 16  ;;  %s3737_s0 = scalar_lea.vmem %s728_s10, 32 }
  0xb4   : > { %p3731_p13 = scmp.ne.s32.totalorder %s728_s10, %s3730_s1  ;;  %p3738_p4 = scmp.lt.s32.totalorder %s728_s10, %s728_s10 }
  0xb5   : > { %p3739_p1 = scmp.lt.s32.totalorder %s3737_s0, %s3730_s1 }
  0xb6   : > { %p3733_p12 = pnand %p3731_p13, %p3982_p6 }
  0xb7   : > { %p3740_p8 = por %p3739_p1, %p3738_p4 }
  0xb8   : > { %p3734_p0 = pneg %p3733_p12 }
  0xba   : > { %p3741_p7 = pnand %p3740_p8, %p3734_p0 }
  0xbc   : > { %3744 = shalt.err (!%p3741_p7)
}
  0xbd   : > { %3308 = dma.hbm_to_vmem [thread:$0]  (!%p3972_p5), %s5070_s19, 16, %s728_s10, [#allocation21]  }
  0xbe   : > { %s3756_s26 = scalar_lea.vmem %s753_s30, 16  ;;  %s3763_s7 = scalar_lea.vmem %s753_s30, 32 }
  0xbf   : > { %p3757_p9 = scmp.ne.s32.totalorder %s753_s30, %s3756_s26  ;;  %p3764_p11 = scmp.lt.s32.totalorder %s753_s30, %s753_s30 }
  0xc0   : > { %p3765_p13 = scmp.lt.s32.totalorder %s3763_s7, %s3756_s26 }
  0xc1   : > { %p3759_p2 = pnand %p3757_p9, %p3982_p6 }
  0xc2   : > { %p3766_p12 = por %p3765_p13, %p3764_p11 }
  0xc3   : > { %p3760_p10 = pneg %p3759_p2 }
  0xc5   : > { %p3767_p3 = pnand %p3766_p12, %p3760_p10 }
  0xc7   : > { %3770 = shalt.err (!%p3767_p3)
}
  0xc8   : > { %3314 = dma.hbm_to_vmem [thread:$0]  (!%p3972_p5), %s5073_s22, 16, %s753_s30, [#allocation24]  }
  0xc9   : > { %p5096_p0 = scmp.ne.s32.totalorder %s5088_s5, 0 }
  0xca   : > { %p5097_p4 = scmp.eq.s32.totalorder (!%p5096_p0), %s3957_s25, 0 }
  0xcb   : > { %779 = sbr.rel (%p5096_p0) target bundleno = 2458 (0x99a), region = 112 }
  0xd0   : > { %3776 = dma.done.wait (%p5097_p4), [#allocation4], 16   ;;  %p5098_p6 = pmov %p5097_p4 }
  0xd1   : > { %p5099_p1 = pmov %p5097_p4 }
  0xd2   : > { %3778 = vsyncadd (%p5098_p6), [#allocation4], 4294967280 }
  0xd3   : > { %3780 = dma.done.wait (%p5099_p1), [#allocation6], 32   ;;  %p5100_p3 = pmov %p5099_p1 }
  0xd4   : > { %p5101_p8 = pmov %p5099_p1 }
  0xd5   : > { %3782 = vsyncadd (%p5100_p3), [#allocation6], 4294967264 }
  0xd6   : > { %3784 = dma.done.wait (%p5101_p8), [#allocation9], 32   ;;  %p5102_p5 = pmov %p5099_p1 }
  0xd7   : > { %p5103_p7 = pmov %p5099_p1 }
  0xd8   : > { %3786 = vsyncadd (%p5102_p5), [#allocation9], 4294967264 }
  0xd9   : > { %3788 = dma.done.wait (%p5103_p7), [#allocation12], 32   ;;  %p5104_p9 = pmov %p5099_p1 }
  0xda   : > { %p5105_p2 = pmov %p5099_p1 }
  0xdb   : > { %3790 = vsyncadd (%p5104_p9), [#allocation12], 4294967264 }
  0xdc   : > { %3792 = dma.done.wait (%p5105_p2), [#allocation15], 32   ;;  %p5106_p10 = pmov %p5099_p1 }
  0xdd   : > { %p5107_p11 = pmov %p5099_p1 }
  0xde   : > { %3794 = vsyncadd (%p5106_p10), [#allocation15], 4294967264 }
  0xdf   : > { %3796 = dma.done.wait (%p5107_p11), [#allocation18], 2064   ;;  %p5108_p13 = pmov %p5099_p1 }
  0xe0   : > { %p5109_p12 = pmov %p5099_p1 }
  0xe1   : > { %3798 = vsyncadd (%p5108_p13), [#allocation18], 4294965232 }
  0xe2   : > { %3800 = dma.done.wait (%p5109_p12), [#allocation21], 32   ;;  %p5110_p0 = pmov %p5099_p1 }
  0xe4   : > { %3802 = vsyncadd (%p5110_p0), [#allocation21], 4294967264  ;;  %p5111_p4 = pmov %p5110_p0 }
  0xe5   : > { %p5112_p6 = pmov %p5110_p0 }
  0xe6   : > { %3804 = dma.done.wait (%p5111_p4), [#allocation24], 32  }
  0xe7   : > { %3806 = vsyncadd (%p5112_p6), [#allocation24], 4294967264  ;;  %p901_p1 = scmp.lt.s32.totalorder %s3957_s25, 1  ;;  %v3828_v0 = vmov 0   ;;  %v3829_v1 = vmov 0.0   ;;  %s5113_s10 = sld [smem:[#allocation35_spill]] }
  0xe8   : > { %3373 = vset.pattern.permute.xlu0 %v3828_v0  ;;  %2859 = vmatprep.subr.mxu1 %v3829_v1  ;;  %921 = vst [vmem:[#allocation2] sm:$0xff] %v3829_v1  ;;  %923 = vst [vmem:[#allocation2 + $0x10] sm:$0xff] %v3829_v1  ;;  %s5114_s0 = sld [smem:[#allocation36_spill]]  ;;  %vm3830_vm0 = vmmov 0  }
  0xe9   : > { %s5118_s25 = smov (!%p901_p1, %s3957_s25), 1  ;;  %2891 = vmatprep.mubr.msk.f32.mxu1 %vm3830_vm0, %v3829_v1  ;;  %s5115_s2 = sld [smem:[#allocation34_spill]] }
  0xea   : > { %s4149_s5 = sshll.u32 %s5118_s25, 3 }
  0xeb   : > { %s912_s24 = scalar_lea.vmem %s5074_s23, %s4149_s5 }
  0xed   : > { %s908_s3 = scalar_lea.vmem %s5113_s10, %s4149_s5  ;;  %s5116_s10 = sld [smem:[#allocation39_spill]] }
  0xee   : > { %v913_v2 = vld [vmem:[%s908_s3] sm:$0xff]  ;;  %v955_v3 = vld [vmem:[%s5114_s0 + $0xf8] sm:$0xff]  ;;  %v954_v6 = vld [vmem:[%s5114_s0 + $0xf0] sm:$0xff] }
  0xef   : > { %917 = vperm.xlu0 %3373, %v913_v2   ;;  %2549 = vmatprep.subr.mxu0 %v955_v3  ;;  %v939_v4 = vld [vmem:[%s5114_s0 + $0x78] sm:$0xff]  ;;  %v938_v7 = vld [vmem:[%s5114_s0 + $0x70] sm:$0xff]  ;;  %v953_v9 = vld [vmem:[%s5114_s0 + $0xe8] sm:$0xff]  ;;  %s904_s28 = scalar_lea.vmem %s5115_s2, %s4149_s5 }
  0xf0   : > { %v971_v5 = vld [vmem:[%s5114_s0 + $0x178] sm:$0xff]  ;;  %2550 = vmatpush3.msra.mxu0 %v939_v4  ;;  %v970_v8 = vld [vmem:[%s5114_s0 + $0x170] sm:$0xff]  ;;  %v937_v10 = vld [vmem:[%s5114_s0 + $0x68] sm:$0xff] }
  0xf1   : > { %2860 = vmatpush3.msra.mxu1 %v971_v5  ;;  %2551 = vmatprep.subr.mxu0 %v954_v6  ;;  %v969_v11 = vld [vmem:[%s5114_s0 + $0x168] sm:$0xff]  ;;  %v952_v12 = vld [vmem:[%s5114_s0 + $0xe0] sm:$0xff]  ;;  %v951_v15 = vld [vmem:[%s5114_s0 + $0xd8] sm:$0xff] }
  0xf2   : > { %2861 = vmatprep.subr.mxu1 %v3829_v1  ;;  %2552 = vmatpush3.msra.mxu0 %v938_v7  ;;  %v936_v13 = vld [vmem:[%s5114_s0 + $0x60] sm:$0xff]  ;;  %v935_v16 = vld [vmem:[%s5114_s0 + $0x58] sm:$0xff]  ;;  %v950_v18 = vld [vmem:[%s5114_s0 + $0xd0] sm:$0xff] }
  0xf3   : > { %2862 = vmatpush3.msra.mxu1 %v970_v8  ;;  %2553 = vmatprep.subr.mxu0 %v953_v9  ;;  %v968_v14 = vld [vmem:[%s5114_s0 + $0x160] sm:$0xff]  ;;  %v967_v17 = vld [vmem:[%s5114_s0 + $0x158] sm:$0xff]  ;;  %v934_v19 = vld [vmem:[%s5114_s0 + $0x50] sm:$0xff] }
  0xf4   : > { %2863 = vmatprep.subr.mxu1 %v3829_v1  ;;  %2554 = vmatpush3.msra.mxu0 %v937_v10  ;;  %v966_v20 = vld [vmem:[%s5114_s0 + $0x150] sm:$0xff]  ;;  %v949_v21 = vld [vmem:[%s5114_s0 + $0xc8] sm:$0xff]  ;;  %v948_v24 = vld [vmem:[%s5114_s0 + $0xc0] sm:$0xff] }
  0xf5   : > { %2864 = vmatpush3.msra.mxu1 %v969_v11  ;;  %2555 = vmatprep.subr.mxu0 %v952_v12  ;;  %v933_v22 = vld [vmem:[%s5114_s0 + $0x48] sm:$0xff]  ;;  %v932_v25 = vld [vmem:[%s5114_s0 + $0x40] sm:$0xff]  ;;  %v947_v27 = vld [vmem:[%s5114_s0 + $0xb8] sm:$0xff] }
  0xf6   : > { %2865 = vmatprep.subr.mxu1 %v3829_v1  ;;  %2556 = vmatpush3.msra.mxu0 %v936_v13  ;;  %v965_v23 = vld [vmem:[%s5114_s0 + $0x148] sm:$0xff]  ;;  %v964_v26 = vld [vmem:[%s5114_s0 + $0x140] sm:$0xff]  ;;  %v931_v28 = vld [vmem:[%s5114_s0 + $0x38] sm:$0xff] }
  0xf7   : > { %2866 = vmatpush3.msra.mxu1 %v968_v14  ;;  %2557 = vmatprep.subr.mxu0 %v951_v15  ;;  %v963_v29 = vld [vmem:[%s5114_s0 + $0x138] sm:$0xff]  ;;  %v946_v30 = vld [vmem:[%s5114_s0 + $0xb0] sm:$0xff]  ;;  %v945_v33 = vld [vmem:[%s5114_s0 + $0xa8] sm:$0xff] }
  0xf8   : > { %2867 = vmatprep.subr.mxu1 %v3829_v1  ;;  %2558 = vmatpush3.msra.mxu0 %v935_v16  ;;  %v930_v31 = vld [vmem:[%s5114_s0 + $0x30] sm:$0xff]  ;;  %v929_v34 = vld [vmem:[%s5114_s0 + $0x28] sm:$0xff]  ;;  %v944_v36 = vld [vmem:[%s5114_s0 + $0xa0] sm:$0xff] }
  0xf9   : > { %2868 = vmatpush3.msra.mxu1 %v967_v17  ;;  %2559 = vmatprep.subr.mxu0 %v950_v18  ;;  %v962_v32 = vld [vmem:[%s5114_s0 + $0x130] sm:$0xff]  ;;  %v961_v35 = vld [vmem:[%s5114_s0 + $0x128] sm:$0xff]  ;;  %v928_v37 = vld [vmem:[%s5114_s0 + $0x20] sm:$0xff] }
  0xfa   : > { %2869 = vmatprep.subr.mxu1 %v3829_v1  ;;  %2560 = vmatpush3.msra.mxu0 %v934_v19  ;;  %v960_v38 = vld [vmem:[%s5114_s0 + $0x120] sm:$0xff]  ;;  %v943_v39 = vld [vmem:[%s5114_s0 + $0x98] sm:$0xff]  ;;  %v942_v42 = vld [vmem:[%s5114_s0 + $0x90] sm:$0xff] }
  0xfb   : > { %2870 = vmatpush3.msra.mxu1 %v966_v20  ;;  %2561 = vmatprep.subr.mxu0 %v949_v21  ;;  %v927_v40 = vld [vmem:[%s5114_s0 + $0x18] sm:$0xff]  ;;  %v926_v43 = vld [vmem:[%s5114_s0 + $0x10] sm:$0xff]  ;;  %v941_v45 = vld [vmem:[%s5114_s0 + $0x88] sm:$0xff] }
  0xfc   : > { %2871 = vmatprep.subr.mxu1 %v3829_v1  ;;  %2562 = vmatpush3.msra.mxu0 %v933_v22  ;;  %v959_v41 = vld [vmem:[%s5114_s0 + $0x118] sm:$0xff]  ;;  %v958_v44 = vld [vmem:[%s5114_s0 + $0x110] sm:$0xff]  ;;  %v925_v46 = vld [vmem:[%s5114_s0 + $0x8] sm:$0xff] }
  0xfd   : > { %2872 = vmatpush3.msra.mxu1 %v965_v23  ;;  %2563 = vmatprep.subr.mxu0 %v948_v24  ;;  %v957_v47 = vld [vmem:[%s5114_s0 + $0x108] sm:$0xff]  ;;  %v940_v48 = vld [vmem:[%s5114_s0 + $0x80] sm:$0xff]  ;;  %v989_v54 = vld [vmem:[%s5116_s10 + $0x78] sm:$0xff] }
  0xfe   : > { %2873 = vmatprep.subr.mxu1 %v3829_v1  ;;  %2564 = vmatpush3.msra.mxu0 %v932_v25  ;;  %v924_v49 = vld [vmem:[%s5114_s0] sm:$0xff]  ;;  %v988_v57 = vld [vmem:[%s5116_s10 + $0x70] sm:$0xff]  ;;  %v987_v58 = vld [vmem:[%s5116_s10 + $0x68] sm:$0xff] }
  0xff   : > { %2874 = vmatpush3.msra.mxu1 %v964_v26  ;;  %2565 = vmatprep.subr.mxu0 %v947_v27  ;;  %v956_v50 = vld [vmem:[%s5114_s0 + $0x100] sm:$0xff]  ;;  %v985_v60 = vld [vmem:[%s5116_s10 + $0x58] sm:$0xff]  ;;  %v984_v61 = vld [vmem:[%s5116_s10 + $0x50] sm:$0xff] }
 0x100   : > { %2875 = vmatprep.subr.mxu1 %v3829_v1  ;;  %2566 = vmatpush3.msra.mxu0 %v931_v28  ;;  %v914_v51 = vld [vmem:[%s904_s28] sm:$0xff]  ;;  %v983_v62 = vld [vmem:[%s5116_s10 + $0x48] sm:$0xff]  ;;  %v981_v2 = vld [vmem:[%s5116_s10 + $0x38] sm:$0xff] }
 0x101   : > { %2876 = vmatpush3.msra.mxu1 %v963_v29  ;;  %2567 = vmatprep.subr.mxu0 %v946_v30  ;;  %v986_v59 = vld [vmem:[%s5116_s10 + $0x60] sm:$0xff]  ;;  %v980_v3 = vld [vmem:[%s5116_s10 + $0x30] sm:$0xff]  ;;  %v979_v4 = vld [vmem:[%s5116_s10 + $0x28] sm:$0xff] }
 0x102   : > { %2877 = vmatprep.subr.mxu1 %v3829_v1  ;;  %2568 = vmatpush3.msra.mxu0 %v930_v31  ;;  %v982_v63 = vld [vmem:[%s5116_s10 + $0x40] sm:$0xff]  ;;  %v977_v6 = vld [vmem:[%s5116_s10 + $0x18] sm:$0xff]  ;;  %v976_v7 = vld [vmem:[%s5116_s10 + $0x10] sm:$0xff] }
 0x103   : > { %2878 = vmatpush3.msra.mxu1 %v962_v32  ;;  %2569 = vmatprep.subr.mxu0 %v945_v33  ;;  %v978_v5 = vld [vmem:[%s5116_s10 + $0x20] sm:$0xff]  ;;  %v975_v8 = vld [vmem:[%s5116_s10 + $0x8] sm:$0xff]  ;;  %v2537_v12 = vld [vmem:[#allocation3] ss:$0 sm:$0xff] }
 0x104   : > { %2879 = vmatprep.subr.mxu1 %v3829_v1  ;;  %2570 = vmatpush3.msra.mxu0 %v929_v34  ;;  %v974_v9 = vld [vmem:[%s5116_s10] sm:$0xff]  ;;  %v1340_v22 = vld [vmem:[%s5059_s8 + $0xf8] sm:$0xff]  ;;  %v1339_v25 = vld [vmem:[%s5059_s8 + $0xf0] sm:$0xff] }
 0x105   : > { %2880 = vmatpush3.msra.mxu1 %v961_v35  ;;  %2571 = vmatprep.subr.mxu0 %v944_v36  ;;  %v1324_v23 = vld [vmem:[%s5059_s8 + $0x78] sm:$0xff]  ;;  %v1323_v26 = vld [vmem:[%s5059_s8 + $0x70] sm:$0xff]  ;;  %v1338_v28 = vld [vmem:[%s5059_s8 + $0xe8] sm:$0xff] }
 0x106   : > { %2881 = vmatprep.subr.mxu1 %v3829_v1  ;;  %2572 = vmatpush3.msra.mxu0 %v928_v37  ;;  %v1356_v24 = vld [vmem:[%s5059_s8 + $0x178] sm:$0xff]  ;;  %v1355_v27 = vld [vmem:[%s5059_s8 + $0x170] sm:$0xff]  ;;  %v1354_v29 = vld [vmem:[%s5059_s8 + $0x168] sm:$0xff] }
 0x107   : > { %2882 = vmatpush3.msra.mxu1 %v960_v38  ;;  %2573 = vmatprep.subr.mxu0 %v943_v39  ;;  %v1322_v30 = vld [vmem:[%s5059_s8 + $0x68] sm:$0xff]  ;;  %v1337_v31 = vld [vmem:[%s5059_s8 + $0xe0] sm:$0xff]  ;;  %v1336_v34 = vld [vmem:[%s5059_s8 + $0xd8] sm:$0xff] }
 0x108   : > { %2883 = vmatprep.subr.mxu1 %v3829_v1  ;;  %2574 = vmatpush3.msra.mxu0 %v927_v40  ;;  %v1353_v32 = vld [vmem:[%s5059_s8 + $0x160] sm:$0xff]  ;;  %v1352_v35 = vld [vmem:[%s5059_s8 + $0x158] sm:$0xff]  ;;  %v1335_v37 = vld [vmem:[%s5059_s8 + $0xd0] sm:$0xff] }
 0x109   : > { %2884 = vmatpush3.msra.mxu1 %v959_v41  ;;  %2575 = vmatprep.subr.mxu0 %v942_v42  ;;  %v1321_v33 = vld [vmem:[%s5059_s8 + $0x60] sm:$0xff]  ;;  %v1320_v36 = vld [vmem:[%s5059_s8 + $0x58] sm:$0xff]  ;;  %v1351_v38 = vld [vmem:[%s5059_s8 + $0x150] sm:$0xff] }
 0x10a   : > { %2885 = vmatprep.subr.mxu1 %v3829_v1  ;;  %2576 = vmatpush3.msra.mxu0 %v926_v43  ;;  %v1319_v39 = vld [vmem:[%s5059_s8 + $0x50] sm:$0xff]  ;;  %v1334_v40 = vld [vmem:[%s5059_s8 + $0xc8] sm:$0xff]  ;;  %v1333_v43 = vld [vmem:[%s5059_s8 + $0xc0] sm:$0xff] }
 0x10b   : > { %2886 = vmatpush3.msra.mxu1 %v958_v44  ;;  %2577 = vmatprep.subr.mxu0 %v941_v45  ;;  %v1350_v41 = vld [vmem:[%s5059_s8 + $0x148] sm:$0xff]  ;;  %v1349_v44 = vld [vmem:[%s5059_s8 + $0x140] sm:$0xff] }
 0x10c   : > { %2887 = vmatprep.subr.mxu1 %v3829_v1  ;;  %2578 = vmatpush3.msra.mxu0 %v925_v46  ;;  %v1318_v42 = vld [vmem:[%s5059_s8 + $0x48] sm:$0xff]  ;;  %v1317_v45 = vld [vmem:[%s5059_s8 + $0x40] sm:$0xff]  ;;  %v1332_v46 = vld [vmem:[%s5059_s8 + $0xb8] sm:$0xff] }
 0x10d   : > { %2888 = vmatpush3.msra.mxu1 %v957_v47  ;;  %2579 = vmatprep.subr.mxu0 %v940_v48  ;;  %v1348_v47 = vld [vmem:[%s5059_s8 + $0x138] sm:$0xff] }
 0x10e   : > { %2889 = vmatprep.subr.mxu1 %v3829_v1  ;;  %2580 = vmatpush3.msra.mxu0 %v924_v49  ;;  %v1316_v48 = vld [vmem:[%s5059_s8 + $0x38] sm:$0xff]  ;;  %v1331_v49 = vld [vmem:[%s5059_s8 + $0xb0] sm:$0xff] }
 0x10f   : > { %2890 = vmatpush3.msra.mxu1 %v956_v50  ;;  %2894 = vmatprep.subr.mxu0 %v3829_v1  ;;  %v1347_v50 = vld [vmem:[%s5059_s8 + $0x130] sm:$0xff] }
 0x110   : > { %2929 = vmatprep.subr.mxu1 %v3829_v1 }
 0x16a   : > { %v4322_v52 = vpop.permute.xlu0 %917 }
 0x16b   : > { %v920_v53 = vmul.f32 %v4322_v52, %v914_v51  ;;  %v1315_v51 = vld [vmem:[%s5059_s8 + $0x30] sm:$0xff] }
 0x16d   : > { %992 = vst [vmem:[#allocation2 + $0x8] sm:$0xff] %v920_v53  ;;  %1065 = vmatprep.mubr.f32.mxu0 %v920_v53  ;;  %v1330_v53 = vld [vmem:[%s5059_s8 + $0xa8] sm:$0xff] }
 0x174   : > { %v993_v55 = vld [vmem:[#allocation2 + $0x7] sm:$0xff] }
 0x175   : > { %v994_v56 = vld [vmem:[#allocation2 + $0x9] sm:$0xff]  ;;  %1066 = vmatmul.mubr.f32.vlgmr.msra.gmra.mxu0 %v993_v55 }
 0x176   : > { %2892 = vmatmul.mubr.f32.vlgmr.msra.gmra.mxu1 %v994_v56  ;;  %2895 = vmatpush3.msra.mxu0 %v989_v54  ;;  %v1314_v55 = vld [vmem:[%s5059_s8 + $0x28] sm:$0xff]  ;;  %v1329_v56 = vld [vmem:[%s5059_s8 + $0xa0] sm:$0xff] }
 0x177   : > { %2926 = vmatprep.mubr.msk.f32.mxu0 %vm3830_vm0, %v3829_v1  ;;  %2896 = vmatprep.subr.mxu0 %v3829_v1 }
 0x178   : > { %2930 = vmatpush3.msra.mxu1 %v989_v54  ;;  %2897 = vmatpush3.msra.mxu0 %v988_v57  ;;  %v1346_v54 = vld [vmem:[%s5059_s8 + $0x128] sm:$0xff] }
 0x179   : > { %2931 = vmatprep.subr.mxu1 %v3829_v1  ;;  %2898 = vmatprep.subr.mxu0 %v3829_v1 }
 0x17a   : > { %2932 = vmatpush3.msra.mxu1 %v988_v57  ;;  %2899 = vmatpush3.msra.mxu0 %v987_v58  ;;  %v1345_v57 = vld [vmem:[%s5059_s8 + $0x120] sm:$0xff] }
 0x17b   : > { %2933 = vmatprep.subr.mxu1 %v3829_v1  ;;  %2900 = vmatprep.subr.mxu0 %v3829_v1 }
 0x17c   : > { %2934 = vmatpush3.msra.mxu1 %v987_v58  ;;  %2901 = vmatpush3.msra.mxu0 %v986_v59  ;;  %v1313_v58 = vld [vmem:[%s5059_s8 + $0x20] sm:$0xff] }
 0x17d   : > { %2935 = vmatprep.subr.mxu1 %v3829_v1  ;;  %2902 = vmatprep.subr.mxu0 %v3829_v1 }
 0x17e   : > { %2936 = vmatpush3.msra.mxu1 %v986_v59  ;;  %2903 = vmatpush3.msra.mxu0 %v985_v60  ;;  %v1328_v59 = vld [vmem:[%s5059_s8 + $0x98] sm:$0xff] }
 0x17f   : > { %2937 = vmatprep.subr.mxu1 %v3829_v1  ;;  %2904 = vmatprep.subr.mxu0 %v3829_v1 }
 0x180   : > { %2938 = vmatpush3.msra.mxu1 %v985_v60  ;;  %2905 = vmatpush3.msra.mxu0 %v984_v61  ;;  %v1312_v60 = vld [vmem:[%s5059_s8 + $0x18] sm:$0xff] }
 0x181   : > { %2939 = vmatprep.subr.mxu1 %v3829_v1  ;;  %2906 = vmatprep.subr.mxu0 %v3829_v1 }
 0x182   : > { %2940 = vmatpush3.msra.mxu1 %v984_v61  ;;  %2907 = vmatpush3.msra.mxu0 %v983_v62  ;;  %v1344_v61 = vld [vmem:[%s5059_s8 + $0x118] sm:$0xff] }
 0x183   : > { %2941 = vmatprep.subr.mxu1 %v3829_v1  ;;  %2908 = vmatprep.subr.mxu0 %v3829_v1 }
 0x184   : > { %2942 = vmatpush3.msra.mxu1 %v983_v62  ;;  %2909 = vmatpush3.msra.mxu0 %v982_v63  ;;  %v1327_v62 = vld [vmem:[%s5059_s8 + $0x90] sm:$0xff] }
 0x185   : > { %2943 = vmatprep.subr.mxu1 %v3829_v1  ;;  %2910 = vmatprep.subr.mxu0 %v3829_v1 }
 0x186   : > { %2944 = vmatpush3.msra.mxu1 %v982_v63  ;;  %2911 = vmatpush3.msra.mxu0 %v981_v2  ;;  %v1311_v63 = vld [vmem:[%s5059_s8 + $0x10] sm:$0xff] }
 0x187   : > { %2945 = vmatprep.subr.mxu1 %v3829_v1  ;;  %2912 = vmatprep.subr.mxu0 %v3829_v1 }
 0x188   : > { %2946 = vmatpush3.msra.mxu1 %v981_v2  ;;  %2913 = vmatpush3.msra.mxu0 %v980_v3  ;;  %v1343_v2 = vld [vmem:[%s5059_s8 + $0x110] sm:$0xff] }
 0x189   : > { %2947 = vmatprep.subr.mxu1 %v3829_v1  ;;  %2914 = vmatprep.subr.mxu0 %v3829_v1 }
 0x18a   : > { %2948 = vmatpush3.msra.mxu1 %v980_v3  ;;  %2915 = vmatpush3.msra.mxu0 %v979_v4  ;;  %v1326_v3 = vld [vmem:[%s5059_s8 + $0x88] sm:$0xff] }
 0x18b   : > { %2949 = vmatprep.subr.mxu1 %v3829_v1  ;;  %2916 = vmatprep.subr.mxu0 %v3829_v1 }
 0x18c   : > { %2950 = vmatpush3.msra.mxu1 %v979_v4  ;;  %2961 = vmatprep.mubr.msk.f32.mxu1 %vm3830_vm0, %v3829_v1  ;;  %v1310_v4 = vld [vmem:[%s5059_s8 + $0x8] sm:$0xff] }
 0x18d   : > { %2951 = vmatprep.subr.mxu1 %v3829_v1  ;;  %2917 = vmatpush3.msra.mxu0 %v978_v5 }
 0x18e   : > { %2952 = vmatpush3.msra.mxu1 %v978_v5  ;;  %2918 = vmatprep.subr.mxu0 %v3829_v1  ;;  %v1342_v5 = vld [vmem:[%s5059_s8 + $0x108] sm:$0xff] }
 0x18f   : > { %2953 = vmatprep.subr.mxu1 %v3829_v1  ;;  %2919 = vmatpush3.msra.mxu0 %v977_v6 }
 0x190   : > { %2954 = vmatpush3.msra.mxu1 %v977_v6  ;;  %2920 = vmatprep.subr.mxu0 %v3829_v1  ;;  %v1325_v6 = vld [vmem:[%s5059_s8 + $0x80] sm:$0xff] }
 0x191   : > { %2955 = vmatprep.subr.mxu1 %v3829_v1  ;;  %2921 = vmatpush3.msra.mxu0 %v976_v7 }
 0x192   : > { %2956 = vmatpush3.msra.mxu1 %v976_v7  ;;  %2922 = vmatprep.subr.mxu0 %v3829_v1  ;;  %v1309_v7 = vld [vmem:[%s5059_s8] sm:$0xff] }
 0x193   : > { %2957 = vmatprep.subr.mxu1 %v3829_v1  ;;  %2923 = vmatpush3.msra.mxu0 %v975_v8 }
 0x194   : > { %2958 = vmatpush3.msra.mxu1 %v975_v8  ;;  %2924 = vmatprep.subr.mxu0 %v3829_v1  ;;  %v1341_v8 = vld [vmem:[%s5059_s8 + $0x100] sm:$0xff] }
 0x195   : > { %2959 = vmatprep.subr.mxu1 %v3829_v1  ;;  %2925 = vmatpush3.msra.mxu0 %v974_v9 }
 0x196   : > { %2960 = vmatpush3.msra.mxu1 %v974_v9  ;;  %2635 = vmatprep.subr.mxu0 %v1340_v22 }
 0x197   : > { %2964 = vmatprep.subr.mxu1 %v3829_v1 }
 0x235   : > { %v2581_v10 = vpop.f32.mrf.mxu0 }
 0x236   : > { %v1137_v11 = vpop.f32.mrf.mxu1 }
 0x237   : > { %v2582_v13 = vpop.f32.mrf.mxu0 }
 0x238   : > { %v2893_v14 = vpop.f32.mrf.mxu1  ;;  %v2583_v15 = vadd.f32 %v2582_v13, %v2581_v10  ;;  %v973_v13 = vld [vmem:[#allocation5] sm:$0x1] }
 0x239   : > { %vm1299_vm1 = vcmp.gt.f32.partialorder %v973_v13, 0.0  ;;  %v1704_v13 = vld [vmem:[%s5065_s14 + $0x50] sm:$0xff] }
 0x23a   : > { %v1068_v16 = vadd.f32 %v2583_v15, %v2537_v12  ;;  %v1302_v12 = vlaneseq }
 0x23c   : > { %v1138_v17 = vadd.f32 %v1137_v11, %v1068_v16  ;;  %v1303_v14 = vshrl.u32 %v1302_v12, 7  ;;  %v1301_v16 = vsel %vm1299_vm1, 1, %v3828_v0  ;;  %v1736_v12 = vld [vmem:[%s5065_s14 + $0x150] sm:$0xff] }
 0x23e   : > { %2927 = vmatmul.mubr.f32.vlgmr.msra.gmra.mxu0 %v1138_v17  ;;  %v4575_v15 = vsub.s32 0, %v1303_v14  ;;  %v1719_v14 = vld [vmem:[%s5065_s14 + $0xc8] sm:$0xff] }
 0x23f   : > { %2636 = vmatpush3.msra.mxu0 %v1324_v23 }
 0x240   : > { %2637 = vmatprep.subr.mxu0 %v1339_v25  ;;  %v1305_v22 = vrot.slane %v1301_v16, %v4575_v15  ;;  %v1735_v16 = vld [vmem:[%s5065_s14 + $0x148] sm:$0xff] }
 0x241   : > { %2638 = vmatpush3.msra.mxu0 %v1323_v26 }
 0x242   : > { %2639 = vmatprep.subr.mxu0 %v1338_v28  ;;  %vm1306_vm2 = vcmp.eq.s32.totalorder %v1305_v22, 1  ;;  %v1374_v28 = vld [vmem:[%s5062_s11 + $0x78] sm:$0xff]  ;;  %v4748_v22 = vld [vmem:[#allocation2] sm:$0xff] }
 0x243   : > { %2640 = vmatpush3.msra.mxu0 %v1322_v30 }
 0x244   : > { %2641 = vmatprep.subr.mxu0 %v1337_v31  ;;  %v1372_v31 = vld [vmem:[%s5062_s11 + $0x68] sm:$0xff] }
 0x245   : > { %2642 = vmatpush3.msra.mxu0 %v1321_v33  ;;  %v1370_v33 = vld [vmem:[%s5062_s11 + $0x58] sm:$0xff] }
 0x246   : > { %2643 = vmatprep.subr.mxu0 %v1336_v34  ;;  %v1369_v34 = vld [vmem:[%s5062_s11 + $0x50] sm:$0xff] }
 0x247   : > { %2644 = vmatpush3.msra.mxu0 %v1320_v36  ;;  %v1367_v36 = vld [vmem:[%s5062_s11 + $0x40] sm:$0xff] }
 0x248   : > { %2645 = vmatprep.subr.mxu0 %v1335_v37  ;;  %v1366_v37 = vld [vmem:[%s5062_s11 + $0x38] sm:$0xff] }
 0x249   : > { %2646 = vmatpush3.msra.mxu0 %v1319_v39  ;;  %v1364_v39 = vld [vmem:[%s5062_s11 + $0x28] sm:$0xff] }
 0x24a   : > { %2647 = vmatprep.subr.mxu0 %v1334_v40  ;;  %v1363_v40 = vld [vmem:[%s5062_s11 + $0x20] sm:$0xff] }
 0x24b   : > { %2648 = vmatpush3.msra.mxu0 %v1318_v42  ;;  %v1361_v42 = vld [vmem:[%s5062_s11 + $0x10] sm:$0xff] }
 0x24c   : > { %2649 = vmatprep.subr.mxu0 %v1333_v43  ;;  %v1360_v43 = vld [vmem:[%s5062_s11 + $0x8] sm:$0xff] }
 0x24d   : > { %2650 = vmatpush3.msra.mxu0 %v1317_v45 }
 0x24e   : > { %2651 = vmatprep.subr.mxu0 %v1332_v46 }
 0x24f   : > { %2652 = vmatpush3.msra.mxu0 %v1316_v48 }
 0x250   : > { %2653 = vmatprep.subr.mxu0 %v1331_v49 }
 0x251   : > { %2654 = vmatpush3.msra.mxu0 %v1315_v51 }
 0x252   : > { %2655 = vmatprep.subr.mxu0 %v1330_v53 }
 0x253   : > { %2656 = vmatpush3.msra.mxu0 %v1314_v55 }
 0x254   : > { %2657 = vmatprep.subr.mxu0 %v1329_v56 }
 0x255   : > { %2658 = vmatpush3.msra.mxu0 %v1313_v58  ;;  %v1725_v58 = vld [vmem:[%s5065_s14 + $0xf8] sm:$0xff] }
 0x256   : > { %2659 = vmatprep.subr.mxu0 %v1328_v59  ;;  %v1709_v59 = vld [vmem:[%s5065_s14 + $0x78] sm:$0xff] }
 0x257   : > { %2660 = vmatpush3.msra.mxu0 %v1312_v60  ;;  %v1741_v60 = vld [vmem:[%s5065_s14 + $0x178] sm:$0xff] }
 0x258   : > { %2661 = vmatprep.subr.mxu0 %v1327_v62  ;;  %v1708_v62 = vld [vmem:[%s5065_s14 + $0x70] sm:$0xff] }
 0x259   : > { %2662 = vmatpush3.msra.mxu0 %v1311_v63  ;;  %v1740_v63 = vld [vmem:[%s5065_s14 + $0x170] sm:$0xff] }
 0x25a   : > { %2663 = vmatprep.subr.mxu0 %v1326_v3  ;;  %v1739_v3 = vld [vmem:[%s5065_s14 + $0x168] sm:$0xff] }
 0x25b   : > { %2664 = vmatpush3.msra.mxu0 %v1310_v4  ;;  %v1707_v4 = vld [vmem:[%s5065_s14 + $0x68] sm:$0xff] }
 0x25c   : > { %2665 = vmatprep.subr.mxu0 %v1325_v6  ;;  %v1738_v6 = vld [vmem:[%s5065_s14 + $0x160] sm:$0xff] }
 0x25d   : > { %2666 = vmatpush3.msra.mxu0 %v1309_v7  ;;  %v1706_v7 = vld [vmem:[%s5065_s14 + $0x60] sm:$0xff] }
 0x25e   : > { %2999 = vmatprep.subr.mxu0 %v3829_v1 }
 0x2fe   : > { %v1207_v18 = vpop.f32.mrf.mxu0 }
 0x2ff   : > { %v4408_v19 = vsub.f32 %v1138_v17, %v1207_v18  ;;  %v2538_v18 = vld [vmem:[#allocation7] ss:$0 sm:$0xff] }
 0x300   : > { %v2928_v20 = vpop.f32.mrf.mxu0 }
 0x301   : > { %v1212_v21 = vmul.f32 %v4408_v19, %v4408_v19 }
 0x303   : > { %2962 = vmatmul.mubr.f32.vlgmr.msra.gmra.mxu1 %v1212_v21  ;;  %v2539_v21 = vld [vmem:[#allocation8] ss:$0 sm:$0xff] }
 0x304   : > { %2996 = vmatprep.mubr.msk.f32.mxu1 %vm3830_vm0, %v3829_v1  ;;  %2965 = vmatpush3.msra.mxu1 %v1356_v24 }
 0x305   : > { %2966 = vmatprep.subr.mxu1 %v3829_v1 }
 0x306   : > { %2967 = vmatpush3.msra.mxu1 %v1355_v27 }
 0x307   : > { %2968 = vmatprep.subr.mxu1 %v3829_v1 }
 0x308   : > { %2969 = vmatpush3.msra.mxu1 %v1354_v29 }
 0x309   : > { %2970 = vmatprep.subr.mxu1 %v3829_v1 }
 0x30a   : > { %2971 = vmatpush3.msra.mxu1 %v1353_v32  ;;  %v1371_v32 = vld [vmem:[%s5062_s11 + $0x60] sm:$0xff] }
 0x30b   : > { %2972 = vmatprep.subr.mxu1 %v3829_v1 }
 0x30c   : > { %2973 = vmatpush3.msra.mxu1 %v1352_v35  ;;  %v1368_v35 = vld [vmem:[%s5062_s11 + $0x48] sm:$0xff] }
 0x30d   : > { %2974 = vmatprep.subr.mxu1 %v3829_v1 }
 0x30e   : > { %2975 = vmatpush3.msra.mxu1 %v1351_v38  ;;  %v1365_v38 = vld [vmem:[%s5062_s11 + $0x30] sm:$0xff] }
 0x30f   : > { %2976 = vmatprep.subr.mxu1 %v3829_v1 }
 0x310   : > { %2977 = vmatpush3.msra.mxu1 %v1350_v41  ;;  %v1362_v41 = vld [vmem:[%s5062_s11 + $0x18] sm:$0xff] }
 0x311   : > { %2978 = vmatprep.subr.mxu1 %v3829_v1 }
 0x312   : > { %2979 = vmatpush3.msra.mxu1 %v1349_v44  ;;  %v1359_v44 = vld [vmem:[%s5062_s11] sm:$0xff] }
 0x313   : > { %2980 = vmatprep.subr.mxu1 %v3829_v1 }
 0x314   : > { %2981 = vmatpush3.msra.mxu1 %v1348_v47  ;;  %v2540_v47 = vld [vmem:[#allocation10] ss:$0 sm:$0xff] }
 0x315   : > { %2982 = vmatprep.subr.mxu1 %v3829_v1 }
 0x316   : > { %2983 = vmatpush3.msra.mxu1 %v1347_v50 }
 0x317   : > { %2984 = vmatprep.subr.mxu1 %v3829_v1 }
 0x318   : > { %2985 = vmatpush3.msra.mxu1 %v1346_v54 }
 0x319   : > { %2986 = vmatprep.subr.mxu1 %v3829_v1 }
 0x31a   : > { %2987 = vmatpush3.msra.mxu1 %v1345_v57 }
 0x31b   : > { %2988 = vmatprep.subr.mxu1 %v3829_v1 }
 0x31c   : > { %2989 = vmatpush3.msra.mxu1 %v1344_v61  ;;  %v1724_v61 = vld [vmem:[%s5065_s14 + $0xf0] sm:$0xff] }
 0x31d   : > { %2990 = vmatprep.subr.mxu1 %v3829_v1 }
 0x31e   : > { %2991 = vmatpush3.msra.mxu1 %v1343_v2  ;;  %v1723_v2 = vld [vmem:[%s5065_s14 + $0xe8] sm:$0xff] }
 0x31f   : > { %2992 = vmatprep.subr.mxu1 %v3829_v1 }
 0x320   : > { %2993 = vmatpush3.msra.mxu1 %v1342_v5  ;;  %v1722_v5 = vld [vmem:[%s5065_s14 + $0xe0] sm:$0xff] }
 0x321   : > { %2994 = vmatprep.subr.mxu1 %v3829_v1 }
 0x322   : > { %2995 = vmatpush3.msra.mxu1 %v1341_v8  ;;  %v1721_v8 = vld [vmem:[%s5065_s14 + $0xd8] sm:$0xff] }
 0x323   : > { %3034 = vmatprep.subr.mxu1 %v3829_v1 }
 0x3c3   : > { %v1279_v9 = vpop.f32.mrf.mxu1 }
 0x3c4   : > { %v1280_v10 = vadd.f32 1e-05, %v1279_v9  ;;  %v1737_v9 = vld [vmem:[%s5065_s14 + $0x158] sm:$0xff] }
 0x3c5   : > { %v2963_v11 = vpop.f32.mrf.mxu1 }
 0x3c6   : > { %3374 = vrsqrt.f32 %v1280_v10  ;;  %v1705_v10 = vld [vmem:[%s5065_s14 + $0x58] sm:$0xff]  ;;  %v1720_v11 = vld [vmem:[%s5065_s14 + $0xd0] sm:$0xff] }
 0x3d3   : > { %v3375_v17 = vpop.eup %3374 }
 0x3d4   : > { %v1284_v20 = vmul.f32 %v3375_v17, %v4408_v19  ;;  %v1373_v19 = vld [vmem:[%s5062_s11 + $0x70] sm:$0xff]  ;;  %v1703_v17 = vld [vmem:[%s5065_s14 + $0x48] sm:$0xff] }
 0x3d6   : > { %v1291_v23 = vmul.f32 %v2538_v18, %v1284_v20  ;;  %v1718_v18 = vld [vmem:[%s5065_s14 + $0xc0] sm:$0xff] }
 0x3d7   : > { %v1734_v20 = vld [vmem:[%s5065_s14 + $0x140] sm:$0xff] }
 0x3d8   : > { %v1298_v24 = vadd.f32 %v2539_v21, %v1291_v23  ;;  %v1702_v21 = vld [vmem:[%s5065_s14 + $0x40] sm:$0xff]  ;;  %v1733_v23 = vld [vmem:[%s5065_s14 + $0x138] sm:$0xff] }
 0x3da   : > { %v1300_v25 = vmax.f32 %v1298_v24, 0.0 }
 0x3dc   : > { %v1307_v26 = vsel %vm1306_vm2, %v1300_v25, %v1298_v24  ;;  %v1701_v24 = vld [vmem:[%s5065_s14 + $0x38] sm:$0xff]  ;;  %v1716_v25 = vld [vmem:[%s5065_s14 + $0xb0] sm:$0xff] }
 0x3dd   : > { %v1308_v27 = vmul.f32 %v1307_v26, %v4322_v52  ;;  %v1732_v26 = vld [vmem:[%s5065_s14 + $0x130] sm:$0xff] }
 0x3df   : > { %1377 = vst [vmem:[#allocation2 + $0x8] sm:$0xff] %v1308_v27  ;;  %1450 = vmatprep.mubr.f32.mxu0 %v1308_v27  ;;  %v1700_v27 = vld [vmem:[%s5065_s14 + $0x30] sm:$0xff] }
 0x3e6   : > { %v1378_v29 = vld [vmem:[#allocation2 + $0x7] sm:$0xff] }
 0x3e7   : > { %v1379_v30 = vld [vmem:[#allocation2 + $0x9] sm:$0xff]  ;;  %1451 = vmatmul.mubr.f32.vlgmr.msra.gmra.mxu0 %v1378_v29 }
 0x3e8   : > { %2997 = vmatmul.mubr.f32.vlgmr.msra.gmra.mxu1 %v1379_v30  ;;  %3000 = vmatpush3.msra.mxu0 %v1374_v28  ;;  %v1731_v29 = vld [vmem:[%s5065_s14 + $0x128] sm:$0xff] }
 0x3e9   : > { %3031 = vmatprep.mubr.msk.f32.mxu0 %vm3830_vm0, %v3829_v1  ;;  %3001 = vmatprep.subr.mxu0 %v3829_v1  ;;  %v1699_v30 = vld [vmem:[%s5065_s14 + $0x28] sm:$0xff] }
 0x3ea   : > { %3035 = vmatpush3.msra.mxu1 %v1374_v28  ;;  %3002 = vmatpush3.msra.mxu0 %v1373_v19  ;;  %v1715_v28 = vld [vmem:[%s5065_s14 + $0xa8] sm:$0xff] }
 0x3eb   : > { %3036 = vmatprep.subr.mxu1 %v3829_v1  ;;  %3003 = vmatprep.subr.mxu0 %v3829_v1 }
 0x3ec   : > { %3037 = vmatpush3.msra.mxu1 %v1373_v19  ;;  %3004 = vmatpush3.msra.mxu0 %v1372_v31  ;;  %v1714_v19 = vld [vmem:[%s5065_s14 + $0xa0] sm:$0xff] }
 0x3ed   : > { %3038 = vmatprep.subr.mxu1 %v3829_v1  ;;  %3005 = vmatprep.subr.mxu0 %v3829_v1 }
 0x3ee   : > { %3039 = vmatpush3.msra.mxu1 %v1372_v31  ;;  %3006 = vmatpush3.msra.mxu0 %v1371_v32  ;;  %v1730_v31 = vld [vmem:[%s5065_s14 + $0x120] sm:$0xff] }
 0x3ef   : > { %3040 = vmatprep.subr.mxu1 %v3829_v1  ;;  %3007 = vmatprep.subr.mxu0 %v3829_v1 }
 0x3f0   : > { %3041 = vmatpush3.msra.mxu1 %v1371_v32  ;;  %3008 = vmatpush3.msra.mxu0 %v1370_v33  ;;  %v1698_v32 = vld [vmem:[%s5065_s14 + $0x20] sm:$0xff] }
 0x3f1   : > { %3042 = vmatprep.subr.mxu1 %v3829_v1  ;;  %3009 = vmatprep.subr.mxu0 %v3829_v1 }
 0x3f2   : > { %3043 = vmatpush3.msra.mxu1 %v1370_v33  ;;  %3010 = vmatpush3.msra.mxu0 %v1369_v34  ;;  %v1713_v33 = vld [vmem:[%s5065_s14 + $0x98] sm:$0xff] }
 0x3f3   : > { %3044 = vmatprep.subr.mxu1 %v3829_v1  ;;  %3011 = vmatprep.subr.mxu0 %v3829_v1 }
 0x3f4   : > { %3045 = vmatpush3.msra.mxu1 %v1369_v34  ;;  %3012 = vmatpush3.msra.mxu0 %v1368_v35  ;;  %v1697_v34 = vld [vmem:[%s5065_s14 + $0x18] sm:$0xff] }
 0x3f5   : > { %3046 = vmatprep.subr.mxu1 %v3829_v1  ;;  %3013 = vmatprep.subr.mxu0 %v3829_v1 }
 0x3f6   : > { %3047 = vmatpush3.msra.mxu1 %v1368_v35  ;;  %3014 = vmatpush3.msra.mxu0 %v1367_v36  ;;  %v1729_v35 = vld [vmem:[%s5065_s14 + $0x118] sm:$0xff] }
 0x3f7   : > { %3048 = vmatprep.subr.mxu1 %v3829_v1  ;;  %3015 = vmatprep.subr.mxu0 %v3829_v1 }
 0x3f8   : > { %3049 = vmatpush3.msra.mxu1 %v1367_v36  ;;  %3016 = vmatpush3.msra.mxu0 %v1366_v37  ;;  %v1712_v36 = vld [vmem:[%s5065_s14 + $0x90] sm:$0xff] }
 0x3f9   : > { %3050 = vmatprep.subr.mxu1 %v3829_v1  ;;  %3017 = vmatprep.subr.mxu0 %v3829_v1 }
 0x3fa   : > { %3051 = vmatpush3.msra.mxu1 %v1366_v37  ;;  %3018 = vmatpush3.msra.mxu0 %v1365_v38  ;;  %v1696_v37 = vld [vmem:[%s5065_s14 + $0x10] sm:$0xff] }
 0x3fb   : > { %3052 = vmatprep.subr.mxu1 %v3829_v1  ;;  %3019 = vmatprep.subr.mxu0 %v3829_v1 }
 0x3fc   : > { %3053 = vmatpush3.msra.mxu1 %v1365_v38  ;;  %3020 = vmatpush3.msra.mxu0 %v1364_v39  ;;  %v1728_v38 = vld [vmem:[%s5065_s14 + $0x110] sm:$0xff] }
 0x3fd   : > { %3054 = vmatprep.subr.mxu1 %v3829_v1  ;;  %3021 = vmatprep.subr.mxu0 %v3829_v1 }
 0x3fe   : > { %3055 = vmatpush3.msra.mxu1 %v1364_v39  ;;  %3066 = vmatprep.mubr.msk.f32.mxu1 %vm3830_vm0, %v3829_v1  ;;  %v1711_v39 = vld [vmem:[%s5065_s14 + $0x88] sm:$0xff] }
 0x3ff   : > { %3056 = vmatprep.subr.mxu1 %v3829_v1  ;;  %3022 = vmatpush3.msra.mxu0 %v1363_v40 }
 0x400   : > { %3057 = vmatpush3.msra.mxu1 %v1363_v40  ;;  %3023 = vmatprep.subr.mxu0 %v3829_v1  ;;  %v1695_v40 = vld [vmem:[%s5065_s14 + $0x8] sm:$0xff] }
 0x401   : > { %3058 = vmatprep.subr.mxu1 %v3829_v1  ;;  %3024 = vmatpush3.msra.mxu0 %v1362_v41 }
 0x402   : > { %3059 = vmatpush3.msra.mxu1 %v1362_v41  ;;  %3025 = vmatprep.subr.mxu0 %v3829_v1  ;;  %v1727_v41 = vld [vmem:[%s5065_s14 + $0x108] sm:$0xff] }
 0x403   : > { %3060 = vmatprep.subr.mxu1 %v3829_v1  ;;  %3026 = vmatpush3.msra.mxu0 %v1361_v42 }
 0x404   : > { %3061 = vmatpush3.msra.mxu1 %v1361_v42  ;;  %3027 = vmatprep.subr.mxu0 %v3829_v1  ;;  %v1710_v42 = vld [vmem:[%s5065_s14 + $0x80] sm:$0xff] }
 0x405   : > { %3062 = vmatprep.subr.mxu1 %v3829_v1  ;;  %3028 = vmatpush3.msra.mxu0 %v1360_v43 }
 0x406   : > { %3063 = vmatpush3.msra.mxu1 %v1360_v43  ;;  %3029 = vmatprep.subr.mxu0 %v3829_v1  ;;  %v1694_v43 = vld [vmem:[%s5065_s14] sm:$0xff] }
 0x407   : > { %3064 = vmatprep.subr.mxu1 %v3829_v1  ;;  %3030 = vmatpush3.msra.mxu0 %v1359_v44 }
 0x408   : > { %3065 = vmatpush3.msra.mxu1 %v1359_v44  ;;  %2721 = vmatprep.subr.mxu0 %v1725_v58  ;;  %v1726_v44 = vld [vmem:[%s5065_s14 + $0x100] sm:$0xff] }
 0x409   : > { %3069 = vmatprep.subr.mxu1 %v3829_v1 }
 0x4a7   : > { %v2667_v45 = vpop.f32.mrf.mxu0 }
 0x4a8   : > { %v1522_v46 = vpop.f32.mrf.mxu1 }
 0x4a9   : > { %v2668_v48 = vpop.f32.mrf.mxu0 }
 0x4aa   : > { %v2998_v49 = vpop.f32.mrf.mxu1  ;;  %v2669_v50 = vadd.f32 %v2668_v48, %v2667_v45  ;;  %v1358_v48 = vld [vmem:[#allocation11] sm:$0x1] }
 0x4ab   : > { %vm1684_vm3 = vcmp.gt.f32.partialorder %v1358_v48, 0.0  ;;  %v2104_v48 = vld [vmem:[%s5071_s20 + $0xc8] sm:$0xff] }
 0x4ac   : > { %v1453_v51 = vadd.f32 %v2669_v50, %v2540_v47  ;;  %v1686_v49 = vsel %vm1684_vm3, 1, %v3828_v0 }
 0x4ae   : > { %v1523_v53 = vadd.f32 %v1522_v46, %v1453_v51  ;;  %v2541_v51 = vld [vmem:[#allocation13] ss:$0 sm:$0xff] }
 0x4b0   : > { %3032 = vmatmul.mubr.f32.vlgmr.msra.gmra.mxu0 %v1523_v53 }
 0x4b1   : > { %2722 = vmatpush3.msra.mxu0 %v1709_v59 }
 0x4b2   : > { %2723 = vmatprep.subr.mxu0 %v1724_v61 }
 0x4b3   : > { %2724 = vmatpush3.msra.mxu0 %v1708_v62  ;;  %v1759_v62 = vld [vmem:[#allocation19 + $0x78] sm:$0xff] }
 0x4b4   : > { %2725 = vmatprep.subr.mxu0 %v1723_v2 }
 0x4b5   : > { %2726 = vmatpush3.msra.mxu0 %v1707_v4  ;;  %v1756_v4 = vld [vmem:[#allocation19 + $0x60] sm:$0xff] }
 0x4b6   : > { %2727 = vmatprep.subr.mxu0 %v1722_v5  ;;  %v1755_v5 = vld [vmem:[#allocation19 + $0x58] sm:$0xff] }
 0x4b7   : > { %2728 = vmatpush3.msra.mxu0 %v1706_v7  ;;  %v1753_v7 = vld [vmem:[#allocation19 + $0x48] sm:$0xff] }
 0x4b8   : > { %2729 = vmatprep.subr.mxu0 %v1721_v8  ;;  %v1752_v8 = vld [vmem:[#allocation19 + $0x40] sm:$0xff] }
 0x4b9   : > { %2730 = vmatpush3.msra.mxu0 %v1705_v10  ;;  %v1750_v10 = vld [vmem:[#allocation19 + $0x30] sm:$0xff] }
 0x4ba   : > { %2731 = vmatprep.subr.mxu0 %v1720_v11  ;;  %v1749_v11 = vld [vmem:[#allocation19 + $0x28] sm:$0xff] }
 0x4bb   : > { %2732 = vmatpush3.msra.mxu0 %v1704_v13  ;;  %v1747_v13 = vld [vmem:[#allocation19 + $0x18] sm:$0xff] }
 0x4bc   : > { %2733 = vmatprep.subr.mxu0 %v1719_v14  ;;  %v1746_v14 = vld [vmem:[#allocation19 + $0x10] sm:$0xff] }
 0x4bd   : > { %2734 = vmatpush3.msra.mxu0 %v1703_v17  ;;  %v1744_v17 = vld [vmem:[#allocation19] sm:$0xff] }
 0x4be   : > { %2735 = vmatprep.subr.mxu0 %v1718_v18 }
 0x4bf   : > { %2736 = vmatpush3.msra.mxu0 %v1702_v21  ;;  %v2543_v21 = vld [vmem:[#allocation16] ss:$0 sm:$0xff] }
 0x570   : > { %v1592_v54 = vpop.f32.mrf.mxu0 }
 0x571   : > { %v4664_v55 = vsub.f32 %v1523_v53, %v1592_v54  ;;  %v2542_v54 = vld [vmem:[#allocation14] ss:$0 sm:$0xff] }
 0x572   : > { %v3033_v56 = vpop.f32.mrf.mxu0 }
 0x573   : > { %v1597_v57 = vmul.f32 %v4664_v55, %v4664_v55  ;;  %v1690_v56 = vrot.slane %v1686_v49, %v4575_v15  ;;  %v2120_v49 = vld [vmem:[%s5071_s20 + $0x148] sm:$0xff] }
 0x575   : > { %3067 = vmatmul.mubr.f32.vlgmr.msra.gmra.mxu1 %v1597_v57  ;;  %vm1691_vm4 = vcmp.eq.s32.totalorder %v1690_v56, 1  ;;  %v2102_v56 = vld [vmem:[%s5071_s20 + $0xb8] sm:$0xff] }
 0x576   : > { %3101 = vmatprep.mubr.msk.f32.mxu1 %vm3830_vm0, %v3829_v1  ;;  %3070 = vmatpush3.msra.mxu1 %v1741_v60 }
 0x577   : > { %3071 = vmatprep.subr.mxu1 %v3829_v1 }
 0x578   : > { %3072 = vmatpush3.msra.mxu1 %v1740_v63 }
 0x579   : > { %3073 = vmatprep.subr.mxu1 %v3829_v1 }
 0x57a   : > { %3074 = vmatpush3.msra.mxu1 %v1739_v3  ;;  %v1758_v3 = vld [vmem:[#allocation19 + $0x70] sm:$0xff] }
 0x57b   : > { %3075 = vmatprep.subr.mxu1 %v3829_v1 }
 0x57c   : > { %3076 = vmatpush3.msra.mxu1 %v1738_v6  ;;  %v1754_v6 = vld [vmem:[#allocation19 + $0x50] sm:$0xff] }
 0x57d   : > { %3077 = vmatprep.subr.mxu1 %v3829_v1 }
 0x57e   : > { %3078 = vmatpush3.msra.mxu1 %v1737_v9  ;;  %v1751_v9 = vld [vmem:[#allocation19 + $0x38] sm:$0xff] }
 0x57f   : > { %3079 = vmatprep.subr.mxu1 %v3829_v1 }
 0x580   : > { %3080 = vmatpush3.msra.mxu1 %v1736_v12  ;;  %v1748_v12 = vld [vmem:[#allocation19 + $0x20] sm:$0xff] }
 0x581   : > { %3081 = vmatprep.subr.mxu1 %v3829_v1  ;;  %v1717_v1 = vld [vmem:[%s5065_s14 + $0xb8] sm:$0xff] }
 0x582   : > { %3082 = vmatpush3.msra.mxu1 %v1735_v16  ;;  %2737 = vmatprep.subr.mxu0 %v1717_v1  ;;  %v1745_v16 = vld [vmem:[#allocation19 + $0x8] sm:$0xff] }
 0x583   : > { %3083 = vmatprep.subr.mxu1 %v4748_v22  ;;  %2738 = vmatpush3.msra.mxu0 %v1701_v24 }
 0x584   : > { %3084 = vmatpush3.msra.mxu1 %v1734_v20  ;;  %2739 = vmatprep.subr.mxu0 %v1716_v25 }
 0x585   : > { %3085 = vmatprep.subr.mxu1 %v4748_v22  ;;  %2740 = vmatpush3.msra.mxu0 %v1700_v27 }
 0x586   : > { %3086 = vmatpush3.msra.mxu1 %v1733_v23  ;;  %2741 = vmatprep.subr.mxu0 %v1715_v28 }
 0x587   : > { %3087 = vmatprep.subr.mxu1 %v4748_v22  ;;  %2742 = vmatpush3.msra.mxu0 %v1699_v30 }
 0x588   : > { %3088 = vmatpush3.msra.mxu1 %v1732_v26  ;;  %2743 = vmatprep.subr.mxu0 %v1714_v19  ;;  %v2110_v19 = vld [vmem:[%s5071_s20 + $0xf8] sm:$0xff] }
 0x589   : > { %3089 = vmatprep.subr.mxu1 %v4748_v22  ;;  %2744 = vmatpush3.msra.mxu0 %v1698_v32  ;;  %v2126_v32 = vld [vmem:[%s5071_s20 + $0x178] sm:$0xff] }
 0x58a   : > { %3090 = vmatpush3.msra.mxu1 %v1731_v29  ;;  %2745 = vmatprep.subr.mxu0 %v1713_v33  ;;  %v2109_v33 = vld [vmem:[%s5071_s20 + $0xf0] sm:$0xff] }
 0x58b   : > { %3091 = vmatprep.subr.mxu1 %v4748_v22  ;;  %2746 = vmatpush3.msra.mxu0 %v1697_v34  ;;  %v2093_v34 = vld [vmem:[%s5071_s20 + $0x70] sm:$0xff] }
 0x58c   : > { %3092 = vmatpush3.msra.mxu1 %v1730_v31  ;;  %2747 = vmatprep.subr.mxu0 %v1712_v36  ;;  %v2094_v31 = vld [vmem:[%s5071_s20 + $0x78] sm:$0xff]  ;;  %v2108_v36 = vld [vmem:[%s5071_s20 + $0xe8] sm:$0xff] }
 0x58d   : > { %3093 = vmatprep.subr.mxu1 %v4748_v22  ;;  %2748 = vmatpush3.msra.mxu0 %v1696_v37  ;;  %v2124_v37 = vld [vmem:[%s5071_s20 + $0x168] sm:$0xff] }
 0x58e   : > { %3094 = vmatpush3.msra.mxu1 %v1729_v35  ;;  %2749 = vmatprep.subr.mxu0 %v1711_v39  ;;  %v2125_v35 = vld [vmem:[%s5071_s20 + $0x170] sm:$0xff]  ;;  %v2107_v39 = vld [vmem:[%s5071_s20 + $0xe0] sm:$0xff] }
 0x58f   : > { %3095 = vmatprep.subr.mxu1 %v4748_v22  ;;  %2750 = vmatpush3.msra.mxu0 %v1695_v40  ;;  %v2123_v40 = vld [vmem:[%s5071_s20 + $0x160] sm:$0xff] }
 0x590   : > { %3096 = vmatpush3.msra.mxu1 %v1728_v38  ;;  %2751 = vmatprep.subr.mxu0 %v1710_v42  ;;  %v2092_v38 = vld [vmem:[%s5071_s20 + $0x68] sm:$0xff]  ;;  %v2106_v42 = vld [vmem:[%s5071_s20 + $0xd8] sm:$0xff] }
 0x591   : > { %3097 = vmatprep.subr.mxu1 %v4748_v22  ;;  %2752 = vmatpush3.msra.mxu0 %v1694_v43  ;;  %v2122_v43 = vld [vmem:[%s5071_s20 + $0x158] sm:$0xff] }
 0x592   : > { %3098 = vmatpush3.msra.mxu1 %v1727_v41  ;;  %3104 = vmatprep.subr.mxu0 %v4748_v22  ;;  %v2091_v41 = vld [vmem:[%s5071_s20 + $0x60] sm:$0xff] }
 0x593   : > { %3099 = vmatprep.subr.mxu1 %v4748_v22 }
 0x594   : > { %3100 = vmatpush3.msra.mxu1 %v1726_v44  ;;  %v2090_v44 = vld [vmem:[%s5071_s20 + $0x58] sm:$0xff] }
 0x595   : > { %3139 = vmatprep.subr.mxu1 %v4748_v22 }
 0x635   : > { %v1664_v45 = vpop.f32.mrf.mxu1 }
 0x636   : > { %v1665_v46 = vadd.f32 1e-05, %v1664_v45  ;;  %v2105_v45 = vld [vmem:[%s5071_s20 + $0xd0] sm:$0xff] }
 0x637   : > { %v3068_v47 = vpop.f32.mrf.mxu1 }
 0x638   : > { %3376 = vrsqrt.f32 %v1665_v46  ;;  %v2121_v46 = vld [vmem:[%s5071_s20 + $0x150] sm:$0xff] }
 0x639   : > { %v2089_v47 = vld [vmem:[%s5071_s20 + $0x50] sm:$0xff] }
 0x645   : > { %v3377_v50 = vpop.eup %3376 }
 0x646   : > { %v1669_v53 = vmul.f32 %v3377_v50, %v4664_v55  ;;  %v1757_v55 = vld [vmem:[#allocation19 + $0x68] sm:$0xff]  ;;  %v2088_v50 = vld [vmem:[%s5071_s20 + $0x48] sm:$0xff] }
 0x648   : > { %v1676_v57 = vmul.f32 %v2541_v51, %v1669_v53  ;;  %v2103_v51 = vld [vmem:[%s5071_s20 + $0xc0] sm:$0xff] }
 0x649   : > { %v2119_v53 = vld [vmem:[%s5071_s20 + $0x140] sm:$0xff] }
 0x64a   : > { %v1683_v58 = vadd.f32 %v2542_v54, %v1676_v57  ;;  %v2087_v54 = vld [vmem:[%s5071_s20 + $0x40] sm:$0xff]  ;;  %v2118_v57 = vld [vmem:[%s5071_s20 + $0x138] sm:$0xff] }
 0x64c   : > { %v1685_v59 = vmax.f32 %v1683_v58, 0.0 }
 0x64e   : > { %v1692_v60 = vsel %vm1691_vm4, %v1685_v59, %v1683_v58  ;;  %v2086_v58 = vld [vmem:[%s5071_s20 + $0x38] sm:$0xff]  ;;  %v2101_v59 = vld [vmem:[%s5071_s20 + $0xb0] sm:$0xff] }
 0x64f   : > { %v1693_v61 = vmul.f32 %v1692_v60, %v4322_v52  ;;  %v2117_v60 = vld [vmem:[%s5071_s20 + $0x130] sm:$0xff] }
 0x651   : > { %1762 = vst [vmem:[#allocation2 + $0x8] sm:$0xff] %v1693_v61  ;;  %1835 = vmatprep.mubr.f32.mxu0 %v1693_v61  ;;  %v2085_v61 = vld [vmem:[%s5071_s20 + $0x30] sm:$0xff] }
 0x658   : > { %v1763_v63 = vld [vmem:[#allocation2 + $0x7] sm:$0xff] }
 0x659   : > { %v1764_v2 = vld [vmem:[#allocation2 + $0x9] sm:$0xff]  ;;  %1836 = vmatmul.mubr.f32.vlgmr.msra.gmra.mxu0 %v1763_v63 }
 0x65a   : > { %3102 = vmatmul.mubr.f32.vlgmr.msra.gmra.mxu1 %v1764_v2  ;;  %3105 = vmatpush3.msra.mxu0 %v1759_v62  ;;  %v2116_v63 = vld [vmem:[%s5071_s20 + $0x128] sm:$0xff] }
 0x65b   : > { %3136 = vmatprep.mubr.msk.f32.mxu0 %vm3830_vm0, %v4748_v22  ;;  %3106 = vmatprep.subr.mxu0 %v4748_v22  ;;  %v2084_v2 = vld [vmem:[%s5071_s20 + $0x28] sm:$0xff] }
 0x65c   : > { %3140 = vmatpush3.msra.mxu1 %v1759_v62  ;;  %3107 = vmatpush3.msra.mxu0 %v1758_v3  ;;  %v2100_v62 = vld [vmem:[%s5071_s20 + $0xa8] sm:$0xff] }
 0x65d   : > { %3141 = vmatprep.subr.mxu1 %v4748_v22  ;;  %3108 = vmatprep.subr.mxu0 %v4748_v22 }
 0x65e   : > { %3142 = vmatpush3.msra.mxu1 %v1758_v3  ;;  %3109 = vmatpush3.msra.mxu0 %v1757_v55  ;;  %v2099_v3 = vld [vmem:[%s5071_s20 + $0xa0] sm:$0xff] }
 0x65f   : > { %3143 = vmatprep.subr.mxu1 %v4748_v22  ;;  %3110 = vmatprep.subr.mxu0 %v4748_v22 }
 0x660   : > { %3144 = vmatpush3.msra.mxu1 %v1757_v55  ;;  %3111 = vmatpush3.msra.mxu0 %v1756_v4  ;;  %v2115_v55 = vld [vmem:[%s5071_s20 + $0x120] sm:$0xff] }
 0x661   : > { %3145 = vmatprep.subr.mxu1 %v4748_v22  ;;  %3112 = vmatprep.subr.mxu0 %v4748_v22 }
 0x662   : > { %3146 = vmatpush3.msra.mxu1 %v1756_v4  ;;  %3113 = vmatpush3.msra.mxu0 %v1755_v5  ;;  %v2083_v4 = vld [vmem:[%s5071_s20 + $0x20] sm:$0xff] }
 0x663   : > { %3147 = vmatprep.subr.mxu1 %v4748_v22  ;;  %3114 = vmatprep.subr.mxu0 %v4748_v22 }
 0x664   : > { %3148 = vmatpush3.msra.mxu1 %v1755_v5  ;;  %3115 = vmatpush3.msra.mxu0 %v1754_v6  ;;  %v2098_v5 = vld [vmem:[%s5071_s20 + $0x98] sm:$0xff] }
 0x665   : > { %3149 = vmatprep.subr.mxu1 %v4748_v22  ;;  %3116 = vmatprep.subr.mxu0 %v4748_v22 }
 0x666   : > { %3150 = vmatpush3.msra.mxu1 %v1754_v6  ;;  %3117 = vmatpush3.msra.mxu0 %v1753_v7  ;;  %v2082_v6 = vld [vmem:[%s5071_s20 + $0x18] sm:$0xff] }
 0x667   : > { %3151 = vmatprep.subr.mxu1 %v4748_v22  ;;  %3118 = vmatprep.subr.mxu0 %v4748_v22 }
 0x668   : > { %3152 = vmatpush3.msra.mxu1 %v1753_v7  ;;  %3119 = vmatpush3.msra.mxu0 %v1752_v8  ;;  %v2114_v7 = vld [vmem:[%s5071_s20 + $0x118] sm:$0xff] }
 0x669   : > { %3153 = vmatprep.subr.mxu1 %v4748_v22  ;;  %3120 = vmatprep.subr.mxu0 %v4748_v22 }
 0x66a   : > { %3154 = vmatpush3.msra.mxu1 %v1752_v8  ;;  %3121 = vmatpush3.msra.mxu0 %v1751_v9  ;;  %v2097_v8 = vld [vmem:[%s5071_s20 + $0x90] sm:$0xff] }
 0x66b   : > { %3155 = vmatprep.subr.mxu1 %v4748_v22  ;;  %3122 = vmatprep.subr.mxu0 %v4748_v22 }
 0x66c   : > { %3156 = vmatpush3.msra.mxu1 %v1751_v9  ;;  %3123 = vmatpush3.msra.mxu0 %v1750_v10  ;;  %v2081_v9 = vld [vmem:[%s5071_s20 + $0x10] sm:$0xff] }
 0x66d   : > { %3157 = vmatprep.subr.mxu1 %v4748_v22  ;;  %3124 = vmatprep.subr.mxu0 %v4748_v22 }
 0x66e   : > { %3158 = vmatpush3.msra.mxu1 %v1750_v10  ;;  %3125 = vmatpush3.msra.mxu0 %v1749_v11  ;;  %v2113_v10 = vld [vmem:[%s5071_s20 + $0x110] sm:$0xff] }
 0x66f   : > { %3159 = vmatprep.subr.mxu1 %v4748_v22  ;;  %3126 = vmatprep.subr.mxu0 %v4748_v22 }
 0x670   : > { %3160 = vmatpush3.msra.mxu1 %v1749_v11  ;;  %3171 = vmatprep.mubr.msk.f32.mxu1 %vm3830_vm0, %v4748_v22  ;;  %v2096_v11 = vld [vmem:[%s5071_s20 + $0x88] sm:$0xff] }
 0x671   : > { %3161 = vmatprep.subr.mxu1 %v4748_v22  ;;  %3127 = vmatpush3.msra.mxu0 %v1748_v12 }
 0x672   : > { %3162 = vmatpush3.msra.mxu1 %v1748_v12  ;;  %3128 = vmatprep.subr.mxu0 %v4748_v22  ;;  %v2080_v12 = vld [vmem:[%s5071_s20 + $0x8] sm:$0xff] }
 0x673   : > { %3163 = vmatprep.subr.mxu1 %v4748_v22  ;;  %3129 = vmatpush3.msra.mxu0 %v1747_v13 }
 0x674   : > { %3164 = vmatpush3.msra.mxu1 %v1747_v13  ;;  %3130 = vmatprep.subr.mxu0 %v4748_v22  ;;  %v2112_v13 = vld [vmem:[%s5071_s20 + $0x108] sm:$0xff] }
 0x675   : > { %3165 = vmatprep.subr.mxu1 %v4748_v22  ;;  %3131 = vmatpush3.msra.mxu0 %v1746_v14 }
 0x676   : > { %3166 = vmatpush3.msra.mxu1 %v1746_v14  ;;  %3132 = vmatprep.subr.mxu0 %v4748_v22  ;;  %v2095_v14 = vld [vmem:[%s5071_s20 + $0x80] sm:$0xff] }
 0x677   : > { %3167 = vmatprep.subr.mxu1 %v4748_v22  ;;  %3133 = vmatpush3.msra.mxu0 %v1745_v16 }
 0x678   : > { %3168 = vmatpush3.msra.mxu1 %v1745_v16  ;;  %3134 = vmatprep.subr.mxu0 %v4748_v22  ;;  %v2079_v16 = vld [vmem:[%s5071_s20] sm:$0xff] }
 0x679   : > { %3169 = vmatprep.subr.mxu1 %v4748_v22  ;;  %3135 = vmatpush3.msra.mxu0 %v1744_v17 }
 0x67a   : > { %3170 = vmatpush3.msra.mxu1 %v1744_v17  ;;  %2807 = vmatprep.subr.mxu0 %v2110_v19  ;;  %v2111_v17 = vld [vmem:[%s5071_s20 + $0x100] sm:$0xff] }
 0x67b   : > { %3174 = vmatprep.subr.mxu1 %v4748_v22 }
 0x719   : > { %v2753_v18 = vpop.f32.mrf.mxu0 }
 0x71a   : > { %v1907_v20 = vpop.f32.mrf.mxu1 }
 0x71b   : > { %v2754_v1 = vpop.f32.mrf.mxu0 }
 0x71c   : > { %v3103_v23 = vpop.f32.mrf.mxu1  ;;  %v2755_v24 = vadd.f32 %v2754_v1, %v2753_v18  ;;  %v1743_v1 = vld [vmem:[#allocation17] sm:$0x1] }
 0x71d   : > { %vm2069_vm5 = vcmp.gt.f32.partialorder %v1743_v1, 0.0 }
 0x71e   : > { %v1838_v25 = vadd.f32 %v2755_v24, %v2543_v21  ;;  %v2071_v23 = vsel %vm2069_vm5, 1, %v3828_v0 }
 0x720   : > { %v1908_v26 = vadd.f32 %v1907_v20, %v1838_v25  ;;  %v2544_v25 = vld [vmem:[#allocation20] ss:$0 sm:$0xff] }
 0x722   : > { %3137 = vmatmul.mubr.f32.vlgmr.msra.gmra.mxu0 %v1908_v26 }
 0x723   : > { %2808 = vmatpush3.msra.mxu0 %v2094_v31 }
 0x724   : > { %2809 = vmatprep.subr.mxu0 %v2109_v33 }
 0x725   : > { %2810 = vmatpush3.msra.mxu0 %v2093_v34 }
 0x726   : > { %2811 = vmatprep.subr.mxu0 %v2108_v36 }
 0x727   : > { %2812 = vmatpush3.msra.mxu0 %v2092_v38  ;;  %v2546_v38 = vld [vmem:[#allocation23] ss:$0 sm:$0xff] }
 0x728   : > { %2813 = vmatprep.subr.mxu0 %v2107_v39 }
 0x729   : > { %2814 = vmatpush3.msra.mxu0 %v2091_v41 }
 0x72a   : > { %2815 = vmatprep.subr.mxu0 %v2106_v42 }
 0x72b   : > { %2816 = vmatpush3.msra.mxu0 %v2090_v44 }
 0x72c   : > { %2817 = vmatprep.subr.mxu0 %v2105_v45 }
 0x72d   : > { %2818 = vmatpush3.msra.mxu0 %v2089_v47 }
 0x72e   : > { %2819 = vmatprep.subr.mxu0 %v2104_v48 }
 0x72f   : > { %2820 = vmatpush3.msra.mxu0 %v2088_v50 }
 0x730   : > { %2821 = vmatprep.subr.mxu0 %v2103_v51 }
 0x731   : > { %2822 = vmatpush3.msra.mxu0 %v2087_v54 }
 0x732   : > { %2823 = vmatprep.subr.mxu0 %v2102_v56 }
 0x733   : > { %2824 = vmatpush3.msra.mxu0 %v2086_v58 }
 0x734   : > { %2825 = vmatprep.subr.mxu0 %v2101_v59 }
 0x735   : > { %2826 = vmatpush3.msra.mxu0 %v2085_v61 }
 0x736   : > { %2827 = vmatprep.subr.mxu0 %v2100_v62 }
 0x737   : > { %2828 = vmatpush3.msra.mxu0 %v2084_v2 }
 0x738   : > { %2829 = vmatprep.subr.mxu0 %v2099_v3 }
 0x739   : > { %2830 = vmatpush3.msra.mxu0 %v2083_v4 }
 0x73a   : > { %2831 = vmatprep.subr.mxu0 %v2098_v5 }
 0x73b   : > { %2832 = vmatpush3.msra.mxu0 %v2082_v6 }
 0x73c   : > { %2833 = vmatprep.subr.mxu0 %v2097_v8 }
 0x73d   : > { %2834 = vmatpush3.msra.mxu0 %v2081_v9 }
 0x73e   : > { %2835 = vmatprep.subr.mxu0 %v2096_v11 }
 0x73f   : > { %2836 = vmatpush3.msra.mxu0 %v2080_v12 }
 0x740   : > { %2837 = vmatprep.subr.mxu0 %v2095_v14 }
 0x741   : > { %2838 = vmatpush3.msra.mxu0 %v2079_v16 }
 0x7e2   : > { %v1977_v27 = vpop.f32.mrf.mxu0 }
 0x7e3   : > { %v4872_v28 = vsub.f32 %v1908_v26, %v1977_v27  ;;  %v2545_v27 = vld [vmem:[#allocation22] ss:$0 sm:$0xff] }
 0x7e4   : > { %v3138_v29 = vpop.f32.mrf.mxu0 }
 0x7e5   : > { %v1982_v30 = vmul.f32 %v4872_v28, %v4872_v28  ;;  %v2075_v29 = vrot.slane %v2071_v23, %v4575_v15 }
 0x7e7   : > { %3172 = vmatmul.mubr.f32.vlgmr.msra.gmra.mxu1 %v1982_v30  ;;  %vm2076_vm6 = vcmp.eq.s32.totalorder %v2075_v29, 1 }
 0x7e8   : > { %3206 = vmatprep.mubr.msk.f32.mxu1 %vm3830_vm0, %v4748_v22  ;;  %3175 = vmatpush3.msra.mxu1 %v2126_v32 }
 0x7e9   : > { %3176 = vmatprep.subr.mxu1 %v4748_v22 }
 0x7ea   : > { %3177 = vmatpush3.msra.mxu1 %v2125_v35  ;;  %v2128_v35 = vld [vmem:[#allocation25] sm:$0x1] }
 0x7eb   : > { %3178 = vmatprep.subr.mxu1 %v4748_v22  ;;  %vm2278_vm7 = vcmp.gt.f32.partialorder %v2128_v35, 0.0 }
 0x7ec   : > { %3179 = vmatpush3.msra.mxu1 %v2124_v37  ;;  %v2280_v37 = vsel %vm2278_vm7, 1, %v3828_v0 }
 0x7ed   : > { %3180 = vmatprep.subr.mxu1 %v4748_v22  ;;  %v2284_v42 = vrot.slane %v2280_v37, %v4575_v15 }
 0x7ee   : > { %3181 = vmatpush3.msra.mxu1 %v2123_v40 }
 0x7ef   : > { %3182 = vmatprep.subr.mxu1 %v4748_v22  ;;  %vm2285_vm8 = vcmp.eq.s32.totalorder %v2284_v42, 1 }
 0x7f0   : > { %3183 = vmatpush3.msra.mxu1 %v2122_v43 }
 0x7f1   : > { %3184 = vmatprep.subr.mxu1 %v4748_v22 }
 0x7f2   : > { %3185 = vmatpush3.msra.mxu1 %v2121_v46 }
 0x7f3   : > { %3186 = vmatprep.subr.mxu1 %v4748_v22 }
 0x7f4   : > { %3187 = vmatpush3.msra.mxu1 %v2120_v49 }
 0x7f5   : > { %3188 = vmatprep.subr.mxu1 %v4748_v22 }
 0x7f6   : > { %3189 = vmatpush3.msra.mxu1 %v2119_v53 }
 0x7f7   : > { %3190 = vmatprep.subr.mxu1 %v4748_v22 }
 0x7f8   : > { %3191 = vmatpush3.msra.mxu1 %v2118_v57 }
 0x7f9   : > { %3192 = vmatprep.subr.mxu1 %v4748_v22 }
 0x7fa   : > { %3193 = vmatpush3.msra.mxu1 %v2117_v60 }
 0x7fb   : > { %3194 = vmatprep.subr.mxu1 %v4748_v22 }
 0x7fc   : > { %3195 = vmatpush3.msra.mxu1 %v2116_v63 }
 0x7fd   : > { %3196 = vmatprep.subr.mxu1 %v4748_v22 }
 0x7fe   : > { %3197 = vmatpush3.msra.mxu1 %v2115_v55 }
 0x7ff   : > { %3198 = vmatprep.subr.mxu1 %v4748_v22 }
 0x800   : > { %3199 = vmatpush3.msra.mxu1 %v2114_v7 }
 0x801   : > { %3200 = vmatprep.subr.mxu1 %v4748_v22 }
 0x802   : > { %3201 = vmatpush3.msra.mxu1 %v2113_v10 }
 0x803   : > { %3202 = vmatprep.subr.mxu1 %v4748_v22 }
 0x804   : > { %3203 = vmatpush3.msra.mxu1 %v2112_v13 }
 0x805   : > { %3204 = vmatprep.subr.mxu1 %v4748_v22 }
 0x806   : > { %3205 = vmatpush3.msra.mxu1 %v2111_v17 }
 0x8a7   : > { %v2049_v18 = vpop.f32.mrf.mxu1 }
 0x8a8   : > { %v2050_v20 = vadd.f32 1e-05, %v2049_v18 }
 0x8a9   : > { %v3173_v21 = vpop.f32.mrf.mxu1 }
 0x8aa   : > { %3378 = vrsqrt.f32 %v2050_v20 }
 0x8b7   : > { %v3379_v24 = vpop.eup %3378 }
 0x8b8   : > { %v2054_v26 = vmul.f32 %v3379_v24, %v4872_v28 }
 0x8ba   : > { %v2061_v30 = vmul.f32 %v2544_v25, %v2054_v26 }
 0x8bc   : > { %v2068_v19 = vadd.f32 %v2545_v27, %v2061_v30 }
 0x8be   : > { %v2070_v22 = vmax.f32 %v2068_v19, 0.0 }
 0x8c0   : > { %v2077_v31 = vsel %vm2076_vm6, %v2070_v22, %v2068_v19 }
 0x8c1   : > { %v2078_v32 = vmul.f32 %v2077_v31, %v4322_v52 }
 0x8c3   : > { %2202 = vmatprep.mubr.f32.mxu0 %v2078_v32  ;;  %2129 = vst [vmem:[#allocation2 + $0x8] sm:$0xff] %v2078_v32 }
 0x8ca   : > { %v2130_v33 = vld [vmem:[#allocation2 + $0x7] sm:$0xff] }
 0x8cb   : > { %v2131_v34 = vld [vmem:[#allocation2 + $0x9] sm:$0xff]  ;;  %2203 = vmatmul.mubr.f32.vlgmr.msra.gmra.mxu0 %v2130_v33 }
 0x8cc   : > { %3207 = vmatmul.mubr.f32.vlgmr.msra.gmra.mxu1 %v2131_v34 }
 0x98b   : > { %v2839_v28 = vpop.f32.mrf.mxu0 }
 0x98c   : > { %v2274_v36 = vpop.f32.mrf.mxu1 }
 0x98d   : > { %v2840_v39 = vpop.f32.mrf.mxu0 }
 0x98e   : > { %v3208_v40 = vpop.f32.mrf.mxu1  ;;  %v2841_v41 = vadd.f32 %v2840_v39, %v2839_v28 }
 0x990   : > { %v2205_v43 = vadd.f32 %v2841_v41, %v2546_v38 }
 0x992   : > { %v2275_v44 = vadd.f32 %v2274_v36, %v2205_v43 }
 0x994   : > { %v2279_v45 = vmax.f32 %v2275_v44, 0.0 }
 0x996   : > { %v2286_v46 = vsel %vm2285_vm8, %v2279_v45, %v2275_v44 }
 0x997   : > { %v2287_v47 = vmul.f32 %v2286_v46, %v4322_v52 }
 0x999   : > { %2288 = vst [vmem:[%s912_s24] sm:$0xff] %v2287_v47 }
 0x99a PF: > { %s41_s4 = sadd.s32 1, %s3809_s4  }
 0x99b   : > { %p38_p3 = scmp.ge.s32.totalorder %s41_s4, 4  }
 0x99d   :  { %40 = sbr.rel (!%p38_p3) target bundleno = 18 (0x12), region = 206 }
 0x9a2   :  { %2308 = vsyncpa [#allocation4], 1 }
 0x9a3   :  { %2310 = vsyncpa [#allocation4 + $0x1], 1 }
 0x9a4   :  { %2311 = vsyncpa [#allocation6], 1 }
 0x9a5   :  { %2312 = vsyncpa [#allocation9], 1 }
 0x9a6   :  { %2313 = vsyncpa [#allocation12], 1 }
 0x9a7   :  { %2314 = vsyncpa [#allocation15], 1 }
 0x9a8   :  { %2315 = vsyncpa [#allocation18], 1 }
 0x9a9   :  { %2316 = vsyncpa [#allocation21], 1 }
 0x9aa   :  { %2317 = vsyncpa [#allocation24], 1 }

</bundles_post_ra>
